<compile_context>
chip_gen: v7x
topology: tpu7x:2x2x1
jax: 0.10.0
libtpu: 0.0.40
codegen_flags: <defaults>
</compile_context>

<pallas_src>
import math

import jax
import jax.numpy as jnp
from jax import lax
from jax.experimental import pallas as pl
from jax.experimental.pallas import tpu as pltpu


# ----------------------------- small helpers --------------------------------

def _full_spec(shape):
    """Whole-array block for a grid=(1,) pallas_call."""
    nd = len(shape)
    return pl.BlockSpec(shape, lambda i, _nd=nd: (0,) * _nd)


def _ln(x, gamma, beta, eps=1e-12):
    mu = jnp.mean(x, axis=-1, keepdims=True)
    d = x - mu
    var = jnp.mean(d * d, axis=-1, keepdims=True)
    return d * lax.rsqrt(var + eps) * gamma + beta


def _softmax_lastdim(x):
    m = jnp.max(x, axis=-1, keepdims=True)
    e = jnp.exp(x - m)
    return e / jnp.sum(e, axis=-1, keepdims=True)


# ------------------------ Kernel 1: embeddings + encoder --------------------

def _make_bert_kernel(B, S, H, n_heads, n_layers):
    dh = H // n_heads
    scale = 1.0 / math.sqrt(dh)
    c_gelu = math.sqrt(2.0 / math.pi)

    def kernel(word_ref, pred_ref, pos_ref, tok_ref, embln_ref,
               wqkv_ref, bqkv_ref, wo_ref, bo_ref, ln1_ref,
               w1_ref, b1_ref, w2_ref, b2_ref, ln2_ref,
               hs_ref, ctx_ref):
        # BertEmbeddings applied twice (matches HF: once on input_ids, once on
        # inputs_embeds) with the predicate token-type indicator in between.
        add = pos_ref[...] + tok_ref[...]
        eg = embln_ref[0:1, :]
        eb = embln_ref[1:2, :]
        e1 = _ln(word_ref[...] + add, eg, eb)
        x = _ln(e1 + pred_ref[...] + add, eg, eb)

        for l in range(n_layers):
            # Fused QKV projection: one (M, H) @ (H, 3H) MXU matmul.
            qkv = (jnp.dot(x, wqkv_ref[l], preferred_element_type=jnp.float32)
                   + bqkv_ref[l])
            # Attention entirely in VMEM; static loop over (batch, head).
            for bi in range(B):
                r0 = bi * S
                for h in range(n_heads):
                    c0 = h * dh
                    q = qkv[r0:r0 + S, c0:c0 + dh]
                    k = qkv[r0:r0 + S, H + c0:H + c0 + dh]
                    v = qkv[r0:r0 + S, 2 * H + c0:2 * H + c0 + dh]
                    s = lax.dot_general(
                        q, k, (((1,), (1,)), ((), ())),
                        preferred_element_type=jnp.float32) * scale
                    p = _softmax_lastdim(s)
                    ctx_ref[r0:r0 + S, c0:c0 + dh] = jnp.dot(
                        p, v, preferred_element_type=jnp.float32)
            attn = (jnp.dot(ctx_ref[...], wo_ref[l],
                            preferred_element_type=jnp.float32) + bo_ref[l])
            ln1 = ln1_ref[l]
            x1 = _ln(x + attn, ln1[0:1, :], ln1[1:2, :])
            hmid = (jnp.dot(x1, w1_ref[l], preferred_element_type=jnp.float32)
                    + b1_ref[l])
            # TODO(synk): exact erf-GELU replaced with the tanh-approximate GELU
            # (safe transcendental set inside the fused kernel).
            hmid = 0.5 * hmid * (1.0 + jnp.tanh(
                c_gelu * (hmid + 0.044715 * hmid * hmid * hmid)))
            ffn = (jnp.dot(hmid, w2_ref[l], preferred_element_type=jnp.float32)
                   + b2_ref[l])
            ln2 = ln2_ref[l]
            x = _ln(x1 + ffn, ln2[0:1, :], ln2[1:2, :])
            hs_ref[l] = x

    return kernel


def bert_encoder_pallas(params, input_ids, predicate_idx, n_heads=2):
    B, S = input_ids.shape
    H = params['word_emb'].shape[1]
    layers = params['layers']
    L = len(layers)
    inter = layers[0]['w1'].shape[1]
    M = B * S

    # Gathers stay in JAX (no efficient tiny-gather Pallas kernel).
    word = jnp.take(params['word_emb'], input_ids.reshape(-1), axis=0)
    predicate_mask = (jnp.arange(S, dtype=jnp.int32)[None, :] ==
                      predicate_idx.reshape(-1, 1).astype(jnp.int32)
                      ).astype(jnp.int32)
    pred = jnp.take(params['tok_type_emb'], predicate_mask.reshape(-1), axis=0)
    pos = jnp.tile(params['pos_emb'][:S], (B, 1))
    tok0 = params['tok_type_emb'][0:1, :]
    embln = jnp.stack([params['emb_ln_g'], params['emb_ln_b']])

    # Per-layer weights stacked once -> a single fused encoder kernel.
    wqkv = jnp.stack([jnp.concatenate([lp['wq'], lp['wk'], lp['wv']], axis=1)
                      for lp in layers])
    bqkv = jnp.stack([jnp.concatenate([lp['bq'], lp['bk'], lp['bv']])[None, :]
                      for lp in layers])
    wo = jnp.stack([lp['wo'] for lp in layers])
    bo = jnp.stack([lp['bo'][None, :] for lp in layers])
    ln1 = jnp.stack([jnp.stack([lp['ln1_g'], lp['ln1_b']]) for lp in layers])
    w1 = jnp.stack([lp['w1'] for lp in layers])
    b1 = jnp.stack([lp['b1'][None, :] for lp in layers])
    w2 = jnp.stack([lp['w2'] for lp in layers])
    b2 = jnp.stack([lp['b2'][None, :] for lp in layers])
    ln2 = jnp.stack([jnp.stack([lp['ln2_g'], lp['ln2_b']]) for lp in layers])

    inputs = (word, pred, pos, tok0, embln,
              wqkv, bqkv, wo, bo, ln1, w1, b1, w2, b2, ln2)
    in_specs = [_full_spec(t.shape) for t in inputs]

    dh = H // n_heads
    flops = L * (2 * M * H * 3 * H + 2 * M * H * H + 4 * M * H * inter
                 + 4 * B * n_heads * S * S * dh)
    cost = pl.CostEstimate(
        flops=flops,
        transcendentals=L * (B * n_heads * S * S + M * inter),
        bytes_accessed=sum(t.size * 4 for t in inputs) + L * M * H * 4)

    hs = pl.pallas_call(
        _make_bert_kernel(B, S, H, n_heads, L),
        out_shape=jax.ShapeDtypeStruct((L, M, H), jnp.float32),
        grid=(1,),
        in_specs=in_specs,
        out_specs=_full_spec((L, M, H)),
        scratch_shapes=[pltpu.VMEM((M, H), jnp.float32)],
        compiler_params=pltpu.CompilerParams(
            dimension_semantics=("arbitrary",)),
        cost_estimate=cost,
    )(*[t.astype(jnp.float32) for t in inputs])
    return hs


# ---------------- Kernel 2: weighted sum + aux heads + bi-LSTM + linear ------

def _make_srl_head_kernel(S, Hh, L, RP):
    G = 4 * Hh

    def kernel(w3_ref, hs_ref, whead_ref, bhead_ref, p_ref, pt_ref,
               wih_ref, bih_ref, whhf_ref, whhb_ref, wout_ref, bout_ref,
               heads_ref, logits_ref, h_all_ref):
        # Softmax-weighted sum of the selected encoder layers.
        wa = w3_ref[0] * hs_ref[0]
        for l in range(1, L):
            wa = wa + w3_ref[l] * hs_ref[l]
        # All three auxiliary heads in one lane-dense (>=128 wide) matmul.
        heads_ref[...] = (jnp.dot(wa, whead_ref[...],
                                  preferred_element_type=jnp.float32)
                          + bhead_ref[...])

        # Batch-major -> sublane-padded time-major via one-hot permutation.
        x_tm = jnp.dot(p_ref[...], wa, preferred_element_type=jnp.float32)
        # LSTM input projection for BOTH directions hoisted out of the loop.
        gx = (jnp.dot(x_tm, wih_ref[...], preferred_element_type=jnp.float32)
              + bih_ref[...])                                  # (S*RP, 2*G)
        whh_f = whhf_ref[...]
        whh_b = whhb_ref[...]

        def cell(gates, c):
            i = jax.nn.sigmoid(gates[:, 0:Hh])
            f = jax.nn.sigmoid(gates[:, Hh:2 * Hh])
            g = jnp.tanh(gates[:, 2 * Hh:3 * Hh])
            o = jax.nn.sigmoid(gates[:, 3 * Hh:4 * Hh])
            c_new = f * c + i * g
            return o * jnp.tanh(c_new), c_new

        h_f = jnp.zeros((RP, Hh), jnp.float32)
        c_f = jnp.zeros((RP, Hh), jnp.float32)
        h_b = jnp.zeros((RP, Hh), jnp.float32)
        c_b = jnp.zeros((RP, Hh), jnp.float32)
        # Statically unrolled recurrence; forward and backward share each step
        # (the backward direction walks the sequence in reverse).
        for t in range(S):
            tb = S - 1 - t
            g_f = gx[t * RP:(t + 1) * RP, 0:G] + jnp.dot(
                h_f, whh_f, preferred_element_type=jnp.float32)
            g_b = gx[tb * RP:(tb + 1) * RP, G:2 * G] + jnp.dot(
                h_b, whh_b, preferred_element_type=jnp.float32)
            h_f, c_f = cell(g_f, c_f)
            h_b, c_b = cell(g_b, c_b)
            h_all_ref[t * RP:(t + 1) * RP, 0:Hh] = h_f
            h_all_ref[tb * RP:(tb + 1) * RP, Hh:2 * Hh] = h_b
        # Downstream Linear(2*Hh -> 1) on the whole sequence, then permute the
        # valid rows back to batch-major order (P^T picks exactly those rows).
        out_pad = (jnp.dot(h_all_ref[...], wout_ref[...],
                           preferred_element_type=jnp.float32) + bout_ref[...])
        logits_ref[...] = jnp.dot(pt_ref[...], out_pad,
                                  preferred_element_type=jnp.float32)

    return kernel


def srl_heads_and_lstm_pallas(params, layer_weights_softmax, hs_sel, B, S):
    H = params['word_emb'].shape[1]
    Hh = params['whh_f'].shape[0]
    L = hs_sel.shape[0]
    M = B * S
    G = 4 * Hh
    RP = ((B + 7) // 8) * 8          # sublane-padded rows per timestep

    n_pos = params['pos_w'].shape[1]
    n_bio = params['bio_w'].shape[1]
    n_head_cols = n_pos + n_bio + 1
    head_width = ((n_head_cols + 127) // 128) * 128

    whead = jnp.concatenate(
        [params['pos_w'], params['bio_w'], params['dd_w']], axis=1)
    whead = jnp.pad(whead, ((0, 0), (0, head_width - n_head_cols)))
    bhead = jnp.concatenate([params['pos_b'], params['bio_b'], params['dd_b']])
    bhead = jnp.pad(bhead, (0, head_width - n_head_cols)).reshape(1, head_width)

    wih = jnp.concatenate([params['wih_f'], params['wih_b']], axis=1)  # (H,2G)
    bih = jnp.concatenate([params['b_f'], params['b_b']]).reshape(1, 2 * G)
    wout = params['out_w']
    bout = params['out_b'].reshape(1, 1)

    # One-hot permutation: padded time-major row t*RP+b <- batch-major b*S+t.
    rows = jnp.arange(S * RP)
    t_idx = rows // RP
    j_idx = rows % RP
    src = jnp.where(j_idx < B, j_idx * S + t_idx, -1)
    pmat = jax.nn.one_hot(src, M, dtype=jnp.float32)        # (S*RP, M)
    pmat_t = pmat.T                                          # (M, S*RP)

    inputs = (hs_sel, whead, bhead, pmat, pmat_t, wih, bih,
              params['whh_f'], params['whh_b'], wout, bout)
    in_specs = ([pl.BlockSpec(memory_space=pltpu.MemorySpace.SMEM)]
                + [_full_spec(t.shape) for t in inputs])

    flops = (2 * M * H * head_width + 2 * S * RP * M * H
             + 2 * S * RP * H * 2 * G + S * 2 * (2 * RP * Hh * G)
             + 2 * S * RP * 2 * Hh + 2 * M * S * RP)
    cost = pl.CostEstimate(
        flops=flops,
        transcendentals=S * 2 * RP * 5 * Hh,
        bytes_accessed=(sum(t.size * 4 for t in inputs)
                        + M * head_width * 4 + M * 4))

    heads, logits = pl.pallas_call(
        _make_srl_head_kernel(S, Hh, L, RP),
        out_shape=(jax.ShapeDtypeStruct((M, head_width), jnp.float32),
                   jax.ShapeDtypeStruct((M, 1), jnp.float32)),
        grid=(1,),
        in_specs=in_specs,
        out_specs=(_full_spec((M, head_width)), _full_spec((M, 1))),
        scratch_shapes=[pltpu.VMEM((S * RP, 2 * Hh), jnp.float32)],
        compiler_params=pltpu.CompilerParams(
            dimension_semantics=("arbitrary",)),
        cost_estimate=cost,
    )(layer_weights_softmax.astype(jnp.float32),
      *[t.astype(jnp.float32) for t in inputs])
    return heads, logits


# ----------------------------- model parameters ------------------------------

def init_params(key, vocab=50, max_pos=16, H=32, n_layers=3, inter=64,
                Hh=16, n_pos_tags=9, n_bio_tags=18, n_layers_to_use=3):
    keys = jax.random.split(key, 64)
    k = iter(keys)
    norm = lambda shape: jax.random.normal(next(k), shape, jnp.float32) * 0.02
    zeros = lambda shape: jnp.zeros(shape, jnp.float32)
    ones = lambda shape: jnp.ones(shape, jnp.float32)
    p = {}
    p['word_emb'] = norm((vocab, H))
    p['pos_emb'] = norm((max_pos, H))
    p['tok_type_emb'] = norm((2, H))
    p['emb_ln_g'] = ones((H,)); p['emb_ln_b'] = zeros((H,))
    layers = []
    for _ in range(n_layers):
        layers.append({
            'wq': norm((H, H)), 'bq': zeros((H,)),
            'wk': norm((H, H)), 'bk': zeros((H,)),
            'wv': norm((H, H)), 'bv': zeros((H,)),
            'wo': norm((H, H)), 'bo': zeros((H,)),
            'ln1_g': ones((H,)), 'ln1_b': zeros((H,)),
            'w1': norm((H, inter)), 'b1': zeros((inter,)),
            'w2': norm((inter, H)), 'b2': zeros((H,)),
            'ln2_g': ones((H,)), 'ln2_b': zeros((H,)),
        })
    p['layers'] = layers
    p['layer_weights'] = jax.random.uniform(next(k), (n_layers_to_use,),
                                            jnp.float32)
    p['pos_w'] = norm((H, n_pos_tags)); p['pos_b'] = zeros((n_pos_tags,))
    p['bio_w'] = norm((H, n_bio_tags)); p['bio_b'] = zeros((n_bio_tags,))
    p['dd_w'] = norm((H, 1)); p['dd_b'] = zeros((1,))
    # Bidirectional LSTM (gate order i, f, g, o like PyTorch).
    p['wih_f'] = norm((H, 4 * Hh)); p['whh_f'] = norm((Hh, 4 * Hh))
    p['b_f'] = zeros((4 * Hh,))
    p['wih_b'] = norm((H, 4 * Hh)); p['whh_b'] = norm((Hh, 4 * Hh))
    p['b_b'] = zeros((4 * Hh,))
    p['out_w'] = norm((2 * Hh, 1)); p['out_b'] = zeros((1,))
    return p


# ------------------------------- full forward --------------------------------

def srl_aux_forward(params, input_ids, predicate_idx,
                    layers_to_use=(1, 2, 3), n_heads=2):
    assert min(layers_to_use) >= 1   # hidden_states[0] (emb out) not emitted
    B, S = input_ids.shape
    hs = bert_encoder_pallas(params, input_ids, predicate_idx,
                             n_heads=n_heads)                 # (L, B*S, H)
    sel = jnp.stack([hs[i - 1] for i in layers_to_use], axis=0)
    w3 = jax.nn.softmax(params['layer_weights'], axis=0)
    heads, logits_flat = srl_heads_and_lstm_pallas(params, w3, sel, B, S)

    n_pos = params['pos_w'].shape[1]
    n_bio = params['bio_w'].shape[1]
    pos_logits = heads[:, :n_pos].reshape(B, S, n_pos)
    bio_logits = heads[:, n_pos:n_pos + n_bio].reshape(B, S, n_bio)
    dd_logits = heads[:, n_pos + n_bio:n_pos + n_bio + 1].reshape(B, S, 1)
    logits = logits_flat.reshape(B, S, 1)
    # TODO(synk): Dropout(0.3) layers treated as identity (eval mode).
    labels = None    # labels=None path of the reference forward
    return logits, labels, pos_logits, bio_logits, dd_logits


# -------------------------- pure-JAX reference check --------------------------

def _reference_forward(params, input_ids, predicate_idx,
                       layers_to_use=(1, 2, 3), n_heads=2):
    B, S = input_ids.shape
    H = params['word_emb'].shape[1]
    dh = H // n_heads

    def ln(x, g, b):
        mu = jnp.mean(x, axis=-1, keepdims=True)
        var = jnp.mean((x - mu) ** 2, axis=-1, keepdims=True)
        return (x - mu) / jnp.sqrt(var + 1e-12) * g + b

    def embeddings(e):
        e = (e + params['pos_emb'][:S][None, :, :]
             + params['tok_type_emb'][0][None, None, :])
        return ln(e, params['emb_ln_g'], params['emb_ln_b'])

    word = params['word_emb'][input_ids]
    emb = embeddings(word)
    mask = (jnp.arange(S, dtype=jnp.int32)[None, :] ==
            predicate_idx.reshape(-1, 1).astype(jnp.int32)).astype(jnp.int32)
    emb = emb + params['tok_type_emb'][mask]
    x = embeddings(emb)
    hidden_states = [x]
    for lp in params['layers']:
        q = (x @ lp['wq'] + lp['bq']).reshape(B, S, n_heads, dh).transpose(0, 2, 1, 3)
        k = (x @ lp['wk'] + lp['bk']).reshape(B, S, n_heads, dh).transpose(0, 2, 1, 3)
        v = (x @ lp['wv'] + lp['bv']).reshape(B, S, n_heads, dh).transpose(0, 2, 1, 3)
        s = jnp.einsum('bhqd,bhkd->bhqk', q, k) / math.sqrt(dh)
        a = jax.nn.softmax(s, axis=-1)
        ctx = jnp.einsum('bhqk,bhkd->bhqd', a, v).transpose(0, 2, 1, 3).reshape(B, S, H)
        x1 = ln(x + ctx @ lp['wo'] + lp['bo'], lp['ln1_g'], lp['ln1_b'])
        hmid = jax.nn.gelu(x1 @ lp['w1'] + lp['b1'], approximate=True)
        x = ln(x1 + hmid @ lp['w2'] + lp['b2'], lp['ln2_g'], lp['ln2_b'])
        hidden_states.append(x)
    w3 = jax.nn.softmax(params['layer_weights'], axis=0)
    wa = sum(w3[i] * hidden_states[idx] for i, idx in enumerate(layers_to_use))
    pos = wa @ params['pos_w'] + params['pos_b']
    bio = wa @ params['bio_w'] + params['bio_b']
    dd = wa @ params['dd_w'] + params['dd_b']
    Hh = params['whh_f'].shape[0]

    def run_lstm(xseq, wih, whh, bias):
        def step(carry, x_t):
            h, c = carry
            g = x_t @ wih + h @ whh + bias
            i = jax.nn.sigmoid(g[:, :Hh])
            f = jax.nn.sigmoid(g[:, Hh:2 * Hh])
            gg = jnp.tanh(g[:, 2 * Hh:3 * Hh])
            o = jax.nn.sigmoid(g[:, 3 * Hh:])
            c = f * c + i * gg
            h = o * jnp.tanh(c)
            return (h, c), h
        init = (jnp.zeros((B, Hh), jnp.float32), jnp.zeros((B, Hh), jnp.float32))
        _, hseq = lax.scan(step, init, jnp.swapaxes(xseq, 0, 1))
        return jnp.swapaxes(hseq, 0, 1)

    fwd = run_lstm(wa, params['wih_f'], params['whh_f'], params['b_f'])
    bwd = run_lstm(wa[:, ::-1], params['wih_b'], params['whh_b'],
                   params['b_b'])[:, ::-1]
    logits = jnp.concatenate([fwd, bwd], axis=-1) @ params['out_w'] + params['out_b']
    return logits, None, pos, bio, dd


# ------------------------------------ main -----------------------------------

if __name__ == "__main__":
    key = jax.random.PRNGKey(0)
    kp, ki, kpred = jax.random.split(key, 3)
    B, S, vocab = 2, 8, 50
    params = init_params(kp, vocab=vocab)
    input_ids = jax.random.randint(ki, (B, S), 0, vocab, dtype=jnp.int32)
    predicate_idx = jax.random.randint(kpred, (B,), 0, S, dtype=jnp.int32)

    fwd = jax.jit(srl_aux_forward, static_argnames=("layers_to_use", "n_heads"))
    logits, labels, pos_logits, bio_logits, dd_logits = fwd(
        params, input_ids, predicate_idx)
    jax.block_until_ready((logits, pos_logits, bio_logits, dd_logits))

    assert logits.shape == (B, S, 1)
    assert pos_logits.shape == (B, S, 9)
    assert bio_logits.shape == (B, S, 18)
    assert dd_logits.shape == (B, S, 1)
    assert labels is None

    # Correctness check against a pure-JAX mirror of the PyTorch forward.
    with jax.default_matmul_precision("highest"):
        ref = _reference_forward(params, input_ids, predicate_idx)
    r_logits, _, r_pos, r_bio, r_dd = jax.block_until_ready(ref)
    for got, want in ((logits, r_logits), (pos_logits, r_pos),
                      (bio_logits, r_bio), (dd_logits, r_dd)):
        err = float(jnp.max(jnp.abs(got - want)))
        assert err < 5e-3, f"mismatch vs reference: max abs err {err}"

    print("KERNEL_OK")
</pallas_src>

<mosaic_0001>
module attributes {stable_mosaic.version = 11 : i64} {
  func.func @kernel(%arg0: i32, %arg1: memref<16x32xf32, #tpu.memory_space<vmem>>, %arg2: memref<16x32xf32, #tpu.memory_space<vmem>>, %arg3: memref<16x32xf32, #tpu.memory_space<vmem>>, %arg4: memref<1x32xf32, #tpu.memory_space<vmem>>, %arg5: memref<2x32xf32, #tpu.memory_space<vmem>>, %arg6: memref<3x32x96xf32, #tpu.memory_space<vmem>>, %arg7: memref<3x1x96xf32, #tpu.memory_space<vmem>>, %arg8: memref<3x32x32xf32, #tpu.memory_space<vmem>>, %arg9: memref<3x1x32xf32, #tpu.memory_space<vmem>>, %arg10: memref<3x2x32xf32, #tpu.memory_space<vmem>>, %arg11: memref<3x32x64xf32, #tpu.memory_space<vmem>>, %arg12: memref<3x1x64xf32, #tpu.memory_space<vmem>>, %arg13: memref<3x64x32xf32, #tpu.memory_space<vmem>>, %arg14: memref<3x1x32xf32, #tpu.memory_space<vmem>>, %arg15: memref<3x2x32xf32, #tpu.memory_space<vmem>>, %arg16: memref<3x16x32xf32, #tpu.memory_space<vmem>>, %arg17: memref<16x32xf32, #tpu.memory_space<vmem>>) attributes {dimension_semantics = [#tpu.dimension_semantics<arbitrary>], iteration_bounds = array<i64: 1>, scalar_prefetch = 0 : i64, scratch_operands = 1 : i64, tpu.core_type = #tpu.core_type<tc>, window_params = [{pipeline_mode = #tpu.pipeline_mode<synchronous>, transform_indices = @transform_0, window_bounds = array<i64: 16, 32>}, {pipeline_mode = #tpu.pipeline_mode<synchronous>, transform_indices = @transform_1, window_bounds = array<i64: 16, 32>}, {pipeline_mode = #tpu.pipeline_mode<synchronous>, transform_indices = @transform_2, window_bounds = array<i64: 16, 32>}, {pipeline_mode = #tpu.pipeline_mode<synchronous>, transform_indices = @transform_3, window_bounds = array<i64: 1, 32>}, {pipeline_mode = #tpu.pipeline_mode<synchronous>, transform_indices = @transform_4, window_bounds = array<i64: 2, 32>}, {pipeline_mode = #tpu.pipeline_mode<synchronous>, transform_indices = @transform_5, window_bounds = array<i64: 3, 32, 96>}, {pipeline_mode = #tpu.pipeline_mode<synchronous>, transform_indices = @transform_6, window_bounds = array<i64: 3, 1, 96>}, {pipeline_mode = #tpu.pipeline_mode<synchronous>, transform_indices = @transform_7, window_bounds = array<i64: 3, 32, 32>}, {pipeline_mode = #tpu.pipeline_mode<synchronous>, transform_indices = @transform_8, window_bounds = array<i64: 3, 1, 32>}, {pipeline_mode = #tpu.pipeline_mode<synchronous>, transform_indices = @transform_9, window_bounds = array<i64: 3, 2, 32>}, {pipeline_mode = #tpu.pipeline_mode<synchronous>, transform_indices = @transform_10, window_bounds = array<i64: 3, 32, 64>}, {pipeline_mode = #tpu.pipeline_mode<synchronous>, transform_indices = @transform_11, window_bounds = array<i64: 3, 1, 64>}, {pipeline_mode = #tpu.pipeline_mode<synchronous>, transform_indices = @transform_12, window_bounds = array<i64: 3, 64, 32>}, {pipeline_mode = #tpu.pipeline_mode<synchronous>, transform_indices = @transform_13, window_bounds = array<i64: 3, 1, 32>}, {pipeline_mode = #tpu.pipeline_mode<synchronous>, transform_indices = @transform_14, window_bounds = array<i64: 3, 2, 32>}, {pipeline_mode = #tpu.pipeline_mode<synchronous>, transform_indices = @transform_15, window_bounds = array<i64: 3, 16, 32>}]} {
    %c0 = arith.constant 0 : index
    %c0_0 = arith.constant 0 : index
    %0 = vector.load %arg3[%c0, %c0_0] : memref<16x32xf32, #tpu.memory_space<vmem>>, vector<16x32xf32>
    %c0_1 = arith.constant 0 : index
    %c0_2 = arith.constant 0 : index
    %1 = vector.load %arg4[%c0_1, %c0_2] : memref<1x32xf32, #tpu.memory_space<vmem>>, vector<1x32xf32>
    %2 = vector.broadcast %1 : vector<1x32xf32> to vector<16x32xf32>
    %3 = arith.addf %0, %2 : vector<16x32xf32>
    %c0_3 = arith.constant 0 : index
    %c0_4 = arith.constant 0 : index
    %4 = vector.load %arg5[%c0_3, %c0_4] : memref<2x32xf32, #tpu.memory_space<vmem>>, vector<1x32xf32>
    %c1 = arith.constant 1 : index
    %c0_5 = arith.constant 0 : index
    %5 = vector.load %arg5[%c1, %c0_5] : memref<2x32xf32, #tpu.memory_space<vmem>>, vector<1x32xf32>
    %c0_6 = arith.constant 0 : index
    %c0_7 = arith.constant 0 : index
    %6 = vector.load %arg1[%c0_6, %c0_7] : memref<16x32xf32, #tpu.memory_space<vmem>>, vector<16x32xf32>
    %7 = arith.addf %6, %3 : vector<16x32xf32>
    %cst = arith.constant dense<0.000000e+00> : vector<16xf32>
    %8 = vector.multi_reduction <add>, %7, %cst [1] : vector<16x32xf32> to vector<16xf32>
    %9 = vector.shape_cast %8 : vector<16xf32> to vector<16x1xf32>
    %cst_8 = arith.constant 3.200000e+01 : f32
    %10 = vector.broadcast %cst_8 : f32 to vector<16x1xf32>
    %11 = arith.divf %9, %10 : vector<16x1xf32>
    %12 = vector.broadcast %11 : vector<16x1xf32> to vector<16x32xf32>
    %13 = arith.subf %7, %12 : vector<16x32xf32>
    %14 = arith.mulf %13, %13 : vector<16x32xf32>
    %cst_9 = arith.constant dense<0.000000e+00> : vector<16xf32>
    %15 = vector.multi_reduction <add>, %14, %cst_9 [1] : vector<16x32xf32> to vector<16xf32>
    %16 = vector.shape_cast %15 : vector<16xf32> to vector<16x1xf32>
    %cst_10 = arith.constant 3.200000e+01 : f32
    %17 = vector.broadcast %cst_10 : f32 to vector<16x1xf32>
    %18 = arith.divf %16, %17 : vector<16x1xf32>
    %cst_11 = arith.constant 9.99999996E-13 : f32
    %19 = vector.broadcast %cst_11 : f32 to vector<16x1xf32>
    %20 = arith.addf %18, %19 : vector<16x1xf32>
    %21 = math.rsqrt %20 : vector<16x1xf32>
    %22 = vector.broadcast %21 : vector<16x1xf32> to vector<16x32xf32>
    %23 = arith.mulf %13, %22 : vector<16x32xf32>
    %24 = vector.broadcast %4 : vector<1x32xf32> to vector<16x32xf32>
    %25 = arith.mulf %23, %24 : vector<16x32xf32>
    %26 = vector.broadcast %5 : vector<1x32xf32> to vector<16x32xf32>
    %27 = arith.addf %25, %26 : vector<16x32xf32>
    %c0_12 = arith.constant 0 : index
    %c0_13 = arith.constant 0 : index
    %28 = vector.load %arg2[%c0_12, %c0_13] : memref<16x32xf32, #tpu.memory_space<vmem>>, vector<16x32xf32>
    %29 = arith.addf %27, %28 : vector<16x32xf32>
    %30 = arith.addf %29, %3 : vector<16x32xf32>
    %cst_14 = arith.constant dense<0.000000e+00> : vector<16xf32>
    %31 = vector.multi_reduction <add>, %30, %cst_14 [1] : vector<16x32xf32> to vector<16xf32>
    %32 = vector.shape_cast %31 : vector<16xf32> to vector<16x1xf32>
    %cst_15 = arith.constant 3.200000e+01 : f32
    %33 = vector.broadcast %cst_15 : f32 to vector<16x1xf32>
    %34 = arith.divf %32, %33 : vector<16x1xf32>
    %35 = vector.broadcast %34 : vector<16x1xf32> to vector<16x32xf32>
    %36 = arith.subf %30, %35 : vector<16x32xf32>
    %37 = arith.mulf %36, %36 : vector<16x32xf32>
    %cst_16 = arith.constant dense<0.000000e+00> : vector<16xf32>
    %38 = vector.multi_reduction <add>, %37, %cst_16 [1] : vector<16x32xf32> to vector<16xf32>
    %39 = vector.shape_cast %38 : vector<16xf32> to vector<16x1xf32>
    %cst_17 = arith.constant 3.200000e+01 : f32
    %40 = vector.broadcast %cst_17 : f32 to vector<16x1xf32>
    %41 = arith.divf %39, %40 : vector<16x1xf32>
    %cst_18 = arith.constant 9.99999996E-13 : f32
    %42 = vector.broadcast %cst_18 : f32 to vector<16x1xf32>
    %43 = arith.addf %41, %42 : vector<16x1xf32>
    %44 = math.rsqrt %43 : vector<16x1xf32>
    %45 = vector.broadcast %44 : vector<16x1xf32> to vector<16x32xf32>
    %46 = arith.mulf %36, %45 : vector<16x32xf32>
    %47 = vector.broadcast %4 : vector<1x32xf32> to vector<16x32xf32>
    %48 = arith.mulf %46, %47 : vector<16x32xf32>
    %49 = vector.broadcast %5 : vector<1x32xf32> to vector<16x32xf32>
    %50 = arith.addf %48, %49 : vector<16x32xf32>
    %c0_19 = arith.constant 0 : index
    %c0_20 = arith.constant 0 : index
    %c0_21 = arith.constant 0 : index
    %51 = vector.load %arg6[%c0_19, %c0_20, %c0_21] : memref<3x32x96xf32, #tpu.memory_space<vmem>>, vector<1x32x96xf32>
    %52 = vector.shape_cast %51 : vector<1x32x96xf32> to vector<32x96xf32>
    %cst_22 = arith.constant dense<0.000000e+00> : vector<16x96xf32>
    %53 = tpu.matmul %50, %52, %cst_22 {dimension_numbers = #tpu.dot_dimension_numbers<[1], [0], [0], [1], [0, 0, 1, 1], [], []>} : vector<16x32xf32>, vector<32x96xf32>, vector<16x96xf32> -> vector<16x96xf32>
    %c0_23 = arith.constant 0 : index
    %c0_24 = arith.constant 0 : index
    %c0_25 = arith.constant 0 : index
    %54 = vector.load %arg7[%c0_23, %c0_24, %c0_25] : memref<3x1x96xf32, #tpu.memory_space<vmem>>, vector<1x1x96xf32>
    %55 = vector.shape_cast %54 : vector<1x1x96xf32> to vector<1x96xf32>
    %56 = vector.broadcast %55 : vector<1x96xf32> to vector<16x96xf32>
    %57 = arith.addf %53, %56 : vector<16x96xf32>
    %58 = vector.extract_strided_slice %57 {offsets = [0, 0], sizes = [8, 16], strides = [1, 1]} : vector<16x96xf32> to vector<8x16xf32>
    %59 = vector.extract_strided_slice %57 {offsets = [0, 32], sizes = [8, 16], strides = [1, 1]} : vector<16x96xf32> to vector<8x16xf32>
    %60 = vector.extract_strided_slice %57 {offsets = [0, 64], sizes = [8, 16], strides = [1, 1]} : vector<16x96xf32> to vector<8x16xf32>
    %cst_26 = arith.constant dense<0.000000e+00> : vector<8x8xf32>
    %61 = tpu.matmul %58, %59, %cst_26 {dimension_numbers = #tpu.dot_dimension_numbers<[1], [1], [0], [0], [0, 0, 1, 0], [], []>} : vector<8x16xf32>, vector<8x16xf32>, vector<8x8xf32> -> vector<8x8xf32>
    %cst_27 = arith.constant 2.500000e-01 : f32
    %62 = vector.broadcast %cst_27 : f32 to vector<8x8xf32>
    %63 = arith.mulf %61, %62 : vector<8x8xf32>
    %cst_28 = arith.constant dense<0xFF800000> : vector<8xf32>
    %64 = vector.multi_reduction <maximumf>, %63, %cst_28 [1] : vector<8x8xf32> to vector<8xf32>
    %65 = vector.shape_cast %64 : vector<8xf32> to vector<8x1xf32>
    %66 = vector.broadcast %65 : vector<8x1xf32> to vector<8x8xf32>
    %67 = arith.subf %63, %66 : vector<8x8xf32>
    %68 = math.exp %67 : vector<8x8xf32>
    %cst_29 = arith.constant dense<0.000000e+00> : vector<8xf32>
    %69 = vector.multi_reduction <add>, %68, %cst_29 [1] : vector<8x8xf32> to vector<8xf32>
    %70 = vector.shape_cast %69 : vector<8xf32> to vector<8x1xf32>
    %71 = vector.broadcast %70 : vector<8x1xf32> to vector<8x8xf32>
    %72 = arith.divf %68, %71 : vector<8x8xf32>
    %cst_30 = arith.constant dense<0.000000e+00> : vector<8x16xf32>
    %73 = tpu.matmul %72, %60, %cst_30 {dimension_numbers = #tpu.dot_dimension_numbers<[1], [0], [0], [1], [0, 0, 1, 1], [], []>} : vector<8x8xf32>, vector<8x16xf32>, vector<8x16xf32> -> vector<8x16xf32>
    %c0_31 = arith.constant 0 : index
    %c0_32 = arith.constant 0 : index
    %74 = vector.load %arg17[%c0_31, %c0_32] : memref<16x32xf32, #tpu.memory_space<vmem>>, vector<8x16xf32>
    tpu.vector_store %arg17[%c0_31, %c0_32], %73 {strides = array<i32>} : memref<16x32xf32, #tpu.memory_space<vmem>>, vector<8x16xf32>,
    %75 = vector.extract_strided_slice %57 {offsets = [0, 16], sizes = [8, 16], strides = [1, 1]} : vector<16x96xf32> to vector<8x16xf32>
    %76 = vector.extract_strided_slice %57 {offsets = [0, 48], sizes = [8, 16], strides = [1, 1]} : vector<16x96xf32> to vector<8x16xf32>
    %77 = vector.extract_strided_slice %57 {offsets = [0, 80], sizes = [8, 16], strides = [1, 1]} : vector<16x96xf32> to vector<8x16xf32>
    %cst_33 = arith.constant dense<0.000000e+00> : vector<8x8xf32>
    %78 = tpu.matmul %75, %76, %cst_33 {dimension_numbers = #tpu.dot_dimension_numbers<[1], [1], [0], [0], [0, 0, 1, 0], [], []>} : vector<8x16xf32>, vector<8x16xf32>, vector<8x8xf32> -> vector<8x8xf32>
    %cst_34 = arith.constant 2.500000e-01 : f32
    %79 = vector.broadcast %cst_34 : f32 to vector<8x8xf32>
    %80 = arith.mulf %78, %79 : vector<8x8xf32>
    %cst_35 = arith.constant dense<0xFF800000> : vector<8xf32>
    %81 = vector.multi_reduction <maximumf>, %80, %cst_35 [1] : vector<8x8xf32> to vector<8xf32>
    %82 = vector.shape_cast %81 : vector<8xf32> to vector<8x1xf32>
    %83 = vector.broadcast %82 : vector<8x1xf32> to vector<8x8xf32>
    %84 = arith.subf %80, %83 : vector<8x8xf32>
    %85 = math.exp %84 : vector<8x8xf32>
    %cst_36 = arith.constant dense<0.000000e+00> : vector<8xf32>
    %86 = vector.multi_reduction <add>, %85, %cst_36 [1] : vector<8x8xf32> to vector<8xf32>
    %87 = vector.shape_cast %86 : vector<8xf32> to vector<8x1xf32>
    %88 = vector.broadcast %87 : vector<8x1xf32> to vector<8x8xf32>
    %89 = arith.divf %85, %88 : vector<8x8xf32>
    %cst_37 = arith.constant dense<0.000000e+00> : vector<8x16xf32>
    %90 = tpu.matmul %89, %77, %cst_37 {dimension_numbers = #tpu.dot_dimension_numbers<[1], [0], [0], [1], [0, 0, 1, 1], [], []>} : vector<8x8xf32>, vector<8x16xf32>, vector<8x16xf32> -> vector<8x16xf32>
    %c0_38 = arith.constant 0 : index
    %c16 = arith.constant 16 : index
    %91 = vector.load %arg17[%c0_38, %c16] : memref<16x32xf32, #tpu.memory_space<vmem>>, vector<8x16xf32>
    tpu.vector_store %arg17[%c0_38, %c16], %90 {strides = array<i32>} : memref<16x32xf32, #tpu.memory_space<vmem>>, vector<8x16xf32>,
    %92 = vector.extract_strided_slice %57 {offsets = [8, 0], sizes = [8, 16], strides = [1, 1]} : vector<16x96xf32> to vector<8x16xf32>
    %93 = vector.extract_strided_slice %57 {offsets = [8, 32], sizes = [8, 16], strides = [1, 1]} : vector<16x96xf32> to vector<8x16xf32>
    %94 = vector.extract_strided_slice %57 {offsets = [8, 64], sizes = [8, 16], strides = [1, 1]} : vector<16x96xf32> to vector<8x16xf32>
    %cst_39 = arith.constant dense<0.000000e+00> : vector<8x8xf32>
    %95 = tpu.matmul %92, %93, %cst_39 {dimension_numbers = #tpu.dot_dimension_numbers<[1], [1], [0], [0], [0, 0, 1, 0], [], []>} : vector<8x16xf32>, vector<8x16xf32>, vector<8x8xf32> -> vector<8x8xf32>
    %cst_40 = arith.constant 2.500000e-01 : f32
    %96 = vector.broadcast %cst_40 : f32 to vector<8x8xf32>
    %97 = arith.mulf %95, %96 : vector<8x8xf32>
    %cst_41 = arith.constant dense<0xFF800000> : vector<8xf32>
    %98 = vector.multi_reduction <maximumf>, %97, %cst_41 [1] : vector<8x8xf32> to vector<8xf32>
    %99 = vector.shape_cast %98 : vector<8xf32> to vector<8x1xf32>
    %100 = vector.broadcast %99 : vector<8x1xf32> to vector<8x8xf32>
    %101 = arith.subf %97, %100 : vector<8x8xf32>
    %102 = math.exp %101 : vector<8x8xf32>
    %cst_42 = arith.constant dense<0.000000e+00> : vector<8xf32>
    %103 = vector.multi_reduction <add>, %102, %cst_42 [1] : vector<8x8xf32> to vector<8xf32>
    %104 = vector.shape_cast %103 : vector<8xf32> to vector<8x1xf32>
    %105 = vector.broadcast %104 : vector<8x1xf32> to vector<8x8xf32>
    %106 = arith.divf %102, %105 : vector<8x8xf32>
    %cst_43 = arith.constant dense<0.000000e+00> : vector<8x16xf32>
    %107 = tpu.matmul %106, %94, %cst_43 {dimension_numbers = #tpu.dot_dimension_numbers<[1], [0], [0], [1], [0, 0, 1, 1], [], []>} : vector<8x8xf32>, vector<8x16xf32>, vector<8x16xf32> -> vector<8x16xf32>
    %c8 = arith.constant 8 : index
    %c0_44 = arith.constant 0 : index
    %108 = vector.load %arg17[%c8, %c0_44] : memref<16x32xf32, #tpu.memory_space<vmem>>, vector<8x16xf32>
    tpu.vector_store %arg17[%c8, %c0_44], %107 {strides = array<i32>} : memref<16x32xf32, #tpu.memory_space<vmem>>, vector<8x16xf32>,
    %109 = vector.extract_strided_slice %57 {offsets = [8, 16], sizes = [8, 16], strides = [1, 1]} : vector<16x96xf32> to vector<8x16xf32>
    %110 = vector.extract_strided_slice %57 {offsets = [8, 48], sizes = [8, 16], strides = [1, 1]} : vector<16x96xf32> to vector<8x16xf32>
    %111 = vector.extract_strided_slice %57 {offsets = [8, 80], sizes = [8, 16], strides = [1, 1]} : vector<16x96xf32> to vector<8x16xf32>
    %cst_45 = arith.constant dense<0.000000e+00> : vector<8x8xf32>
    %112 = tpu.matmul %109, %110, %cst_45 {dimension_numbers = #tpu.dot_dimension_numbers<[1], [1], [0], [0], [0, 0, 1, 0], [], []>} : vector<8x16xf32>, vector<8x16xf32>, vector<8x8xf32> -> vector<8x8xf32>
    %cst_46 = arith.constant 2.500000e-01 : f32
    %113 = vector.broadcast %cst_46 : f32 to vector<8x8xf32>
    %114 = arith.mulf %112, %113 : vector<8x8xf32>
    %cst_47 = arith.constant dense<0xFF800000> : vector<8xf32>
    %115 = vector.multi_reduction <maximumf>, %114, %cst_47 [1] : vector<8x8xf32> to vector<8xf32>
    %116 = vector.shape_cast %115 : vector<8xf32> to vector<8x1xf32>
    %117 = vector.broadcast %116 : vector<8x1xf32> to vector<8x8xf32>
    %118 = arith.subf %114, %117 : vector<8x8xf32>
    %119 = math.exp %118 : vector<8x8xf32>
    %cst_48 = arith.constant dense<0.000000e+00> : vector<8xf32>
    %120 = vector.multi_reduction <add>, %119, %cst_48 [1] : vector<8x8xf32> to vector<8xf32>
    %121 = vector.shape_cast %120 : vector<8xf32> to vector<8x1xf32>
    %122 = vector.broadcast %121 : vector<8x1xf32> to vector<8x8xf32>
    %123 = arith.divf %119, %122 : vector<8x8xf32>
    %cst_49 = arith.constant dense<0.000000e+00> : vector<8x16xf32>
    %124 = tpu.matmul %123, %111, %cst_49 {dimension_numbers = #tpu.dot_dimension_numbers<[1], [0], [0], [1], [0, 0, 1, 1], [], []>} : vector<8x8xf32>, vector<8x16xf32>, vector<8x16xf32> -> vector<8x16xf32>
    %c8_50 = arith.constant 8 : index
    %c16_51 = arith.constant 16 : index
    %125 = vector.load %arg17[%c8_50, %c16_51] : memref<16x32xf32, #tpu.memory_space<vmem>>, vector<8x16xf32>
    tpu.vector_store %arg17[%c8_50, %c16_51], %124 {strides = array<i32>} : memref<16x32xf32, #tpu.memory_space<vmem>>, vector<8x16xf32>,
    %c0_52 = arith.constant 0 : index
    %c0_53 = arith.constant 0 : index
    %126 = vector.load %arg17[%c0_52, %c0_53] : memref<16x32xf32, #tpu.memory_space<vmem>>, vector<16x32xf32>
    %c0_54 = arith.constant 0 : index
    %c0_55 = arith.constant 0 : index
    %c0_56 = arith.constant 0 : index
    %127 = vector.load %arg8[%c0_54, %c0_55, %c0_56] : memref<3x32x32xf32, #tpu.memory_space<vmem>>, vector<1x32x32xf32>
    %128 = vector.shape_cast %127 : vector<1x32x32xf32> to vector<32x32xf32>
    %cst_57 = arith.constant dense<0.000000e+00> : vector<16x32xf32>
    %129 = tpu.matmul %126, %128, %cst_57 {dimension_numbers = #tpu.dot_dimension_numbers<[1], [0], [0], [1], [0, 0, 1, 1], [], []>} : vector<16x32xf32>, vector<32x32xf32>, vector<16x32xf32> -> vector<16x32xf32>
    %c0_58 = arith.constant 0 : index
    %c0_59 = arith.constant 0 : index
    %c0_60 = arith.constant 0 : index
    %130 = vector.load %arg9[%c0_58, %c0_59, %c0_60] : memref<3x1x32xf32, #tpu.memory_space<vmem>>, vector<1x1x32xf32>
    %131 = vector.shape_cast %130 : vector<1x1x32xf32> to vector<1x32xf32>
    %132 = vector.broadcast %131 : vector<1x32xf32> to vector<16x32xf32>
    %133 = arith.addf %129, %132 : vector<16x32xf32>
    %c0_61 = arith.constant 0 : index
    %c0_62 = arith.constant 0 : index
    %c0_63 = arith.constant 0 : index
    %134 = vector.load %arg10[%c0_61, %c0_62, %c0_63] : memref<3x2x32xf32, #tpu.memory_space<vmem>>, vector<1x2x32xf32>
    %135 = vector.shape_cast %134 : vector<1x2x32xf32> to vector<2x32xf32>
    %136 = arith.addf %50, %133 : vector<16x32xf32>
    %137 = vector.extract_strided_slice %135 {offsets = [0, 0], sizes = [1, 32], strides = [1, 1]} : vector<2x32xf32> to vector<1x32xf32>
    %138 = vector.extract_strided_slice %135 {offsets = [1, 0], sizes = [1, 32], strides = [1, 1]} : vector<2x32xf32> to vector<1x32xf32>
    %cst_64 = arith.constant dense<0.000000e+00> : vector<16xf32>
    %139 = vector.multi_reduction <add>, %136, %cst_64 [1] : vector<16x32xf32> to vector<16xf32>
    %140 = vector.shape_cast %139 : vector<16xf32> to vector<16x1xf32>
    %cst_65 = arith.constant 3.200000e+01 : f32
    %141 = vector.broadcast %cst_65 : f32 to vector<16x1xf32>
    %142 = arith.divf %140, %141 : vector<16x1xf32>
    %143 = vector.broadcast %142 : vector<16x1xf32> to vector<16x32xf32>
    %144 = arith.subf %136, %143 : vector<16x32xf32>
    %145 = arith.mulf %144, %144 : vector<16x32xf32>
    %cst_66 = arith.constant dense<0.000000e+00> : vector<16xf32>
    %146 = vector.multi_reduction <add>, %145, %cst_66 [1] : vector<16x32xf32> to vector<16xf32>
    %147 = vector.shape_cast %146 : vector<16xf32> to vector<16x1xf32>
    %cst_67 = arith.constant 3.200000e+01 : f32
    %148 = vector.broadcast %cst_67 : f32 to vector<16x1xf32>
    %149 = arith.divf %147, %148 : vector<16x1xf32>
    %cst_68 = arith.constant 9.99999996E-13 : f32
    %150 = vector.broadcast %cst_68 : f32 to vector<16x1xf32>
    %151 = arith.addf %149, %150 : vector<16x1xf32>
    %152 = math.rsqrt %151 : vector<16x1xf32>
    %153 = vector.broadcast %152 : vector<16x1xf32> to vector<16x32xf32>
    %154 = arith.mulf %144, %153 : vector<16x32xf32>
    %155 = vector.broadcast %137 : vector<1x32xf32> to vector<16x32xf32>
    %156 = arith.mulf %154, %155 : vector<16x32xf32>
    %157 = vector.broadcast %138 : vector<1x32xf32> to vector<16x32xf32>
    %158 = arith.addf %156, %157 : vector<16x32xf32>
    %c0_69 = arith.constant 0 : index
    %c0_70 = arith.constant 0 : index
    %c0_71 = arith.constant 0 : index
    %159 = vector.load %arg11[%c0_69, %c0_70, %c0_71] : memref<3x32x64xf32, #tpu.memory_space<vmem>>, vector<1x32x64xf32>
    %160 = vector.shape_cast %159 : vector<1x32x64xf32> to vector<32x64xf32>
    %cst_72 = arith.constant dense<0.000000e+00> : vector<16x64xf32>
    %161 = tpu.matmul %158, %160, %cst_72 {dimension_numbers = #tpu.dot_dimension_numbers<[1], [0], [0], [1], [0, 0, 1, 1], [], []>} : vector<16x32xf32>, vector<32x64xf32>, vector<16x64xf32> -> vector<16x64xf32>
    %c0_73 = arith.constant 0 : index
    %c0_74 = arith.constant 0 : index
    %c0_75 = arith.constant 0 : index
    %162 = vector.load %arg12[%c0_73, %c0_74, %c0_75] : memref<3x1x64xf32, #tpu.memory_space<vmem>>, vector<1x1x64xf32>
    %163 = vector.shape_cast %162 : vector<1x1x64xf32> to vector<1x64xf32>
    %164 = vector.broadcast %163 : vector<1x64xf32> to vector<16x64xf32>
    %165 = arith.addf %161, %164 : vector<16x64xf32>
    %cst_76 = arith.constant 5.000000e-01 : f32
    %166 = vector.broadcast %cst_76 : f32 to vector<16x64xf32>
    %167 = arith.mulf %166, %165 : vector<16x64xf32>
    %cst_77 = arith.constant 4.471500e-02 : f32
    %168 = vector.broadcast %cst_77 : f32 to vector<16x64xf32>
    %169 = arith.mulf %168, %165 : vector<16x64xf32>
    %170 = arith.mulf %169, %165 : vector<16x64xf32>
    %171 = arith.mulf %170, %165 : vector<16x64xf32>
    %172 = arith.addf %165, %171 : vector<16x64xf32>
    %cst_78 = arith.constant 0.797884583 : f32
    %173 = vector.broadcast %cst_78 : f32 to vector<16x64xf32>
    %174 = arith.mulf %173, %172 : vector<16x64xf32>
    %175 = math.tanh %174 : vector<16x64xf32>
    %cst_79 = arith.constant 1.000000e+00 : f32
    %176 = vector.broadcast %cst_79 : f32 to vector<16x64xf32>
    %177 = arith.addf %176, %175 : vector<16x64xf32>
    %178 = arith.mulf %167, %177 : vector<16x64xf32>
    %c0_80 = arith.constant 0 : index
    %c0_81 = arith.constant 0 : index
    %c0_82 = arith.constant 0 : index
    %179 = vector.load %arg13[%c0_80, %c0_81, %c0_82] : memref<3x64x32xf32, #tpu.memory_space<vmem>>, vector<1x64x32xf32>
    %180 = vector.shape_cast %179 : vector<1x64x32xf32> to vector<64x32xf32>
    %cst_83 = arith.constant dense<0.000000e+00> : vector<16x32xf32>
    %181 = tpu.matmul %178, %180, %cst_83 {dimension_numbers = #tpu.dot_dimension_numbers<[1], [0], [0], [1], [0, 0, 1, 1], [], []>} : vector<16x64xf32>, vector<64x32xf32>, vector<16x32xf32> -> vector<16x32xf32>
    %c0_84 = arith.constant 0 : index
    %c0_85 = arith.constant 0 : index
    %c0_86 = arith.constant 0 : index
    %182 = vector.load %arg14[%c0_84, %c0_85, %c0_86] : memref<3x1x32xf32, #tpu.memory_space<vmem>>, vector<1x1x32xf32>
    %183 = vector.shape_cast %182 : vector<1x1x32xf32> to vector<1x32xf32>
    %184 = vector.broadcast %183 : vector<1x32xf32> to vector<16x32xf32>
    %185 = arith.addf %181, %184 : vector<16x32xf32>
    %c0_87 = arith.constant 0 : index
    %c0_88 = arith.constant 0 : index
    %c0_89 = arith.constant 0 : index
    %186 = vector.load %arg15[%c0_87, %c0_88, %c0_89] : memref<3x2x32xf32, #tpu.memory_space<vmem>>, vector<1x2x32xf32>
    %187 = vector.shape_cast %186 : vector<1x2x32xf32> to vector<2x32xf32>
    %188 = arith.addf %158, %185 : vector<16x32xf32>
    %189 = vector.extract_strided_slice %187 {offsets = [0, 0], sizes = [1, 32], strides = [1, 1]} : vector<2x32xf32> to vector<1x32xf32>
    %190 = vector.extract_strided_slice %187 {offsets = [1, 0], sizes = [1, 32], strides = [1, 1]} : vector<2x32xf32> to vector<1x32xf32>
    %cst_90 = arith.constant dense<0.000000e+00> : vector<16xf32>
    %191 = vector.multi_reduction <add>, %188, %cst_90 [1] : vector<16x32xf32> to vector<16xf32>
    %192 = vector.shape_cast %191 : vector<16xf32> to vector<16x1xf32>
    %cst_91 = arith.constant 3.200000e+01 : f32
    %193 = vector.broadcast %cst_91 : f32 to vector<16x1xf32>
    %194 = arith.divf %192, %193 : vector<16x1xf32>
    %195 = vector.broadcast %194 : vector<16x1xf32> to vector<16x32xf32>
    %196 = arith.subf %188, %195 : vector<16x32xf32>
    %197 = arith.mulf %196, %196 : vector<16x32xf32>
    %cst_92 = arith.constant dense<0.000000e+00> : vector<16xf32>
    %198 = vector.multi_reduction <add>, %197, %cst_92 [1] : vector<16x32xf32> to vector<16xf32>
    %199 = vector.shape_cast %198 : vector<16xf32> to vector<16x1xf32>
    %cst_93 = arith.constant 3.200000e+01 : f32
    %200 = vector.broadcast %cst_93 : f32 to vector<16x1xf32>
    %201 = arith.divf %199, %200 : vector<16x1xf32>
    %cst_94 = arith.constant 9.99999996E-13 : f32
    %202 = vector.broadcast %cst_94 : f32 to vector<16x1xf32>
    %203 = arith.addf %201, %202 : vector<16x1xf32>
    %204 = math.rsqrt %203 : vector<16x1xf32>
    %205 = vector.broadcast %204 : vector<16x1xf32> to vector<16x32xf32>
    %206 = arith.mulf %196, %205 : vector<16x32xf32>
    %207 = vector.broadcast %189 : vector<1x32xf32> to vector<16x32xf32>
    %208 = arith.mulf %206, %207 : vector<16x32xf32>
    %209 = vector.broadcast %190 : vector<1x32xf32> to vector<16x32xf32>
    %210 = arith.addf %208, %209 : vector<16x32xf32>
    %c0_95 = arith.constant 0 : index
    %c0_96 = arith.constant 0 : index
    %c0_97 = arith.constant 0 : index
    %211 = vector.load %arg16[%c0_95, %c0_96, %c0_97] : memref<3x16x32xf32, #tpu.memory_space<vmem>>, vector<1x16x32xf32>
    %212 = vector.shape_cast %211 : vector<1x16x32xf32> to vector<16x32xf32>
    %213 = vector.shape_cast %210 : vector<16x32xf32> to vector<1x16x32xf32>
    tpu.vector_store %arg16[%c0_95, %c0_96, %c0_97], %213 {strides = array<i32>} : memref<3x16x32xf32, #tpu.memory_space<vmem>>, vector<1x16x32xf32>,
    %c1_98 = arith.constant 1 : index
    %c0_99 = arith.constant 0 : index
    %c0_100 = arith.constant 0 : index
    %214 = vector.load %arg6[%c1_98, %c0_99, %c0_100] : memref<3x32x96xf32, #tpu.memory_space<vmem>>, vector<1x32x96xf32>
    %215 = vector.shape_cast %214 : vector<1x32x96xf32> to vector<32x96xf32>
    %cst_101 = arith.constant dense<0.000000e+00> : vector<16x96xf32>
    %216 = tpu.matmul %210, %215, %cst_101 {dimension_numbers = #tpu.dot_dimension_numbers<[1], [0], [0], [1], [0, 0, 1, 1], [], []>} : vector<16x32xf32>, vector<32x96xf32>, vector<16x96xf32> -> vector<16x96xf32>
    %c1_102 = arith.constant 1 : index
    %c0_103 = arith.constant 0 : index
    %c0_104 = arith.constant 0 : index
    %217 = vector.load %arg7[%c1_102, %c0_103, %c0_104] : memref<3x1x96xf32, #tpu.memory_space<vmem>>, vector<1x1x96xf32>
    %218 = vector.shape_cast %217 : vector<1x1x96xf32> to vector<1x96xf32>
    %219 = vector.broadcast %218 : vector<1x96xf32> to vector<16x96xf32>
    %220 = arith.addf %216, %219 : vector<16x96xf32>
    %221 = vector.extract_strided_slice %220 {offsets = [0, 0], sizes = [8, 16], strides = [1, 1]} : vector<16x96xf32> to vector<8x16xf32>
    %222 = vector.extract_strided_slice %220 {offsets = [0, 32], sizes = [8, 16], strides = [1, 1]} : vector<16x96xf32> to vector<8x16xf32>
    %223 = vector.extract_strided_slice %220 {offsets = [0, 64], sizes = [8, 16], strides = [1, 1]} : vector<16x96xf32> to vector<8x16xf32>
    %cst_105 = arith.constant dense<0.000000e+00> : vector<8x8xf32>
    %224 = tpu.matmul %221, %222, %cst_105 {dimension_numbers = #tpu.dot_dimension_numbers<[1], [1], [0], [0], [0, 0, 1, 0], [], []>} : vector<8x16xf32>, vector<8x16xf32>, vector<8x8xf32> -> vector<8x8xf32>
    %cst_106 = arith.constant 2.500000e-01 : f32
    %225 = vector.broadcast %cst_106 : f32 to vector<8x8xf32>
    %226 = arith.mulf %224, %225 : vector<8x8xf32>
    %cst_107 = arith.constant dense<0xFF800000> : vector<8xf32>
    %227 = vector.multi_reduction <maximumf>, %226, %cst_107 [1] : vector<8x8xf32> to vector<8xf32>
    %228 = vector.shape_cast %227 : vector<8xf32> to vector<8x1xf32>
    %229 = vector.broadcast %228 : vector<8x1xf32> to vector<8x8xf32>
    %230 = arith.subf %226, %229 : vector<8x8xf32>
    %231 = math.exp %230 : vector<8x8xf32>
    %cst_108 = arith.constant dense<0.000000e+00> : vector<8xf32>
    %232 = vector.multi_reduction <add>, %231, %cst_108 [1] : vector<8x8xf32> to vector<8xf32>
    %233 = vector.shape_cast %232 : vector<8xf32> to vector<8x1xf32>
    %234 = vector.broadcast %233 : vector<8x1xf32> to vector<8x8xf32>
    %235 = arith.divf %231, %234 : vector<8x8xf32>
    %cst_109 = arith.constant dense<0.000000e+00> : vector<8x16xf32>
    %236 = tpu.matmul %235, %223, %cst_109 {dimension_numbers = #tpu.dot_dimension_numbers<[1], [0], [0], [1], [0, 0, 1, 1], [], []>} : vector<8x8xf32>, vector<8x16xf32>, vector<8x16xf32> -> vector<8x16xf32>
    %c0_110 = arith.constant 0 : index
    %c0_111 = arith.constant 0 : index
    %237 = vector.load %arg17[%c0_110, %c0_111] : memref<16x32xf32, #tpu.memory_space<vmem>>, vector<8x16xf32>
    tpu.vector_store %arg17[%c0_110, %c0_111], %236 {strides = array<i32>} : memref<16x32xf32, #tpu.memory_space<vmem>>, vector<8x16xf32>,
    %238 = vector.extract_strided_slice %220 {offsets = [0, 16], sizes = [8, 16], strides = [1, 1]} : vector<16x96xf32> to vector<8x16xf32>
    %239 = vector.extract_strided_slice %220 {offsets = [0, 48], sizes = [8, 16], strides = [1, 1]} : vector<16x96xf32> to vector<8x16xf32>
    %240 = vector.extract_strided_slice %220 {offsets = [0, 80], sizes = [8, 16], strides = [1, 1]} : vector<16x96xf32> to vector<8x16xf32>
    %cst_112 = arith.constant dense<0.000000e+00> : vector<8x8xf32>
    %241 = tpu.matmul %238, %239, %cst_112 {dimension_numbers = #tpu.dot_dimension_numbers<[1], [1], [0], [0], [0, 0, 1, 0], [], []>} : vector<8x16xf32>, vector<8x16xf32>, vector<8x8xf32> -> vector<8x8xf32>
    %cst_113 = arith.constant 2.500000e-01 : f32
    %242 = vector.broadcast %cst_113 : f32 to vector<8x8xf32>
    %243 = arith.mulf %241, %242 : vector<8x8xf32>
    %cst_114 = arith.constant dense<0xFF800000> : vector<8xf32>
    %244 = vector.multi_reduction <maximumf>, %243, %cst_114 [1] : vector<8x8xf32> to vector<8xf32>
    %245 = vector.shape_cast %244 : vector<8xf32> to vector<8x1xf32>
    %246 = vector.broadcast %245 : vector<8x1xf32> to vector<8x8xf32>
    %247 = arith.subf %243, %246 : vector<8x8xf32>
    %248 = math.exp %247 : vector<8x8xf32>
    %cst_115 = arith.constant dense<0.000000e+00> : vector<8xf32>
    %249 = vector.multi_reduction <add>, %248, %cst_115 [1] : vector<8x8xf32> to vector<8xf32>
    %250 = vector.shape_cast %249 : vector<8xf32> to vector<8x1xf32>
    %251 = vector.broadcast %250 : vector<8x1xf32> to vector<8x8xf32>
    %252 = arith.divf %248, %251 : vector<8x8xf32>
    %cst_116 = arith.constant dense<0.000000e+00> : vector<8x16xf32>
    %253 = tpu.matmul %252, %240, %cst_116 {dimension_numbers = #tpu.dot_dimension_numbers<[1], [0], [0], [1], [0, 0, 1, 1], [], []>} : vector<8x8xf32>, vector<8x16xf32>, vector<8x16xf32> -> vector<8x16xf32>
    %c0_117 = arith.constant 0 : index
    %c16_118 = arith.constant 16 : index
    %254 = vector.load %arg17[%c0_117, %c16_118] : memref<16x32xf32, #tpu.memory_space<vmem>>, vector<8x16xf32>
    tpu.vector_store %arg17[%c0_117, %c16_118], %253 {strides = array<i32>} : memref<16x32xf32, #tpu.memory_space<vmem>>, vector<8x16xf32>,
    %255 = vector.extract_strided_slice %220 {offsets = [8, 0], sizes = [8, 16], strides = [1, 1]} : vector<16x96xf32> to vector<8x16xf32>
    %256 = vector.extract_strided_slice %220 {offsets = [8, 32], sizes = [8, 16], strides = [1, 1]} : vector<16x96xf32> to vector<8x16xf32>
    %257 = vector.extract_strided_slice %220 {offsets = [8, 64], sizes = [8, 16], strides = [1, 1]} : vector<16x96xf32> to vector<8x16xf32>
    %cst_119 = arith.constant dense<0.000000e+00> : vector<8x8xf32>
    %258 = tpu.matmul %255, %256, %cst_119 {dimension_numbers = #tpu.dot_dimension_numbers<[1], [1], [0], [0], [0, 0, 1, 0], [], []>} : vector<8x16xf32>, vector<8x16xf32>, vector<8x8xf32> -> vector<8x8xf32>
    %cst_120 = arith.constant 2.500000e-01 : f32
    %259 = vector.broadcast %cst_120 : f32 to vector<8x8xf32>
    %260 = arith.mulf %258, %259 : vector<8x8xf32>
    %cst_121 = arith.constant dense<0xFF800000> : vector<8xf32>
    %261 = vector.multi_reduction <maximumf>, %260, %cst_121 [1] : vector<8x8xf32> to vector<8xf32>
    %262 = vector.shape_cast %261 : vector<8xf32> to vector<8x1xf32>
    %263 = vector.broadcast %262 : vector<8x1xf32> to vector<8x8xf32>
    %264 = arith.subf %260, %263 : vector<8x8xf32>
    %265 = math.exp %264 : vector<8x8xf32>
    %cst_122 = arith.constant dense<0.000000e+00> : vector<8xf32>
    %266 = vector.multi_reduction <add>, %265, %cst_122 [1] : vector<8x8xf32> to vector<8xf32>
    %267 = vector.shape_cast %266 : vector<8xf32> to vector<8x1xf32>
    %268 = vector.broadcast %267 : vector<8x1xf32> to vector<8x8xf32>
    %269 = arith.divf %265, %268 : vector<8x8xf32>
    %cst_123 = arith.constant dense<0.000000e+00> : vector<8x16xf32>
    %270 = tpu.matmul %269, %257, %cst_123 {dimension_numbers = #tpu.dot_dimension_numbers<[1], [0], [0], [1], [0, 0, 1, 1], [], []>} : vector<8x8xf32>, vector<8x16xf32>, vector<8x16xf32> -> vector<8x16xf32>
    %c8_124 = arith.constant 8 : index
    %c0_125 = arith.constant 0 : index
    %271 = vector.load %arg17[%c8_124, %c0_125] : memref<16x32xf32, #tpu.memory_space<vmem>>, vector<8x16xf32>
    tpu.vector_store %arg17[%c8_124, %c0_125], %270 {strides = array<i32>} : memref<16x32xf32, #tpu.memory_space<vmem>>, vector<8x16xf32>,
    %272 = vector.extract_strided_slice %220 {offsets = [8, 16], sizes = [8, 16], strides = [1, 1]} : vector<16x96xf32> to vector<8x16xf32>
    %273 = vector.extract_strided_slice %220 {offsets = [8, 48], sizes = [8, 16], strides = [1, 1]} : vector<16x96xf32> to vector<8x16xf32>
    %274 = vector.extract_strided_slice %220 {offsets = [8, 80], sizes = [8, 16], strides = [1, 1]} : vector<16x96xf32> to vector<8x16xf32>
    %cst_126 = arith.constant dense<0.000000e+00> : vector<8x8xf32>
    %275 = tpu.matmul %272, %273, %cst_126 {dimension_numbers = #tpu.dot_dimension_numbers<[1], [1], [0], [0], [0, 0, 1, 0], [], []>} : vector<8x16xf32>, vector<8x16xf32>, vector<8x8xf32> -> vector<8x8xf32>
    %cst_127 = arith.constant 2.500000e-01 : f32
    %276 = vector.broadcast %cst_127 : f32 to vector<8x8xf32>
    %277 = arith.mulf %275, %276 : vector<8x8xf32>
    %cst_128 = arith.constant dense<0xFF800000> : vector<8xf32>
    %278 = vector.multi_reduction <maximumf>, %277, %cst_128 [1] : vector<8x8xf32> to vector<8xf32>
    %279 = vector.shape_cast %278 : vector<8xf32> to vector<8x1xf32>
    %280 = vector.broadcast %279 : vector<8x1xf32> to vector<8x8xf32>
    %281 = arith.subf %277, %280 : vector<8x8xf32>
    %282 = math.exp %281 : vector<8x8xf32>
    %cst_129 = arith.constant dense<0.000000e+00> : vector<8xf32>
    %283 = vector.multi_reduction <add>, %282, %cst_129 [1] : vector<8x8xf32> to vector<8xf32>
    %284 = vector.shape_cast %283 : vector<8xf32> to vector<8x1xf32>
    %285 = vector.broadcast %284 : vector<8x1xf32> to vector<8x8xf32>
    %286 = arith.divf %282, %285 : vector<8x8xf32>
    %cst_130 = arith.constant dense<0.000000e+00> : vector<8x16xf32>
    %287 = tpu.matmul %286, %274, %cst_130 {dimension_numbers = #tpu.dot_dimension_numbers<[1], [0], [0], [1], [0, 0, 1, 1], [], []>} : vector<8x8xf32>, vector<8x16xf32>, vector<8x16xf32> -> vector<8x16xf32>
    %c8_131 = arith.constant 8 : index
    %c16_132 = arith.constant 16 : index
    %288 = vector.load %arg17[%c8_131, %c16_132] : memref<16x32xf32, #tpu.memory_space<vmem>>, vector<8x16xf32>
    tpu.vector_store %arg17[%c8_131, %c16_132], %287 {strides = array<i32>} : memref<16x32xf32, #tpu.memory_space<vmem>>, vector<8x16xf32>,
    %c0_133 = arith.constant 0 : index
    %c0_134 = arith.constant 0 : index
    %289 = vector.load %arg17[%c0_133, %c0_134] : memref<16x32xf32, #tpu.memory_space<vmem>>, vector<16x32xf32>
    %c1_135 = arith.constant 1 : index
    %c0_136 = arith.constant 0 : index
    %c0_137 = arith.constant 0 : index
    %290 = vector.load %arg8[%c1_135, %c0_136, %c0_137] : memref<3x32x32xf32, #tpu.memory_space<vmem>>, vector<1x32x32xf32>
    %291 = vector.shape_cast %290 : vector<1x32x32xf32> to vector<32x32xf32>
    %cst_138 = arith.constant dense<0.000000e+00> : vector<16x32xf32>
    %292 = tpu.matmul %289, %291, %cst_138 {dimension_numbers = #tpu.dot_dimension_numbers<[1], [0], [0], [1], [0, 0, 1, 1], [], []>} : vector<16x32xf32>, vector<32x32xf32>, vector<16x32xf32> -> vector<16x32xf32>
    %c1_139 = arith.constant 1 : index
    %c0_140 = arith.constant 0 : index
    %c0_141 = arith.constant 0 : index
    %293 = vector.load %arg9[%c1_139, %c0_140, %c0_141] : memref<3x1x32xf32, #tpu.memory_space<vmem>>, vector<1x1x32xf32>
    %294 = vector.shape_cast %293 : vector<1x1x32xf32> to vector<1x32xf32>
    %295 = vector.broadcast %294 : vector<1x32xf32> to vector<16x32xf32>
    %296 = arith.addf %292, %295 : vector<16x32xf32>
    %c1_142 = arith.constant 1 : index
    %c0_143 = arith.constant 0 : index
    %c0_144 = arith.constant 0 : index
    %297 = vector.load %arg10[%c1_142, %c0_143, %c0_144] : memref<3x2x32xf32, #tpu.memory_space<vmem>>, vector<1x2x32xf32>
    %298 = vector.shape_cast %297 : vector<1x2x32xf32> to vector<2x32xf32>
    %299 = arith.addf %210, %296 : vector<16x32xf32>
    %300 = vector.extract_strided_slice %298 {offsets = [0, 0], sizes = [1, 32], strides = [1, 1]} : vector<2x32xf32> to vector<1x32xf32>
    %301 = vector.extract_strided_slice %298 {offsets = [1, 0], sizes = [1, 32], strides = [1, 1]} : vector<2x32xf32> to vector<1x32xf32>
    %cst_145 = arith.constant dense<0.000000e+00> : vector<16xf32>
    %302 = vector.multi_reduction <add>, %299, %cst_145 [1] : vector<16x32xf32> to vector<16xf32>
    %303 = vector.shape_cast %302 : vector<16xf32> to vector<16x1xf32>
    %cst_146 = arith.constant 3.200000e+01 : f32
    %304 = vector.broadcast %cst_146 : f32 to vector<16x1xf32>
    %305 = arith.divf %303, %304 : vector<16x1xf32>
    %306 = vector.broadcast %305 : vector<16x1xf32> to vector<16x32xf32>
    %307 = arith.subf %299, %306 : vector<16x32xf32>
    %308 = arith.mulf %307, %307 : vector<16x32xf32>
    %cst_147 = arith.constant dense<0.000000e+00> : vector<16xf32>
    %309 = vector.multi_reduction <add>, %308, %cst_147 [1] : vector<16x32xf32> to vector<16xf32>
    %310 = vector.shape_cast %309 : vector<16xf32> to vector<16x1xf32>
    %cst_148 = arith.constant 3.200000e+01 : f32
    %311 = vector.broadcast %cst_148 : f32 to vector<16x1xf32>
    %312 = arith.divf %310, %311 : vector<16x1xf32>
    %cst_149 = arith.constant 9.99999996E-13 : f32
    %313 = vector.broadcast %cst_149 : f32 to vector<16x1xf32>
    %314 = arith.addf %312, %313 : vector<16x1xf32>
    %315 = math.rsqrt %314 : vector<16x1xf32>
    %316 = vector.broadcast %315 : vector<16x1xf32> to vector<16x32xf32>
    %317 = arith.mulf %307, %316 : vector<16x32xf32>
    %318 = vector.broadcast %300 : vector<1x32xf32> to vector<16x32xf32>
    %319 = arith.mulf %317, %318 : vector<16x32xf32>
    %320 = vector.broadcast %301 : vector<1x32xf32> to vector<16x32xf32>
    %321 = arith.addf %319, %320 : vector<16x32xf32>
    %c1_150 = arith.constant 1 : index
    %c0_151 = arith.constant 0 : index
    %c0_152 = arith.constant 0 : index
    %322 = vector.load %arg11[%c1_150, %c0_151, %c0_152] : memref<3x32x64xf32, #tpu.memory_space<vmem>>, vector<1x32x64xf32>
    %323 = vector.shape_cast %322 : vector<1x32x64xf32> to vector<32x64xf32>
    %cst_153 = arith.constant dense<0.000000e+00> : vector<16x64xf32>
    %324 = tpu.matmul %321, %323, %cst_153 {dimension_numbers = #tpu.dot_dimension_numbers<[1], [0], [0], [1], [0, 0, 1, 1], [], []>} : vector<16x32xf32>, vector<32x64xf32>, vector<16x64xf32> -> vector<16x64xf32>
    %c1_154 = arith.constant 1 : index
    %c0_155 = arith.constant 0 : index
    %c0_156 = arith.constant 0 : index
    %325 = vector.load %arg12[%c1_154, %c0_155, %c0_156] : memref<3x1x64xf32, #tpu.memory_space<vmem>>, vector<1x1x64xf32>
    %326 = vector.shape_cast %325 : vector<1x1x64xf32> to vector<1x64xf32>
    %327 = vector.broadcast %326 : vector<1x64xf32> to vector<16x64xf32>
    %328 = arith.addf %324, %327 : vector<16x64xf32>
    %cst_157 = arith.constant 5.000000e-01 : f32
    %329 = vector.broadcast %cst_157 : f32 to vector<16x64xf32>
    %330 = arith.mulf %329, %328 : vector<16x64xf32>
    %cst_158 = arith.constant 4.471500e-02 : f32
    %331 = vector.broadcast %cst_158 : f32 to vector<16x64xf32>
    %332 = arith.mulf %331, %328 : vector<16x64xf32>
    %333 = arith.mulf %332, %328 : vector<16x64xf32>
    %334 = arith.mulf %333, %328 : vector<16x64xf32>
    %335 = arith.addf %328, %334 : vector<16x64xf32>
    %cst_159 = arith.constant 0.797884583 : f32
    %336 = vector.broadcast %cst_159 : f32 to vector<16x64xf32>
    %337 = arith.mulf %336, %335 : vector<16x64xf32>
    %338 = math.tanh %337 : vector<16x64xf32>
    %cst_160 = arith.constant 1.000000e+00 : f32
    %339 = vector.broadcast %cst_160 : f32 to vector<16x64xf32>
    %340 = arith.addf %339, %338 : vector<16x64xf32>
    %341 = arith.mulf %330, %340 : vector<16x64xf32>
    %c1_161 = arith.constant 1 : index
    %c0_162 = arith.constant 0 : index
    %c0_163 = arith.constant 0 : index
    %342 = vector.load %arg13[%c1_161, %c0_162, %c0_163] : memref<3x64x32xf32, #tpu.memory_space<vmem>>, vector<1x64x32xf32>
    %343 = vector.shape_cast %342 : vector<1x64x32xf32> to vector<64x32xf32>
    %cst_164 = arith.constant dense<0.000000e+00> : vector<16x32xf32>
    %344 = tpu.matmul %341, %343, %cst_164 {dimension_numbers = #tpu.dot_dimension_numbers<[1], [0], [0], [1], [0, 0, 1, 1], [], []>} : vector<16x64xf32>, vector<64x32xf32>, vector<16x32xf32> -> vector<16x32xf32>
    %c1_165 = arith.constant 1 : index
    %c0_166 = arith.constant 0 : index
    %c0_167 = arith.constant 0 : index
    %345 = vector.load %arg14[%c1_165, %c0_166, %c0_167] : memref<3x1x32xf32, #tpu.memory_space<vmem>>, vector<1x1x32xf32>
    %346 = vector.shape_cast %345 : vector<1x1x32xf32> to vector<1x32xf32>
    %347 = vector.broadcast %346 : vector<1x32xf32> to vector<16x32xf32>
    %348 = arith.addf %344, %347 : vector<16x32xf32>
    %c1_168 = arith.constant 1 : index
    %c0_169 = arith.constant 0 : index
    %c0_170 = arith.constant 0 : index
    %349 = vector.load %arg15[%c1_168, %c0_169, %c0_170] : memref<3x2x32xf32, #tpu.memory_space<vmem>>, vector<1x2x32xf32>
    %350 = vector.shape_cast %349 : vector<1x2x32xf32> to vector<2x32xf32>
    %351 = arith.addf %321, %348 : vector<16x32xf32>
    %352 = vector.extract_strided_slice %350 {offsets = [0, 0], sizes = [1, 32], strides = [1, 1]} : vector<2x32xf32> to vector<1x32xf32>
    %353 = vector.extract_strided_slice %350 {offsets = [1, 0], sizes = [1, 32], strides = [1, 1]} : vector<2x32xf32> to vector<1x32xf32>
    %cst_171 = arith.constant dense<0.000000e+00> : vector<16xf32>
    %354 = vector.multi_reduction <add>, %351, %cst_171 [1] : vector<16x32xf32> to vector<16xf32>
    %355 = vector.shape_cast %354 : vector<16xf32> to vector<16x1xf32>
    %cst_172 = arith.constant 3.200000e+01 : f32
    %356 = vector.broadcast %cst_172 : f32 to vector<16x1xf32>
    %357 = arith.divf %355, %356 : vector<16x1xf32>
    %358 = vector.broadcast %357 : vector<16x1xf32> to vector<16x32xf32>
    %359 = arith.subf %351, %358 : vector<16x32xf32>
    %360 = arith.mulf %359, %359 : vector<16x32xf32>
    %cst_173 = arith.constant dense<0.000000e+00> : vector<16xf32>
    %361 = vector.multi_reduction <add>, %360, %cst_173 [1] : vector<16x32xf32> to vector<16xf32>
    %362 = vector.shape_cast %361 : vector<16xf32> to vector<16x1xf32>
    %cst_174 = arith.constant 3.200000e+01 : f32
    %363 = vector.broadcast %cst_174 : f32 to vector<16x1xf32>
    %364 = arith.divf %362, %363 : vector<16x1xf32>
    %cst_175 = arith.constant 9.99999996E-13 : f32
    %365 = vector.broadcast %cst_175 : f32 to vector<16x1xf32>
    %366 = arith.addf %364, %365 : vector<16x1xf32>
    %367 = math.rsqrt %366 : vector<16x1xf32>
    %368 = vector.broadcast %367 : vector<16x1xf32> to vector<16x32xf32>
    %369 = arith.mulf %359, %368 : vector<16x32xf32>
    %370 = vector.broadcast %352 : vector<1x32xf32> to vector<16x32xf32>
    %371 = arith.mulf %369, %370 : vector<16x32xf32>
    %372 = vector.broadcast %353 : vector<1x32xf32> to vector<16x32xf32>
    %373 = arith.addf %371, %372 : vector<16x32xf32>
    %c1_176 = arith.constant 1 : index
    %c0_177 = arith.constant 0 : index
    %c0_178 = arith.constant 0 : index
    %374 = vector.load %arg16[%c1_176, %c0_177, %c0_178] : memref<3x16x32xf32, #tpu.memory_space<vmem>>, vector<1x16x32xf32>
    %375 = vector.shape_cast %374 : vector<1x16x32xf32> to vector<16x32xf32>
    %376 = vector.shape_cast %373 : vector<16x32xf32> to vector<1x16x32xf32>
    tpu.vector_store %arg16[%c1_176, %c0_177, %c0_178], %376 {strides = array<i32>} : memref<3x16x32xf32, #tpu.memory_space<vmem>>, vector<1x16x32xf32>,
    %c2 = arith.constant 2 : index
    %c0_179 = arith.constant 0 : index
    %c0_180 = arith.constant 0 : index
    %377 = vector.load %arg6[%c2, %c0_179, %c0_180] : memref<3x32x96xf32, #tpu.memory_space<vmem>>, vector<1x32x96xf32>
    %378 = vector.shape_cast %377 : vector<1x32x96xf32> to vector<32x96xf32>
    %cst_181 = arith.constant dense<0.000000e+00> : vector<16x96xf32>
    %379 = tpu.matmul %373, %378, %cst_181 {dimension_numbers = #tpu.dot_dimension_numbers<[1], [0], [0], [1], [0, 0, 1, 1], [], []>} : vector<16x32xf32>, vector<32x96xf32>, vector<16x96xf32> -> vector<16x96xf32>
    %c2_182 = arith.constant 2 : index
    %c0_183 = arith.constant 0 : index
    %c0_184 = arith.constant 0 : index
    %380 = vector.load %arg7[%c2_182, %c0_183, %c0_184] : memref<3x1x96xf32, #tpu.memory_space<vmem>>, vector<1x1x96xf32>
    %381 = vector.shape_cast %380 : vector<1x1x96xf32> to vector<1x96xf32>
    %382 = vector.broadcast %381 : vector<1x96xf32> to vector<16x96xf32>
    %383 = arith.addf %379, %382 : vector<16x96xf32>
    %384 = vector.extract_strided_slice %383 {offsets = [0, 0], sizes = [8, 16], strides = [1, 1]} : vector<16x96xf32> to vector<8x16xf32>
    %385 = vector.extract_strided_slice %383 {offsets = [0, 32], sizes = [8, 16], strides = [1, 1]} : vector<16x96xf32> to vector<8x16xf32>
    %386 = vector.extract_strided_slice %383 {offsets = [0, 64], sizes = [8, 16], strides = [1, 1]} : vector<16x96xf32> to vector<8x16xf32>
    %cst_185 = arith.constant dense<0.000000e+00> : vector<8x8xf32>
    %387 = tpu.matmul %384, %385, %cst_185 {dimension_numbers = #tpu.dot_dimension_numbers<[1], [1], [0], [0], [0, 0, 1, 0], [], []>} : vector<8x16xf32>, vector<8x16xf32>, vector<8x8xf32> -> vector<8x8xf32>
    %cst_186 = arith.constant 2.500000e-01 : f32
    %388 = vector.broadcast %cst_186 : f32 to vector<8x8xf32>
    %389 = arith.mulf %387, %388 : vector<8x8xf32>
    %cst_187 = arith.constant dense<0xFF800000> : vector<8xf32>
    %390 = vector.multi_reduction <maximumf>, %389, %cst_187 [1] : vector<8x8xf32> to vector<8xf32>
    %391 = vector.shape_cast %390 : vector<8xf32> to vector<8x1xf32>
    %392 = vector.broadcast %391 : vector<8x1xf32> to vector<8x8xf32>
    %393 = arith.subf %389, %392 : vector<8x8xf32>
    %394 = math.exp %393 : vector<8x8xf32>
    %cst_188 = arith.constant dense<0.000000e+00> : vector<8xf32>
    %395 = vector.multi_reduction <add>, %394, %cst_188 [1] : vector<8x8xf32> to vector<8xf32>
    %396 = vector.shape_cast %395 : vector<8xf32> to vector<8x1xf32>
    %397 = vector.broadcast %396 : vector<8x1xf32> to vector<8x8xf32>
    %398 = arith.divf %394, %397 : vector<8x8xf32>
    %cst_189 = arith.constant dense<0.000000e+00> : vector<8x16xf32>
    %399 = tpu.matmul %398, %386, %cst_189 {dimension_numbers = #tpu.dot_dimension_numbers<[1], [0], [0], [1], [0, 0, 1, 1], [], []>} : vector<8x8xf32>, vector<8x16xf32>, vector<8x16xf32> -> vector<8x16xf32>
    %c0_190 = arith.constant 0 : index
    %c0_191 = arith.constant 0 : index
    %400 = vector.load %arg17[%c0_190, %c0_191] : memref<16x32xf32, #tpu.memory_space<vmem>>, vector<8x16xf32>
    tpu.vector_store %arg17[%c0_190, %c0_191], %399 {strides = array<i32>} : memref<16x32xf32, #tpu.memory_space<vmem>>, vector<8x16xf32>,
    %401 = vector.extract_strided_slice %383 {offsets = [0, 16], sizes = [8, 16], strides = [1, 1]} : vector<16x96xf32> to vector<8x16xf32>
    %402 = vector.extract_strided_slice %383 {offsets = [0, 48], sizes = [8, 16], strides = [1, 1]} : vector<16x96xf32> to vector<8x16xf32>
    %403 = vector.extract_strided_slice %383 {offsets = [0, 80], sizes = [8, 16], strides = [1, 1]} : vector<16x96xf32> to vector<8x16xf32>
    %cst_192 = arith.constant dense<0.000000e+00> : vector<8x8xf32>
    %404 = tpu.matmul %401, %402, %cst_192 {dimension_numbers = #tpu.dot_dimension_numbers<[1], [1], [0], [0], [0, 0, 1, 0], [], []>} : vector<8x16xf32>, vector<8x16xf32>, vector<8x8xf32> -> vector<8x8xf32>
    %cst_193 = arith.constant 2.500000e-01 : f32
    %405 = vector.broadcast %cst_193 : f32 to vector<8x8xf32>
    %406 = arith.mulf %404, %405 : vector<8x8xf32>
    %cst_194 = arith.constant dense<0xFF800000> : vector<8xf32>
    %407 = vector.multi_reduction <maximumf>, %406, %cst_194 [1] : vector<8x8xf32> to vector<8xf32>
    %408 = vector.shape_cast %407 : vector<8xf32> to vector<8x1xf32>
    %409 = vector.broadcast %408 : vector<8x1xf32> to vector<8x8xf32>
    %410 = arith.subf %406, %409 : vector<8x8xf32>
    %411 = math.exp %410 : vector<8x8xf32>
    %cst_195 = arith.constant dense<0.000000e+00> : vector<8xf32>
    %412 = vector.multi_reduction <add>, %411, %cst_195 [1] : vector<8x8xf32> to vector<8xf32>
    %413 = vector.shape_cast %412 : vector<8xf32> to vector<8x1xf32>
    %414 = vector.broadcast %413 : vector<8x1xf32> to vector<8x8xf32>
    %415 = arith.divf %411, %414 : vector<8x8xf32>
    %cst_196 = arith.constant dense<0.000000e+00> : vector<8x16xf32>
    %416 = tpu.matmul %415, %403, %cst_196 {dimension_numbers = #tpu.dot_dimension_numbers<[1], [0], [0], [1], [0, 0, 1, 1], [], []>} : vector<8x8xf32>, vector<8x16xf32>, vector<8x16xf32> -> vector<8x16xf32>
    %c0_197 = arith.constant 0 : index
    %c16_198 = arith.constant 16 : index
    %417 = vector.load %arg17[%c0_197, %c16_198] : memref<16x32xf32, #tpu.memory_space<vmem>>, vector<8x16xf32>
    tpu.vector_store %arg17[%c0_197, %c16_198], %416 {strides = array<i32>} : memref<16x32xf32, #tpu.memory_space<vmem>>, vector<8x16xf32>,
    %418 = vector.extract_strided_slice %383 {offsets = [8, 0], sizes = [8, 16], strides = [1, 1]} : vector<16x96xf32> to vector<8x16xf32>
    %419 = vector.extract_strided_slice %383 {offsets = [8, 32], sizes = [8, 16], strides = [1, 1]} : vector<16x96xf32> to vector<8x16xf32>
    %420 = vector.extract_strided_slice %383 {offsets = [8, 64], sizes = [8, 16], strides = [1, 1]} : vector<16x96xf32> to vector<8x16xf32>
    %cst_199 = arith.constant dense<0.000000e+00> : vector<8x8xf32>
    %421 = tpu.matmul %418, %419, %cst_199 {dimension_numbers = #tpu.dot_dimension_numbers<[1], [1], [0], [0], [0, 0, 1, 0], [], []>} : vector<8x16xf32>, vector<8x16xf32>, vector<8x8xf32> -> vector<8x8xf32>
    %cst_200 = arith.constant 2.500000e-01 : f32
    %422 = vector.broadcast %cst_200 : f32 to vector<8x8xf32>
    %423 = arith.mulf %421, %422 : vector<8x8xf32>
    %cst_201 = arith.constant dense<0xFF800000> : vector<8xf32>
    %424 = vector.multi_reduction <maximumf>, %423, %cst_201 [1] : vector<8x8xf32> to vector<8xf32>
    %425 = vector.shape_cast %424 : vector<8xf32> to vector<8x1xf32>
    %426 = vector.broadcast %425 : vector<8x1xf32> to vector<8x8xf32>
    %427 = arith.subf %423, %426 : vector<8x8xf32>
    %428 = math.exp %427 : vector<8x8xf32>
    %cst_202 = arith.constant dense<0.000000e+00> : vector<8xf32>
    %429 = vector.multi_reduction <add>, %428, %cst_202 [1] : vector<8x8xf32> to vector<8xf32>
    %430 = vector.shape_cast %429 : vector<8xf32> to vector<8x1xf32>
    %431 = vector.broadcast %430 : vector<8x1xf32> to vector<8x8xf32>
    %432 = arith.divf %428, %431 : vector<8x8xf32>
    %cst_203 = arith.constant dense<0.000000e+00> : vector<8x16xf32>
    %433 = tpu.matmul %432, %420, %cst_203 {dimension_numbers = #tpu.dot_dimension_numbers<[1], [0], [0], [1], [0, 0, 1, 1], [], []>} : vector<8x8xf32>, vector<8x16xf32>, vector<8x16xf32> -> vector<8x16xf32>
    %c8_204 = arith.constant 8 : index
    %c0_205 = arith.constant 0 : index
    %434 = vector.load %arg17[%c8_204, %c0_205] : memref<16x32xf32, #tpu.memory_space<vmem>>, vector<8x16xf32>
    tpu.vector_store %arg17[%c8_204, %c0_205], %433 {strides = array<i32>} : memref<16x32xf32, #tpu.memory_space<vmem>>, vector<8x16xf32>,
    %435 = vector.extract_strided_slice %383 {offsets = [8, 16], sizes = [8, 16], strides = [1, 1]} : vector<16x96xf32> to vector<8x16xf32>
    %436 = vector.extract_strided_slice %383 {offsets = [8, 48], sizes = [8, 16], strides = [1, 1]} : vector<16x96xf32> to vector<8x16xf32>
    %437 = vector.extract_strided_slice %383 {offsets = [8, 80], sizes = [8, 16], strides = [1, 1]} : vector<16x96xf32> to vector<8x16xf32>
    %cst_206 = arith.constant dense<0.000000e+00> : vector<8x8xf32>
    %438 = tpu.matmul %435, %436, %cst_206 {dimension_numbers = #tpu.dot_dimension_numbers<[1], [1], [0], [0], [0, 0, 1, 0], [], []>} : vector<8x16xf32>, vector<8x16xf32>, vector<8x8xf32> -> vector<8x8xf32>
    %cst_207 = arith.constant 2.500000e-01 : f32
    %439 = vector.broadcast %cst_207 : f32 to vector<8x8xf32>
    %440 = arith.mulf %438, %439 : vector<8x8xf32>
    %cst_208 = arith.constant dense<0xFF800000> : vector<8xf32>
    %441 = vector.multi_reduction <maximumf>, %440, %cst_208 [1] : vector<8x8xf32> to vector<8xf32>
    %442 = vector.shape_cast %441 : vector<8xf32> to vector<8x1xf32>
    %443 = vector.broadcast %442 : vector<8x1xf32> to vector<8x8xf32>
    %444 = arith.subf %440, %443 : vector<8x8xf32>
    %445 = math.exp %444 : vector<8x8xf32>
    %cst_209 = arith.constant dense<0.000000e+00> : vector<8xf32>
    %446 = vector.multi_reduction <add>, %445, %cst_209 [1] : vector<8x8xf32> to vector<8xf32>
    %447 = vector.shape_cast %446 : vector<8xf32> to vector<8x1xf32>
    %448 = vector.broadcast %447 : vector<8x1xf32> to vector<8x8xf32>
    %449 = arith.divf %445, %448 : vector<8x8xf32>
    %cst_210 = arith.constant dense<0.000000e+00> : vector<8x16xf32>
    %450 = tpu.matmul %449, %437, %cst_210 {dimension_numbers = #tpu.dot_dimension_numbers<[1], [0], [0], [1], [0, 0, 1, 1], [], []>} : vector<8x8xf32>, vector<8x16xf32>, vector<8x16xf32> -> vector<8x16xf32>
    %c8_211 = arith.constant 8 : index
    %c16_212 = arith.constant 16 : index
    %451 = vector.load %arg17[%c8_211, %c16_212] : memref<16x32xf32, #tpu.memory_space<vmem>>, vector<8x16xf32>
    tpu.vector_store %arg17[%c8_211, %c16_212], %450 {strides = array<i32>} : memref<16x32xf32, #tpu.memory_space<vmem>>, vector<8x16xf32>,
    %c0_213 = arith.constant 0 : index
    %c0_214 = arith.constant 0 : index
    %452 = vector.load %arg17[%c0_213, %c0_214] : memref<16x32xf32, #tpu.memory_space<vmem>>, vector<16x32xf32>
    %c2_215 = arith.constant 2 : index
    %c0_216 = arith.constant 0 : index
    %c0_217 = arith.constant 0 : index
    %453 = vector.load %arg8[%c2_215, %c0_216, %c0_217] : memref<3x32x32xf32, #tpu.memory_space<vmem>>, vector<1x32x32xf32>
    %454 = vector.shape_cast %453 : vector<1x32x32xf32> to vector<32x32xf32>
    %cst_218 = arith.constant dense<0.000000e+00> : vector<16x32xf32>
    %455 = tpu.matmul %452, %454, %cst_218 {dimension_numbers = #tpu.dot_dimension_numbers<[1], [0], [0], [1], [0, 0, 1, 1], [], []>} : vector<16x32xf32>, vector<32x32xf32>, vector<16x32xf32> -> vector<16x32xf32>
    %c2_219 = arith.constant 2 : index
    %c0_220 = arith.constant 0 : index
    %c0_221 = arith.constant 0 : index
    %456 = vector.load %arg9[%c2_219, %c0_220, %c0_221] : memref<3x1x32xf32, #tpu.memory_space<vmem>>, vector<1x1x32xf32>
    %457 = vector.shape_cast %456 : vector<1x1x32xf32> to vector<1x32xf32>
    %458 = vector.broadcast %457 : vector<1x32xf32> to vector<16x32xf32>
    %459 = arith.addf %455, %458 : vector<16x32xf32>
    %c2_222 = arith.constant 2 : index
    %c0_223 = arith.constant 0 : index
    %c0_224 = arith.constant 0 : index
    %460 = vector.load %arg10[%c2_222, %c0_223, %c0_224] : memref<3x2x32xf32, #tpu.memory_space<vmem>>, vector<1x2x32xf32>
    %461 = vector.shape_cast %460 : vector<1x2x32xf32> to vector<2x32xf32>
    %462 = arith.addf %373, %459 : vector<16x32xf32>
    %463 = vector.extract_strided_slice %461 {offsets = [0, 0], sizes = [1, 32], strides = [1, 1]} : vector<2x32xf32> to vector<1x32xf32>
    %464 = vector.extract_strided_slice %461 {offsets = [1, 0], sizes = [1, 32], strides = [1, 1]} : vector<2x32xf32> to vector<1x32xf32>
    %cst_225 = arith.constant dense<0.000000e+00> : vector<16xf32>
    %465 = vector.multi_reduction <add>, %462, %cst_225 [1] : vector<16x32xf32> to vector<16xf32>
    %466 = vector.shape_cast %465 : vector<16xf32> to vector<16x1xf32>
    %cst_226 = arith.constant 3.200000e+01 : f32
    %467 = vector.broadcast %cst_226 : f32 to vector<16x1xf32>
    %468 = arith.divf %466, %467 : vector<16x1xf32>
    %469 = vector.broadcast %468 : vector<16x1xf32> to vector<16x32xf32>
    %470 = arith.subf %462, %469 : vector<16x32xf32>
    %471 = arith.mulf %470, %470 : vector<16x32xf32>
    %cst_227 = arith.constant dense<0.000000e+00> : vector<16xf32>
    %472 = vector.multi_reduction <add>, %471, %cst_227 [1] : vector<16x32xf32> to vector<16xf32>
    %473 = vector.shape_cast %472 : vector<16xf32> to vector<16x1xf32>
    %cst_228 = arith.constant 3.200000e+01 : f32
    %474 = vector.broadcast %cst_228 : f32 to vector<16x1xf32>
    %475 = arith.divf %473, %474 : vector<16x1xf32>
    %cst_229 = arith.constant 9.99999996E-13 : f32
    %476 = vector.broadcast %cst_229 : f32 to vector<16x1xf32>
    %477 = arith.addf %475, %476 : vector<16x1xf32>
    %478 = math.rsqrt %477 : vector<16x1xf32>
    %479 = vector.broadcast %478 : vector<16x1xf32> to vector<16x32xf32>
    %480 = arith.mulf %470, %479 : vector<16x32xf32>
    %481 = vector.broadcast %463 : vector<1x32xf32> to vector<16x32xf32>
    %482 = arith.mulf %480, %481 : vector<16x32xf32>
    %483 = vector.broadcast %464 : vector<1x32xf32> to vector<16x32xf32>
    %484 = arith.addf %482, %483 : vector<16x32xf32>
    %c2_230 = arith.constant 2 : index
    %c0_231 = arith.constant 0 : index
    %c0_232 = arith.constant 0 : index
    %485 = vector.load %arg11[%c2_230, %c0_231, %c0_232] : memref<3x32x64xf32, #tpu.memory_space<vmem>>, vector<1x32x64xf32>
    %486 = vector.shape_cast %485 : vector<1x32x64xf32> to vector<32x64xf32>
    %cst_233 = arith.constant dense<0.000000e+00> : vector<16x64xf32>
    %487 = tpu.matmul %484, %486, %cst_233 {dimension_numbers = #tpu.dot_dimension_numbers<[1], [0], [0], [1], [0, 0, 1, 1], [], []>} : vector<16x32xf32>, vector<32x64xf32>, vector<16x64xf32> -> vector<16x64xf32>
    %c2_234 = arith.constant 2 : index
    %c0_235 = arith.constant 0 : index
    %c0_236 = arith.constant 0 : index
    %488 = vector.load %arg12[%c2_234, %c0_235, %c0_236] : memref<3x1x64xf32, #tpu.memory_space<vmem>>, vector<1x1x64xf32>
    %489 = vector.shape_cast %488 : vector<1x1x64xf32> to vector<1x64xf32>
    %490 = vector.broadcast %489 : vector<1x64xf32> to vector<16x64xf32>
    %491 = arith.addf %487, %490 : vector<16x64xf32>
    %cst_237 = arith.constant 5.000000e-01 : f32
    %492 = vector.broadcast %cst_237 : f32 to vector<16x64xf32>
    %493 = arith.mulf %492, %491 : vector<16x64xf32>
    %cst_238 = arith.constant 4.471500e-02 : f32
    %494 = vector.broadcast %cst_238 : f32 to vector<16x64xf32>
    %495 = arith.mulf %494, %491 : vector<16x64xf32>
    %496 = arith.mulf %495, %491 : vector<16x64xf32>
    %497 = arith.mulf %496, %491 : vector<16x64xf32>
    %498 = arith.addf %491, %497 : vector<16x64xf32>
    %cst_239 = arith.constant 0.797884583 : f32
    %499 = vector.broadcast %cst_239 : f32 to vector<16x64xf32>
    %500 = arith.mulf %499, %498 : vector<16x64xf32>
    %501 = math.tanh %500 : vector<16x64xf32>
    %cst_240 = arith.constant 1.000000e+00 : f32
    %502 = vector.broadcast %cst_240 : f32 to vector<16x64xf32>
    %503 = arith.addf %502, %501 : vector<16x64xf32>
    %504 = arith.mulf %493, %503 : vector<16x64xf32>
    %c2_241 = arith.constant 2 : index
    %c0_242 = arith.constant 0 : index
    %c0_243 = arith.constant 0 : index
    %505 = vector.load %arg13[%c2_241, %c0_242, %c0_243] : memref<3x64x32xf32, #tpu.memory_space<vmem>>, vector<1x64x32xf32>
    %506 = vector.shape_cast %505 : vector<1x64x32xf32> to vector<64x32xf32>
    %cst_244 = arith.constant dense<0.000000e+00> : vector<16x32xf32>
    %507 = tpu.matmul %504, %506, %cst_244 {dimension_numbers = #tpu.dot_dimension_numbers<[1], [0], [0], [1], [0, 0, 1, 1], [], []>} : vector<16x64xf32>, vector<64x32xf32>, vector<16x32xf32> -> vector<16x32xf32>
    %c2_245 = arith.constant 2 : index
    %c0_246 = arith.constant 0 : index
    %c0_247 = arith.constant 0 : index
    %508 = vector.load %arg14[%c2_245, %c0_246, %c0_247] : memref<3x1x32xf32, #tpu.memory_space<vmem>>, vector<1x1x32xf32>
    %509 = vector.shape_cast %508 : vector<1x1x32xf32> to vector<1x32xf32>
    %510 = vector.broadcast %509 : vector<1x32xf32> to vector<16x32xf32>
    %511 = arith.addf %507, %510 : vector<16x32xf32>
    %c2_248 = arith.constant 2 : index
    %c0_249 = arith.constant 0 : index
    %c0_250 = arith.constant 0 : index
    %512 = vector.load %arg15[%c2_248, %c0_249, %c0_250] : memref<3x2x32xf32, #tpu.memory_space<vmem>>, vector<1x2x32xf32>
    %513 = vector.shape_cast %512 : vector<1x2x32xf32> to vector<2x32xf32>
    %514 = arith.addf %484, %511 : vector<16x32xf32>
    %515 = vector.extract_strided_slice %513 {offsets = [0, 0], sizes = [1, 32], strides = [1, 1]} : vector<2x32xf32> to vector<1x32xf32>
    %516 = vector.extract_strided_slice %513 {offsets = [1, 0], sizes = [1, 32], strides = [1, 1]} : vector<2x32xf32> to vector<1x32xf32>
    %cst_251 = arith.constant dense<0.000000e+00> : vector<16xf32>
    %517 = vector.multi_reduction <add>, %514, %cst_251 [1] : vector<16x32xf32> to vector<16xf32>
    %518 = vector.shape_cast %517 : vector<16xf32> to vector<16x1xf32>
    %cst_252 = arith.constant 3.200000e+01 : f32
    %519 = vector.broadcast %cst_252 : f32 to vector<16x1xf32>
    %520 = arith.divf %518, %519 : vector<16x1xf32>
    %521 = vector.broadcast %520 : vector<16x1xf32> to vector<16x32xf32>
    %522 = arith.subf %514, %521 : vector<16x32xf32>
    %523 = arith.mulf %522, %522 : vector<16x32xf32>
    %cst_253 = arith.constant dense<0.000000e+00> : vector<16xf32>
    %524 = vector.multi_reduction <add>, %523, %cst_253 [1] : vector<16x32xf32> to vector<16xf32>
    %525 = vector.shape_cast %524 : vector<16xf32> to vector<16x1xf32>
    %cst_254 = arith.constant 3.200000e+01 : f32
    %526 = vector.broadcast %cst_254 : f32 to vector<16x1xf32>
    %527 = arith.divf %525, %526 : vector<16x1xf32>
    %cst_255 = arith.constant 9.99999996E-13 : f32
    %528 = vector.broadcast %cst_255 : f32 to vector<16x1xf32>
    %529 = arith.addf %527, %528 : vector<16x1xf32>
    %530 = math.rsqrt %529 : vector<16x1xf32>
    %531 = vector.broadcast %530 : vector<16x1xf32> to vector<16x32xf32>
    %532 = arith.mulf %522, %531 : vector<16x32xf32>
    %533 = vector.broadcast %515 : vector<1x32xf32> to vector<16x32xf32>
    %534 = arith.mulf %532, %533 : vector<16x32xf32>
    %535 = vector.broadcast %516 : vector<1x32xf32> to vector<16x32xf32>
    %536 = arith.addf %534, %535 : vector<16x32xf32>
    %c2_256 = arith.constant 2 : index
    %c0_257 = arith.constant 0 : index
    %c0_258 = arith.constant 0 : index
    %537 = vector.load %arg16[%c2_256, %c0_257, %c0_258] : memref<3x16x32xf32, #tpu.memory_space<vmem>>, vector<1x16x32xf32>
    %538 = vector.shape_cast %537 : vector<1x16x32xf32> to vector<16x32xf32>
    %539 = vector.shape_cast %536 : vector<16x32xf32> to vector<1x16x32xf32>
    tpu.vector_store %arg16[%c2_256, %c0_257, %c0_258], %539 {strides = array<i32>} : memref<3x16x32xf32, #tpu.memory_space<vmem>>, vector<1x16x32xf32>,
    return
  }
  func.func @transform_0(%arg0: i32) -> (i32, i32) {
    %c0_i32 = arith.constant 0 : i32
    %c0_i32_0 = arith.constant 0 : i32
    %c0_i32_1 = arith.constant 0 : i32
    return %c0_i32, %c0_i32_0 : i32, i32
  }
  func.func @transform_1(%arg0: i32) -> (i32, i32) {
    %c0_i32 = arith.constant 0 : i32
    %c0_i32_0 = arith.constant 0 : i32
    %c0_i32_1 = arith.constant 0 : i32
    return %c0_i32, %c0_i32_0 : i32, i32
  }
  func.func @transform_2(%arg0: i32) -> (i32, i32) {
    %c0_i32 = arith.constant 0 : i32
    %c0_i32_0 = arith.constant 0 : i32
    %c0_i32_1 = arith.constant 0 : i32
    return %c0_i32, %c0_i32_0 : i32, i32
  }
  func.func @transform_3(%arg0: i32) -> (i32, i32) {
    %c0_i32 = arith.constant 0 : i32
    %c0_i32_0 = arith.constant 0 : i32
    %c0_i32_1 = arith.constant 0 : i32
    return %c0_i32, %c0_i32_0 : i32, i32
  }
  func.func @transform_4(%arg0: i32) -> (i32, i32) {
    %c0_i32 = arith.constant 0 : i32
    %c0_i32_0 = arith.constant 0 : i32
    %c0_i32_1 = arith.constant 0 : i32
    return %c0_i32, %c0_i32_0 : i32, i32
  }
  func.func @transform_5(%arg0: i32) -> (i32, i32, i32) {
    %c0_i32 = arith.constant 0 : i32
    %c0_i32_0 = arith.constant 0 : i32
    %c0_i32_1 = arith.constant 0 : i32
    %c0_i32_2 = arith.constant 0 : i32
    return %c0_i32, %c0_i32_0, %c0_i32_1 : i32, i32, i32
  }
  func.func @transform_6(%arg0: i32) -> (i32, i32, i32) {
    %c0_i32 = arith.constant 0 : i32
    %c0_i32_0 = arith.constant 0 : i32
    %c0_i32_1 = arith.constant 0 : i32
    %c0_i32_2 = arith.constant 0 : i32
    return %c0_i32, %c0_i32_0, %c0_i32_1 : i32, i32, i32
  }
  func.func @transform_7(%arg0: i32) -> (i32, i32, i32) {
    %c0_i32 = arith.constant 0 : i32
    %c0_i32_0 = arith.constant 0 : i32
    %c0_i32_1 = arith.constant 0 : i32
    %c0_i32_2 = arith.constant 0 : i32
    return %c0_i32, %c0_i32_0, %c0_i32_1 : i32, i32, i32
  }
  func.func @transform_8(%arg0: i32) -> (i32, i32, i32) {
    %c0_i32 = arith.constant 0 : i32
    %c0_i32_0 = arith.constant 0 : i32
    %c0_i32_1 = arith.constant 0 : i32
    %c0_i32_2 = arith.constant 0 : i32
    return %c0_i32, %c0_i32_0, %c0_i32_1 : i32, i32, i32
  }
  func.func @transform_9(%arg0: i32) -> (i32, i32, i32) {
    %c0_i32 = arith.constant 0 : i32
    %c0_i32_0 = arith.constant 0 : i32
    %c0_i32_1 = arith.constant 0 : i32
    %c0_i32_2 = arith.constant 0 : i32
    return %c0_i32, %c0_i32_0, %c0_i32_1 : i32, i32, i32
  }
  func.func @transform_10(%arg0: i32) -> (i32, i32, i32) {
    %c0_i32 = arith.constant 0 : i32
    %c0_i32_0 = arith.constant 0 : i32
    %c0_i32_1 = arith.constant 0 : i32
    %c0_i32_2 = arith.constant 0 : i32
    return %c0_i32, %c0_i32_0, %c0_i32_1 : i32, i32, i32
  }
  func.func @transform_11(%arg0: i32) -> (i32, i32, i32) {
    %c0_i32 = arith.constant 0 : i32
    %c0_i32_0 = arith.constant 0 : i32
    %c0_i32_1 = arith.constant 0 : i32
    %c0_i32_2 = arith.constant 0 : i32
    return %c0_i32, %c0_i32_0, %c0_i32_1 : i32, i32, i32
  }
  func.func @transform_12(%arg0: i32) -> (i32, i32, i32) {
    %c0_i32 = arith.constant 0 : i32
    %c0_i32_0 = arith.constant 0 : i32
    %c0_i32_1 = arith.constant 0 : i32
    %c0_i32_2 = arith.constant 0 : i32
    return %c0_i32, %c0_i32_0, %c0_i32_1 : i32, i32, i32
  }
  func.func @transform_13(%arg0: i32) -> (i32, i32, i32) {
    %c0_i32 = arith.constant 0 : i32
    %c0_i32_0 = arith.constant 0 : i32
    %c0_i32_1 = arith.constant 0 : i32
    %c0_i32_2 = arith.constant 0 : i32
    return %c0_i32, %c0_i32_0, %c0_i32_1 : i32, i32, i32
  }
  func.func @transform_14(%arg0: i32) -> (i32, i32, i32) {
    %c0_i32 = arith.constant 0 : i32
    %c0_i32_0 = arith.constant 0 : i32
    %c0_i32_1 = arith.constant 0 : i32
    %c0_i32_2 = arith.constant 0 : i32
    return %c0_i32, %c0_i32_0, %c0_i32_1 : i32, i32, i32
  }
  func.func @transform_15(%arg0: i32) -> (i32, i32, i32) {
    %c0_i32 = arith.constant 0 : i32
    %c0_i32_0 = arith.constant 0 : i32
    %c0_i32_1 = arith.constant 0 : i32
    %c0_i32_2 = arith.constant 0 : i32
    return %c0_i32, %c0_i32_0, %c0_i32_1 : i32, i32, i32
  }
}

module attributes {stable_mosaic.version = 11 : i64} {
  func.func @kernel(%arg0: i32, %arg1: memref<3xf32, #tpu.memory_space<smem>>, %arg2: memref<3x16x32xf32, #tpu.memory_space<vmem>>, %arg3: memref<32x128xf32, #tpu.memory_space<vmem>>, %arg4: memref<1x128xf32, #tpu.memory_space<vmem>>, %arg5: memref<64x16xf32, #tpu.memory_space<vmem>>, %arg6: memref<16x64xf32, #tpu.memory_space<vmem>>, %arg7: memref<32x128xf32, #tpu.memory_space<vmem>>, %arg8: memref<1x128xf32, #tpu.memory_space<vmem>>, %arg9: memref<16x64xf32, #tpu.memory_space<vmem>>, %arg10: memref<16x64xf32, #tpu.memory_space<vmem>>, %arg11: memref<32x1xf32, #tpu.memory_space<vmem>>, %arg12: memref<1x1xf32, #tpu.memory_space<vmem>>, %arg13: memref<16x128xf32, #tpu.memory_space<vmem>>, %arg14: memref<16x1xf32, #tpu.memory_space<vmem>>, %arg15: memref<64x32xf32, #tpu.memory_space<vmem>>) attributes {dimension_semantics = [#tpu.dimension_semantics<arbitrary>], iteration_bounds = array<i64: 1>, scalar_prefetch = 0 : i64, scratch_operands = 1 : i64, tpu.core_type = #tpu.core_type<tc>, window_params = [{transform_indices = @transform_0, window_bounds = array<i64: 3>}, {pipeline_mode = #tpu.pipeline_mode<synchronous>, transform_indices = @transform_1, window_bounds = array<i64: 3, 16, 32>}, {pipeline_mode = #tpu.pipeline_mode<synchronous>, transform_indices = @transform_2, window_bounds = array<i64: 32, 128>}, {pipeline_mode = #tpu.pipeline_mode<synchronous>, transform_indices = @transform_3, window_bounds = array<i64: 1, 128>}, {pipeline_mode = #tpu.pipeline_mode<synchronous>, transform_indices = @transform_4, window_bounds = array<i64: 64, 16>}, {pipeline_mode = #tpu.pipeline_mode<synchronous>, transform_indices = @transform_5, window_bounds = array<i64: 16, 64>}, {pipeline_mode = #tpu.pipeline_mode<synchronous>, transform_indices = @transform_6, window_bounds = array<i64: 32, 128>}, {pipeline_mode = #tpu.pipeline_mode<synchronous>, transform_indices = @transform_7, window_bounds = array<i64: 1, 128>}, {pipeline_mode = #tpu.pipeline_mode<synchronous>, transform_indices = @transform_8, window_bounds = array<i64: 16, 64>}, {pipeline_mode = #tpu.pipeline_mode<synchronous>, transform_indices = @transform_9, window_bounds = array<i64: 16, 64>}, {pipeline_mode = #tpu.pipeline_mode<synchronous>, transform_indices = @transform_10, window_bounds = array<i64: 32, 1>}, {pipeline_mode = #tpu.pipeline_mode<synchronous>, transform_indices = @transform_11, window_bounds = array<i64: 1, 1>}, {pipeline_mode = #tpu.pipeline_mode<synchronous>, transform_indices = @transform_12, window_bounds = array<i64: 16, 128>}, {pipeline_mode = #tpu.pipeline_mode<synchronous>, transform_indices = @transform_13, window_bounds = array<i64: 16, 1>}]} {
    %c0 = arith.constant 0 : index
    %0 = memref.load %arg1[%c0] : memref<3xf32, #tpu.memory_space<smem>>
    %c0_0 = arith.constant 0 : index
    %c0_1 = arith.constant 0 : index
    %c0_2 = arith.constant 0 : index
    %1 = vector.load %arg2[%c0_0, %c0_1, %c0_2] : memref<3x16x32xf32, #tpu.memory_space<vmem>>, vector<1x16x32xf32>
    %2 = vector.shape_cast %1 : vector<1x16x32xf32> to vector<16x32xf32>
    %3 = vector.broadcast %0 : f32 to vector<16x32xf32>
    %4 = arith.mulf %3, %2 : vector<16x32xf32>
    %c1 = arith.constant 1 : index
    %5 = memref.load %arg1[%c1] : memref<3xf32, #tpu.memory_space<smem>>
    %c1_3 = arith.constant 1 : index
    %c0_4 = arith.constant 0 : index
    %c0_5 = arith.constant 0 : index
    %6 = vector.load %arg2[%c1_3, %c0_4, %c0_5] : memref<3x16x32xf32, #tpu.memory_space<vmem>>, vector<1x16x32xf32>
    %7 = vector.shape_cast %6 : vector<1x16x32xf32> to vector<16x32xf32>
    %8 = vector.broadcast %5 : f32 to vector<16x32xf32>
    %9 = arith.mulf %8, %7 : vector<16x32xf32>
    %10 = arith.addf %4, %9 : vector<16x32xf32>
    %c2 = arith.constant 2 : index
    %11 = memref.load %arg1[%c2] : memref<3xf32, #tpu.memory_space<smem>>
    %c2_6 = arith.constant 2 : index
    %c0_7 = arith.constant 0 : index
    %c0_8 = arith.constant 0 : index
    %12 = vector.load %arg2[%c2_6, %c0_7, %c0_8] : memref<3x16x32xf32, #tpu.memory_space<vmem>>, vector<1x16x32xf32>
    %13 = vector.shape_cast %12 : vector<1x16x32xf32> to vector<16x32xf32>
    %14 = vector.broadcast %11 : f32 to vector<16x32xf32>
    %15 = arith.mulf %14, %13 : vector<16x32xf32>
    %16 = arith.addf %10, %15 : vector<16x32xf32>
    %c0_9 = arith.constant 0 : index
    %c0_10 = arith.constant 0 : index
    %17 = vector.load %arg3[%c0_9, %c0_10] : memref<32x128xf32, #tpu.memory_space<vmem>>, vector<32x128xf32>
    %cst = arith.constant dense<0.000000e+00> : vector<16x128xf32>
    %18 = tpu.matmul %16, %17, %cst {dimension_numbers = #tpu.dot_dimension_numbers<[1], [0], [0], [1], [0, 0, 1, 1], [], []>} : vector<16x32xf32>, vector<32x128xf32>, vector<16x128xf32> -> vector<16x128xf32>
    %c0_11 = arith.constant 0 : index
    %c0_12 = arith.constant 0 : index
    %19 = vector.load %arg4[%c0_11, %c0_12] : memref<1x128xf32, #tpu.memory_space<vmem>>, vector<1x128xf32>
    %20 = vector.broadcast %19 : vector<1x128xf32> to vector<16x128xf32>
    %21 = arith.addf %18, %20 : vector<16x128xf32>
    %c0_13 = arith.constant 0 : index
    %c0_14 = arith.constant 0 : index
    %22 = vector.load %arg13[%c0_13, %c0_14] : memref<16x128xf32, #tpu.memory_space<vmem>>, vector<16x128xf32>
    tpu.vector_store %arg13[%c0_13, %c0_14], %21 {strides = array<i32>} : memref<16x128xf32, #tpu.memory_space<vmem>>, vector<16x128xf32>,
    %c0_15 = arith.constant 0 : index
    %c0_16 = arith.constant 0 : index
    %23 = vector.load %arg5[%c0_15, %c0_16] : memref<64x16xf32, #tpu.memory_space<vmem>>, vector<64x16xf32>
    %cst_17 = arith.constant dense<0.000000e+00> : vector<64x32xf32>
    %24 = tpu.matmul %23, %16, %cst_17 {dimension_numbers = #tpu.dot_dimension_numbers<[1], [0], [0], [1], [0, 0, 1, 1], [], []>} : vector<64x16xf32>, vector<16x32xf32>, vector<64x32xf32> -> vector<64x32xf32>
    %c0_18 = arith.constant 0 : index
    %c0_19 = arith.constant 0 : index
    %25 = vector.load %arg7[%c0_18, %c0_19] : memref<32x128xf32, #tpu.memory_space<vmem>>, vector<32x128xf32>
    %cst_20 = arith.constant dense<0.000000e+00> : vector<64x128xf32>
    %26 = tpu.matmul %24, %25, %cst_20 {dimension_numbers = #tpu.dot_dimension_numbers<[1], [0], [0], [1], [0, 0, 1, 1], [], []>} : vector<64x32xf32>, vector<32x128xf32>, vector<64x128xf32> -> vector<64x128xf32>
    %c0_21 = arith.constant 0 : index
    %c0_22 = arith.constant 0 : index
    %27 = vector.load %arg8[%c0_21, %c0_22] : memref<1x128xf32, #tpu.memory_space<vmem>>, vector<1x128xf32>
    %28 = vector.broadcast %27 : vector<1x128xf32> to vector<64x128xf32>
    %29 = arith.addf %26, %28 : vector<64x128xf32>
    %c0_23 = arith.constant 0 : index
    %c0_24 = arith.constant 0 : index
    %30 = vector.load %arg9[%c0_23, %c0_24] : memref<16x64xf32, #tpu.memory_space<vmem>>, vector<16x64xf32>
    %c0_25 = arith.constant 0 : index
    %c0_26 = arith.constant 0 : index
    %31 = vector.load %arg10[%c0_25, %c0_26] : memref<16x64xf32, #tpu.memory_space<vmem>>, vector<16x64xf32>
    %cst_27 = arith.constant 0.000000e+00 : f32
    %32 = vector.broadcast %cst_27 : f32 to vector<8x16xf32>
    %cst_28 = arith.constant 0.000000e+00 : f32
    %33 = vector.broadcast %cst_28 : f32 to vector<8x16xf32>
    %cst_29 = arith.constant 0.000000e+00 : f32
    %34 = vector.broadcast %cst_29 : f32 to vector<8x16xf32>
    %cst_30 = arith.constant 0.000000e+00 : f32
    %35 = vector.broadcast %cst_30 : f32 to vector<8x16xf32>
    %36 = vector.extract_strided_slice %29 {offsets = [0, 0], sizes = [8, 64], strides = [1, 1]} : vector<64x128xf32> to vector<8x64xf32>
    %cst_31 = arith.constant dense<0.000000e+00> : vector<8x64xf32>
    %37 = tpu.matmul %32, %30, %cst_31 {dimension_numbers = #tpu.dot_dimension_numbers<[1], [0], [0], [1], [0, 0, 1, 1], [], []>} : vector<8x16xf32>, vector<16x64xf32>, vector<8x64xf32> -> vector<8x64xf32>
    %38 = arith.addf %36, %37 : vector<8x64xf32>
    %39 = vector.extract_strided_slice %29 {offsets = [56, 64], sizes = [8, 64], strides = [1, 1]} : vector<64x128xf32> to vector<8x64xf32>
    %cst_32 = arith.constant dense<0.000000e+00> : vector<8x64xf32>
    %40 = tpu.matmul %34, %31, %cst_32 {dimension_numbers = #tpu.dot_dimension_numbers<[1], [0], [0], [1], [0, 0, 1, 1], [], []>} : vector<8x16xf32>, vector<16x64xf32>, vector<8x64xf32> -> vector<8x64xf32>
    %41 = arith.addf %39, %40 : vector<8x64xf32>
    %42 = vector.extract_strided_slice %38 {offsets = [0, 0], sizes = [8, 16], strides = [1, 1]} : vector<8x64xf32> to vector<8x16xf32>
    %43 = arith.negf %42 : vector<8x16xf32>
    %44 = math.exp %43 : vector<8x16xf32>
    %cst_33 = arith.constant 1.000000e+00 : f32
    %45 = vector.broadcast %cst_33 : f32 to vector<8x16xf32>
    %46 = arith.addf %45, %44 : vector<8x16xf32>
    %47 = arith.divf %45, %46 : vector<8x16xf32>
    %48 = vector.extract_strided_slice %38 {offsets = [0, 16], sizes = [8, 16], strides = [1, 1]} : vector<8x64xf32> to vector<8x16xf32>
    %49 = arith.negf %48 : vector<8x16xf32>
    %50 = math.exp %49 : vector<8x16xf32>
    %cst_34 = arith.constant 1.000000e+00 : f32
    %51 = vector.broadcast %cst_34 : f32 to vector<8x16xf32>
    %52 = arith.addf %51, %50 : vector<8x16xf32>
    %53 = arith.divf %51, %52 : vector<8x16xf32>
    %54 = vector.extract_strided_slice %38 {offsets = [0, 32], sizes = [8, 16], strides = [1, 1]} : vector<8x64xf32> to vector<8x16xf32>
    %55 = math.tanh %54 : vector<8x16xf32>
    %56 = vector.extract_strided_slice %38 {offsets = [0, 48], sizes = [8, 16], strides = [1, 1]} : vector<8x64xf32> to vector<8x16xf32>
    %57 = arith.negf %56 : vector<8x16xf32>
    %58 = math.exp %57 : vector<8x16xf32>
    %cst_35 = arith.constant 1.000000e+00 : f32
    %59 = vector.broadcast %cst_35 : f32 to vector<8x16xf32>
    %60 = arith.addf %59, %58 : vector<8x16xf32>
    %61 = arith.divf %59, %60 : vector<8x16xf32>
    %62 = arith.mulf %53, %33 : vector<8x16xf32>
    %63 = arith.mulf %47, %55 : vector<8x16xf32>
    %64 = arith.addf %62, %63 : vector<8x16xf32>
    %65 = math.tanh %64 : vector<8x16xf32>
    %66 = arith.mulf %61, %65 : vector<8x16xf32>
    %67 = vector.extract_strided_slice %41 {offsets = [0, 0], sizes = [8, 16], strides = [1, 1]} : vector<8x64xf32> to vector<8x16xf32>
    %68 = arith.negf %67 : vector<8x16xf32>
    %69 = math.exp %68 : vector<8x16xf32>
    %cst_36 = arith.constant 1.000000e+00 : f32
    %70 = vector.broadcast %cst_36 : f32 to vector<8x16xf32>
    %71 = arith.addf %70, %69 : vector<8x16xf32>
    %72 = arith.divf %70, %71 : vector<8x16xf32>
    %73 = vector.extract_strided_slice %41 {offsets = [0, 16], sizes = [8, 16], strides = [1, 1]} : vector<8x64xf32> to vector<8x16xf32>
    %74 = arith.negf %73 : vector<8x16xf32>
    %75 = math.exp %74 : vector<8x16xf32>
    %cst_37 = arith.constant 1.000000e+00 : f32
    %76 = vector.broadcast %cst_37 : f32 to vector<8x16xf32>
    %77 = arith.addf %76, %75 : vector<8x16xf32>
    %78 = arith.divf %76, %77 : vector<8x16xf32>
    %79 = vector.extract_strided_slice %41 {offsets = [0, 32], sizes = [8, 16], strides = [1, 1]} : vector<8x64xf32> to vector<8x16xf32>
    %80 = math.tanh %79 : vector<8x16xf32>
    %81 = vector.extract_strided_slice %41 {offsets = [0, 48], sizes = [8, 16], strides = [1, 1]} : vector<8x64xf32> to vector<8x16xf32>
    %82 = arith.negf %81 : vector<8x16xf32>
    %83 = math.exp %82 : vector<8x16xf32>
    %cst_38 = arith.constant 1.000000e+00 : f32
    %84 = vector.broadcast %cst_38 : f32 to vector<8x16xf32>
    %85 = arith.addf %84, %83 : vector<8x16xf32>
    %86 = arith.divf %84, %85 : vector<8x16xf32>
    %87 = arith.mulf %78, %35 : vector<8x16xf32>
    %88 = arith.mulf %72, %80 : vector<8x16xf32>
    %89 = arith.addf %87, %88 : vector<8x16xf32>
    %90 = math.tanh %89 : vector<8x16xf32>
    %91 = arith.mulf %86, %90 : vector<8x16xf32>
    %c0_39 = arith.constant 0 : index
    %c0_40 = arith.constant 0 : index
    %92 = vector.load %arg15[%c0_39, %c0_40] : memref<64x32xf32, #tpu.memory_space<vmem>>, vector<8x16xf32>
    tpu.vector_store %arg15[%c0_39, %c0_40], %66 {strides = array<i32>} : memref<64x32xf32, #tpu.memory_space<vmem>>, vector<8x16xf32>,
    %c56 = arith.constant 56 : index
    %c16 = arith.constant 16 : index
    %93 = vector.load %arg15[%c56, %c16] : memref<64x32xf32, #tpu.memory_space<vmem>>, vector<8x16xf32>
    tpu.vector_store %arg15[%c56, %c16], %91 {strides = array<i32>} : memref<64x32xf32, #tpu.memory_space<vmem>>, vector<8x16xf32>,
    %94 = vector.extract_strided_slice %29 {offsets = [8, 0], sizes = [8, 64], strides = [1, 1]} : vector<64x128xf32> to vector<8x64xf32>
    %cst_41 = arith.constant dense<0.000000e+00> : vector<8x64xf32>
    %95 = tpu.matmul %66, %30, %cst_41 {dimension_numbers = #tpu.dot_dimension_numbers<[1], [0], [0], [1], [0, 0, 1, 1], [], []>} : vector<8x16xf32>, vector<16x64xf32>, vector<8x64xf32> -> vector<8x64xf32>
    %96 = arith.addf %94, %95 : vector<8x64xf32>
    %97 = vector.extract_strided_slice %29 {offsets = [48, 64], sizes = [8, 64], strides = [1, 1]} : vector<64x128xf32> to vector<8x64xf32>
    %cst_42 = arith.constant dense<0.000000e+00> : vector<8x64xf32>
    %98 = tpu.matmul %91, %31, %cst_42 {dimension_numbers = #tpu.dot_dimension_numbers<[1], [0], [0], [1], [0, 0, 1, 1], [], []>} : vector<8x16xf32>, vector<16x64xf32>, vector<8x64xf32> -> vector<8x64xf32>
    %99 = arith.addf %97, %98 : vector<8x64xf32>
    %100 = vector.extract_strided_slice %96 {offsets = [0, 0], sizes = [8, 16], strides = [1, 1]} : vector<8x64xf32> to vector<8x16xf32>
    %101 = arith.negf %100 : vector<8x16xf32>
    %102 = math.exp %101 : vector<8x16xf32>
    %cst_43 = arith.constant 1.000000e+00 : f32
    %103 = vector.broadcast %cst_43 : f32 to vector<8x16xf32>
    %104 = arith.addf %103, %102 : vector<8x16xf32>
    %105 = arith.divf %103, %104 : vector<8x16xf32>
    %106 = vector.extract_strided_slice %96 {offsets = [0, 16], sizes = [8, 16], strides = [1, 1]} : vector<8x64xf32> to vector<8x16xf32>
    %107 = arith.negf %106 : vector<8x16xf32>
    %108 = math.exp %107 : vector<8x16xf32>
    %cst_44 = arith.constant 1.000000e+00 : f32
    %109 = vector.broadcast %cst_44 : f32 to vector<8x16xf32>
    %110 = arith.addf %109, %108 : vector<8x16xf32>
    %111 = arith.divf %109, %110 : vector<8x16xf32>
    %112 = vector.extract_strided_slice %96 {offsets = [0, 32], sizes = [8, 16], strides = [1, 1]} : vector<8x64xf32> to vector<8x16xf32>
    %113 = math.tanh %112 : vector<8x16xf32>
    %114 = vector.extract_strided_slice %96 {offsets = [0, 48], sizes = [8, 16], strides = [1, 1]} : vector<8x64xf32> to vector<8x16xf32>
    %115 = arith.negf %114 : vector<8x16xf32>
    %116 = math.exp %115 : vector<8x16xf32>
    %cst_45 = arith.constant 1.000000e+00 : f32
    %117 = vector.broadcast %cst_45 : f32 to vector<8x16xf32>
    %118 = arith.addf %117, %116 : vector<8x16xf32>
    %119 = arith.divf %117, %118 : vector<8x16xf32>
    %120 = arith.mulf %111, %64 : vector<8x16xf32>
    %121 = arith.mulf %105, %113 : vector<8x16xf32>
    %122 = arith.addf %120, %121 : vector<8x16xf32>
    %123 = math.tanh %122 : vector<8x16xf32>
    %124 = arith.mulf %119, %123 : vector<8x16xf32>
    %125 = vector.extract_strided_slice %99 {offsets = [0, 0], sizes = [8, 16], strides = [1, 1]} : vector<8x64xf32> to vector<8x16xf32>
    %126 = arith.negf %125 : vector<8x16xf32>
    %127 = math.exp %126 : vector<8x16xf32>
    %cst_46 = arith.constant 1.000000e+00 : f32
    %128 = vector.broadcast %cst_46 : f32 to vector<8x16xf32>
    %129 = arith.addf %128, %127 : vector<8x16xf32>
    %130 = arith.divf %128, %129 : vector<8x16xf32>
    %131 = vector.extract_strided_slice %99 {offsets = [0, 16], sizes = [8, 16], strides = [1, 1]} : vector<8x64xf32> to vector<8x16xf32>
    %132 = arith.negf %131 : vector<8x16xf32>
    %133 = math.exp %132 : vector<8x16xf32>
    %cst_47 = arith.constant 1.000000e+00 : f32
    %134 = vector.broadcast %cst_47 : f32 to vector<8x16xf32>
    %135 = arith.addf %134, %133 : vector<8x16xf32>
    %136 = arith.divf %134, %135 : vector<8x16xf32>
    %137 = vector.extract_strided_slice %99 {offsets = [0, 32], sizes = [8, 16], strides = [1, 1]} : vector<8x64xf32> to vector<8x16xf32>
    %138 = math.tanh %137 : vector<8x16xf32>
    %139 = vector.extract_strided_slice %99 {offsets = [0, 48], sizes = [8, 16], strides = [1, 1]} : vector<8x64xf32> to vector<8x16xf32>
    %140 = arith.negf %139 : vector<8x16xf32>
    %141 = math.exp %140 : vector<8x16xf32>
    %cst_48 = arith.constant 1.000000e+00 : f32
    %142 = vector.broadcast %cst_48 : f32 to vector<8x16xf32>
    %143 = arith.addf %142, %141 : vector<8x16xf32>
    %144 = arith.divf %142, %143 : vector<8x16xf32>
    %145 = arith.mulf %136, %89 : vector<8x16xf32>
    %146 = arith.mulf %130, %138 : vector<8x16xf32>
    %147 = arith.addf %145, %146 : vector<8x16xf32>
    %148 = math.tanh %147 : vector<8x16xf32>
    %149 = arith.mulf %144, %148 : vector<8x16xf32>
    %c8 = arith.constant 8 : index
    %c0_49 = arith.constant 0 : index
    %150 = vector.load %arg15[%c8, %c0_49] : memref<64x32xf32, #tpu.memory_space<vmem>>, vector<8x16xf32>
    tpu.vector_store %arg15[%c8, %c0_49], %124 {strides = array<i32>} : memref<64x32xf32, #tpu.memory_space<vmem>>, vector<8x16xf32>,
    %c48 = arith.constant 48 : index
    %c16_50 = arith.constant 16 : index
    %151 = vector.load %arg15[%c48, %c16_50] : memref<64x32xf32, #tpu.memory_space<vmem>>, vector<8x16xf32>
    tpu.vector_store %arg15[%c48, %c16_50], %149 {strides = array<i32>} : memref<64x32xf32, #tpu.memory_space<vmem>>, vector<8x16xf32>,
    %152 = vector.extract_strided_slice %29 {offsets = [16, 0], sizes = [8, 64], strides = [1, 1]} : vector<64x128xf32> to vector<8x64xf32>
    %cst_51 = arith.constant dense<0.000000e+00> : vector<8x64xf32>
    %153 = tpu.matmul %124, %30, %cst_51 {dimension_numbers = #tpu.dot_dimension_numbers<[1], [0], [0], [1], [0, 0, 1, 1], [], []>} : vector<8x16xf32>, vector<16x64xf32>, vector<8x64xf32> -> vector<8x64xf32>
    %154 = arith.addf %152, %153 : vector<8x64xf32>
    %155 = vector.extract_strided_slice %29 {offsets = [40, 64], sizes = [8, 64], strides = [1, 1]} : vector<64x128xf32> to vector<8x64xf32>
    %cst_52 = arith.constant dense<0.000000e+00> : vector<8x64xf32>
    %156 = tpu.matmul %149, %31, %cst_52 {dimension_numbers = #tpu.dot_dimension_numbers<[1], [0], [0], [1], [0, 0, 1, 1], [], []>} : vector<8x16xf32>, vector<16x64xf32>, vector<8x64xf32> -> vector<8x64xf32>
    %157 = arith.addf %155, %156 : vector<8x64xf32>
    %158 = vector.extract_strided_slice %154 {offsets = [0, 0], sizes = [8, 16], strides = [1, 1]} : vector<8x64xf32> to vector<8x16xf32>
    %159 = arith.negf %158 : vector<8x16xf32>
    %160 = math.exp %159 : vector<8x16xf32>
    %cst_53 = arith.constant 1.000000e+00 : f32
    %161 = vector.broadcast %cst_53 : f32 to vector<8x16xf32>
    %162 = arith.addf %161, %160 : vector<8x16xf32>
    %163 = arith.divf %161, %162 : vector<8x16xf32>
    %164 = vector.extract_strided_slice %154 {offsets = [0, 16], sizes = [8, 16], strides = [1, 1]} : vector<8x64xf32> to vector<8x16xf32>
    %165 = arith.negf %164 : vector<8x16xf32>
    %166 = math.exp %165 : vector<8x16xf32>
    %cst_54 = arith.constant 1.000000e+00 : f32
    %167 = vector.broadcast %cst_54 : f32 to vector<8x16xf32>
    %168 = arith.addf %167, %166 : vector<8x16xf32>
    %169 = arith.divf %167, %168 : vector<8x16xf32>
    %170 = vector.extract_strided_slice %154 {offsets = [0, 32], sizes = [8, 16], strides = [1, 1]} : vector<8x64xf32> to vector<8x16xf32>
    %171 = math.tanh %170 : vector<8x16xf32>
    %172 = vector.extract_strided_slice %154 {offsets = [0, 48], sizes = [8, 16], strides = [1, 1]} : vector<8x64xf32> to vector<8x16xf32>
    %173 = arith.negf %172 : vector<8x16xf32>
    %174 = math.exp %173 : vector<8x16xf32>
    %cst_55 = arith.constant 1.000000e+00 : f32
    %175 = vector.broadcast %cst_55 : f32 to vector<8x16xf32>
    %176 = arith.addf %175, %174 : vector<8x16xf32>
    %177 = arith.divf %175, %176 : vector<8x16xf32>
    %178 = arith.mulf %169, %122 : vector<8x16xf32>
    %179 = arith.mulf %163, %171 : vector<8x16xf32>
    %180 = arith.addf %178, %179 : vector<8x16xf32>
    %181 = math.tanh %180 : vector<8x16xf32>
    %182 = arith.mulf %177, %181 : vector<8x16xf32>
    %183 = vector.extract_strided_slice %157 {offsets = [0, 0], sizes = [8, 16], strides = [1, 1]} : vector<8x64xf32> to vector<8x16xf32>
    %184 = arith.negf %183 : vector<8x16xf32>
    %185 = math.exp %184 : vector<8x16xf32>
    %cst_56 = arith.constant 1.000000e+00 : f32
    %186 = vector.broadcast %cst_56 : f32 to vector<8x16xf32>
    %187 = arith.addf %186, %185 : vector<8x16xf32>
    %188 = arith.divf %186, %187 : vector<8x16xf32>
    %189 = vector.extract_strided_slice %157 {offsets = [0, 16], sizes = [8, 16], strides = [1, 1]} : vector<8x64xf32> to vector<8x16xf32>
    %190 = arith.negf %189 : vector<8x16xf32>
    %191 = math.exp %190 : vector<8x16xf32>
    %cst_57 = arith.constant 1.000000e+00 : f32
    %192 = vector.broadcast %cst_57 : f32 to vector<8x16xf32>
    %193 = arith.addf %192, %191 : vector<8x16xf32>
    %194 = arith.divf %192, %193 : vector<8x16xf32>
    %195 = vector.extract_strided_slice %157 {offsets = [0, 32], sizes = [8, 16], strides = [1, 1]} : vector<8x64xf32> to vector<8x16xf32>
    %196 = math.tanh %195 : vector<8x16xf32>
    %197 = vector.extract_strided_slice %157 {offsets = [0, 48], sizes = [8, 16], strides = [1, 1]} : vector<8x64xf32> to vector<8x16xf32>
    %198 = arith.negf %197 : vector<8x16xf32>
    %199 = math.exp %198 : vector<8x16xf32>
    %cst_58 = arith.constant 1.000000e+00 : f32
    %200 = vector.broadcast %cst_58 : f32 to vector<8x16xf32>
    %201 = arith.addf %200, %199 : vector<8x16xf32>
    %202 = arith.divf %200, %201 : vector<8x16xf32>
    %203 = arith.mulf %194, %147 : vector<8x16xf32>
    %204 = arith.mulf %188, %196 : vector<8x16xf32>
    %205 = arith.addf %203, %204 : vector<8x16xf32>
    %206 = math.tanh %205 : vector<8x16xf32>
    %207 = arith.mulf %202, %206 : vector<8x16xf32>
    %c16_59 = arith.constant 16 : index
    %c0_60 = arith.constant 0 : index
    %208 = vector.load %arg15[%c16_59, %c0_60] : memref<64x32xf32, #tpu.memory_space<vmem>>, vector<8x16xf32>
    tpu.vector_store %arg15[%c16_59, %c0_60], %182 {strides = array<i32>} : memref<64x32xf32, #tpu.memory_space<vmem>>, vector<8x16xf32>,
    %c40 = arith.constant 40 : index
    %c16_61 = arith.constant 16 : index
    %209 = vector.load %arg15[%c40, %c16_61] : memref<64x32xf32, #tpu.memory_space<vmem>>, vector<8x16xf32>
    tpu.vector_store %arg15[%c40, %c16_61], %207 {strides = array<i32>} : memref<64x32xf32, #tpu.memory_space<vmem>>, vector<8x16xf32>,
    %210 = vector.extract_strided_slice %29 {offsets = [24, 0], sizes = [8, 64], strides = [1, 1]} : vector<64x128xf32> to vector<8x64xf32>
    %cst_62 = arith.constant dense<0.000000e+00> : vector<8x64xf32>
    %211 = tpu.matmul %182, %30, %cst_62 {dimension_numbers = #tpu.dot_dimension_numbers<[1], [0], [0], [1], [0, 0, 1, 1], [], []>} : vector<8x16xf32>, vector<16x64xf32>, vector<8x64xf32> -> vector<8x64xf32>
    %212 = arith.addf %210, %211 : vector<8x64xf32>
    %213 = vector.extract_strided_slice %29 {offsets = [32, 64], sizes = [8, 64], strides = [1, 1]} : vector<64x128xf32> to vector<8x64xf32>
    %cst_63 = arith.constant dense<0.000000e+00> : vector<8x64xf32>
    %214 = tpu.matmul %207, %31, %cst_63 {dimension_numbers = #tpu.dot_dimension_numbers<[1], [0], [0], [1], [0, 0, 1, 1], [], []>} : vector<8x16xf32>, vector<16x64xf32>, vector<8x64xf32> -> vector<8x64xf32>
    %215 = arith.addf %213, %214 : vector<8x64xf32>
    %216 = vector.extract_strided_slice %212 {offsets = [0, 0], sizes = [8, 16], strides = [1, 1]} : vector<8x64xf32> to vector<8x16xf32>
    %217 = arith.negf %216 : vector<8x16xf32>
    %218 = math.exp %217 : vector<8x16xf32>
    %cst_64 = arith.constant 1.000000e+00 : f32
    %219 = vector.broadcast %cst_64 : f32 to vector<8x16xf32>
    %220 = arith.addf %219, %218 : vector<8x16xf32>
    %221 = arith.divf %219, %220 : vector<8x16xf32>
    %222 = vector.extract_strided_slice %212 {offsets = [0, 16], sizes = [8, 16], strides = [1, 1]} : vector<8x64xf32> to vector<8x16xf32>
    %223 = arith.negf %222 : vector<8x16xf32>
    %224 = math.exp %223 : vector<8x16xf32>
    %cst_65 = arith.constant 1.000000e+00 : f32
    %225 = vector.broadcast %cst_65 : f32 to vector<8x16xf32>
    %226 = arith.addf %225, %224 : vector<8x16xf32>
    %227 = arith.divf %225, %226 : vector<8x16xf32>
    %228 = vector.extract_strided_slice %212 {offsets = [0, 32], sizes = [8, 16], strides = [1, 1]} : vector<8x64xf32> to vector<8x16xf32>
    %229 = math.tanh %228 : vector<8x16xf32>
    %230 = vector.extract_strided_slice %212 {offsets = [0, 48], sizes = [8, 16], strides = [1, 1]} : vector<8x64xf32> to vector<8x16xf32>
    %231 = arith.negf %230 : vector<8x16xf32>
    %232 = math.exp %231 : vector<8x16xf32>
    %cst_66 = arith.constant 1.000000e+00 : f32
    %233 = vector.broadcast %cst_66 : f32 to vector<8x16xf32>
    %234 = arith.addf %233, %232 : vector<8x16xf32>
    %235 = arith.divf %233, %234 : vector<8x16xf32>
    %236 = arith.mulf %227, %180 : vector<8x16xf32>
    %237 = arith.mulf %221, %229 : vector<8x16xf32>
    %238 = arith.addf %236, %237 : vector<8x16xf32>
    %239 = math.tanh %238 : vector<8x16xf32>
    %240 = arith.mulf %235, %239 : vector<8x16xf32>
    %241 = vector.extract_strided_slice %215 {offsets = [0, 0], sizes = [8, 16], strides = [1, 1]} : vector<8x64xf32> to vector<8x16xf32>
    %242 = arith.negf %241 : vector<8x16xf32>
    %243 = math.exp %242 : vector<8x16xf32>
    %cst_67 = arith.constant 1.000000e+00 : f32
    %244 = vector.broadcast %cst_67 : f32 to vector<8x16xf32>
    %245 = arith.addf %244, %243 : vector<8x16xf32>
    %246 = arith.divf %244, %245 : vector<8x16xf32>
    %247 = vector.extract_strided_slice %215 {offsets = [0, 16], sizes = [8, 16], strides = [1, 1]} : vector<8x64xf32> to vector<8x16xf32>
    %248 = arith.negf %247 : vector<8x16xf32>
    %249 = math.exp %248 : vector<8x16xf32>
    %cst_68 = arith.constant 1.000000e+00 : f32
    %250 = vector.broadcast %cst_68 : f32 to vector<8x16xf32>
    %251 = arith.addf %250, %249 : vector<8x16xf32>
    %252 = arith.divf %250, %251 : vector<8x16xf32>
    %253 = vector.extract_strided_slice %215 {offsets = [0, 32], sizes = [8, 16], strides = [1, 1]} : vector<8x64xf32> to vector<8x16xf32>
    %254 = math.tanh %253 : vector<8x16xf32>
    %255 = vector.extract_strided_slice %215 {offsets = [0, 48], sizes = [8, 16], strides = [1, 1]} : vector<8x64xf32> to vector<8x16xf32>
    %256 = arith.negf %255 : vector<8x16xf32>
    %257 = math.exp %256 : vector<8x16xf32>
    %cst_69 = arith.constant 1.000000e+00 : f32
    %258 = vector.broadcast %cst_69 : f32 to vector<8x16xf32>
    %259 = arith.addf %258, %257 : vector<8x16xf32>
    %260 = arith.divf %258, %259 : vector<8x16xf32>
    %261 = arith.mulf %252, %205 : vector<8x16xf32>
    %262 = arith.mulf %246, %254 : vector<8x16xf32>
    %263 = arith.addf %261, %262 : vector<8x16xf32>
    %264 = math.tanh %263 : vector<8x16xf32>
    %265 = arith.mulf %260, %264 : vector<8x16xf32>
    %c24 = arith.constant 24 : index
    %c0_70 = arith.constant 0 : index
    %266 = vector.load %arg15[%c24, %c0_70] : memref<64x32xf32, #tpu.memory_space<vmem>>, vector<8x16xf32>
    tpu.vector_store %arg15[%c24, %c0_70], %240 {strides = array<i32>} : memref<64x32xf32, #tpu.memory_space<vmem>>, vector<8x16xf32>,
    %c32 = arith.constant 32 : index
    %c16_71 = arith.constant 16 : index
    %267 = vector.load %arg15[%c32, %c16_71] : memref<64x32xf32, #tpu.memory_space<vmem>>, vector<8x16xf32>
    tpu.vector_store %arg15[%c32, %c16_71], %265 {strides = array<i32>} : memref<64x32xf32, #tpu.memory_space<vmem>>, vector<8x16xf32>,
    %268 = vector.extract_strided_slice %29 {offsets = [32, 0], sizes = [8, 64], strides = [1, 1]} : vector<64x128xf32> to vector<8x64xf32>
    %cst_72 = arith.constant dense<0.000000e+00> : vector<8x64xf32>
    %269 = tpu.matmul %240, %30, %cst_72 {dimension_numbers = #tpu.dot_dimension_numbers<[1], [0], [0], [1], [0, 0, 1, 1], [], []>} : vector<8x16xf32>, vector<16x64xf32>, vector<8x64xf32> -> vector<8x64xf32>
    %270 = arith.addf %268, %269 : vector<8x64xf32>
    %271 = vector.extract_strided_slice %29 {offsets = [24, 64], sizes = [8, 64], strides = [1, 1]} : vector<64x128xf32> to vector<8x64xf32>
    %cst_73 = arith.constant dense<0.000000e+00> : vector<8x64xf32>
    %272 = tpu.matmul %265, %31, %cst_73 {dimension_numbers = #tpu.dot_dimension_numbers<[1], [0], [0], [1], [0, 0, 1, 1], [], []>} : vector<8x16xf32>, vector<16x64xf32>, vector<8x64xf32> -> vector<8x64xf32>
    %273 = arith.addf %271, %272 : vector<8x64xf32>
    %274 = vector.extract_strided_slice %270 {offsets = [0, 0], sizes = [8, 16], strides = [1, 1]} : vector<8x64xf32> to vector<8x16xf32>
    %275 = arith.negf %274 : vector<8x16xf32>
    %276 = math.exp %275 : vector<8x16xf32>
    %cst_74 = arith.constant 1.000000e+00 : f32
    %277 = vector.broadcast %cst_74 : f32 to vector<8x16xf32>
    %278 = arith.addf %277, %276 : vector<8x16xf32>
    %279 = arith.divf %277, %278 : vector<8x16xf32>
    %280 = vector.extract_strided_slice %270 {offsets = [0, 16], sizes = [8, 16], strides = [1, 1]} : vector<8x64xf32> to vector<8x16xf32>
    %281 = arith.negf %280 : vector<8x16xf32>
    %282 = math.exp %281 : vector<8x16xf32>
    %cst_75 = arith.constant 1.000000e+00 : f32
    %283 = vector.broadcast %cst_75 : f32 to vector<8x16xf32>
    %284 = arith.addf %283, %282 : vector<8x16xf32>
    %285 = arith.divf %283, %284 : vector<8x16xf32>
    %286 = vector.extract_strided_slice %270 {offsets = [0, 32], sizes = [8, 16], strides = [1, 1]} : vector<8x64xf32> to vector<8x16xf32>
    %287 = math.tanh %286 : vector<8x16xf32>
    %288 = vector.extract_strided_slice %270 {offsets = [0, 48], sizes = [8, 16], strides = [1, 1]} : vector<8x64xf32> to vector<8x16xf32>
    %289 = arith.negf %288 : vector<8x16xf32>
    %290 = math.exp %289 : vector<8x16xf32>
    %cst_76 = arith.constant 1.000000e+00 : f32
    %291 = vector.broadcast %cst_76 : f32 to vector<8x16xf32>
    %292 = arith.addf %291, %290 : vector<8x16xf32>
    %293 = arith.divf %291, %292 : vector<8x16xf32>
    %294 = arith.mulf %285, %238 : vector<8x16xf32>
    %295 = arith.mulf %279, %287 : vector<8x16xf32>
    %296 = arith.addf %294, %295 : vector<8x16xf32>
    %297 = math.tanh %296 : vector<8x16xf32>
    %298 = arith.mulf %293, %297 : vector<8x16xf32>
    %299 = vector.extract_strided_slice %273 {offsets = [0, 0], sizes = [8, 16], strides = [1, 1]} : vector<8x64xf32> to vector<8x16xf32>
    %300 = arith.negf %299 : vector<8x16xf32>
    %301 = math.exp %300 : vector<8x16xf32>
    %cst_77 = arith.constant 1.000000e+00 : f32
    %302 = vector.broadcast %cst_77 : f32 to vector<8x16xf32>
    %303 = arith.addf %302, %301 : vector<8x16xf32>
    %304 = arith.divf %302, %303 : vector<8x16xf32>
    %305 = vector.extract_strided_slice %273 {offsets = [0, 16], sizes = [8, 16], strides = [1, 1]} : vector<8x64xf32> to vector<8x16xf32>
    %306 = arith.negf %305 : vector<8x16xf32>
    %307 = math.exp %306 : vector<8x16xf32>
    %cst_78 = arith.constant 1.000000e+00 : f32
    %308 = vector.broadcast %cst_78 : f32 to vector<8x16xf32>
    %309 = arith.addf %308, %307 : vector<8x16xf32>
    %310 = arith.divf %308, %309 : vector<8x16xf32>
    %311 = vector.extract_strided_slice %273 {offsets = [0, 32], sizes = [8, 16], strides = [1, 1]} : vector<8x64xf32> to vector<8x16xf32>
    %312 = math.tanh %311 : vector<8x16xf32>
    %313 = vector.extract_strided_slice %273 {offsets = [0, 48], sizes = [8, 16], strides = [1, 1]} : vector<8x64xf32> to vector<8x16xf32>
    %314 = arith.negf %313 : vector<8x16xf32>
    %315 = math.exp %314 : vector<8x16xf32>
    %cst_79 = arith.constant 1.000000e+00 : f32
    %316 = vector.broadcast %cst_79 : f32 to vector<8x16xf32>
    %317 = arith.addf %316, %315 : vector<8x16xf32>
    %318 = arith.divf %316, %317 : vector<8x16xf32>
    %319 = arith.mulf %310, %263 : vector<8x16xf32>
    %320 = arith.mulf %304, %312 : vector<8x16xf32>
    %321 = arith.addf %319, %320 : vector<8x16xf32>
    %322 = math.tanh %321 : vector<8x16xf32>
    %323 = arith.mulf %318, %322 : vector<8x16xf32>
    %c32_80 = arith.constant 32 : index
    %c0_81 = arith.constant 0 : index
    %324 = vector.load %arg15[%c32_80, %c0_81] : memref<64x32xf32, #tpu.memory_space<vmem>>, vector<8x16xf32>
    tpu.vector_store %arg15[%c32_80, %c0_81], %298 {strides = array<i32>} : memref<64x32xf32, #tpu.memory_space<vmem>>, vector<8x16xf32>,
    %c24_82 = arith.constant 24 : index
    %c16_83 = arith.constant 16 : index
    %325 = vector.load %arg15[%c24_82, %c16_83] : memref<64x32xf32, #tpu.memory_space<vmem>>, vector<8x16xf32>
    tpu.vector_store %arg15[%c24_82, %c16_83], %323 {strides = array<i32>} : memref<64x32xf32, #tpu.memory_space<vmem>>, vector<8x16xf32>,
    %326 = vector.extract_strided_slice %29 {offsets = [40, 0], sizes = [8, 64], strides = [1, 1]} : vector<64x128xf32> to vector<8x64xf32>
    %cst_84 = arith.constant dense<0.000000e+00> : vector<8x64xf32>
    %327 = tpu.matmul %298, %30, %cst_84 {dimension_numbers = #tpu.dot_dimension_numbers<[1], [0], [0], [1], [0, 0, 1, 1], [], []>} : vector<8x16xf32>, vector<16x64xf32>, vector<8x64xf32> -> vector<8x64xf32>
    %328 = arith.addf %326, %327 : vector<8x64xf32>
    %329 = vector.extract_strided_slice %29 {offsets = [16, 64], sizes = [8, 64], strides = [1, 1]} : vector<64x128xf32> to vector<8x64xf32>
    %cst_85 = arith.constant dense<0.000000e+00> : vector<8x64xf32>
    %330 = tpu.matmul %323, %31, %cst_85 {dimension_numbers = #tpu.dot_dimension_numbers<[1], [0], [0], [1], [0, 0, 1, 1], [], []>} : vector<8x16xf32>, vector<16x64xf32>, vector<8x64xf32> -> vector<8x64xf32>
    %331 = arith.addf %329, %330 : vector<8x64xf32>
    %332 = vector.extract_strided_slice %328 {offsets = [0, 0], sizes = [8, 16], strides = [1, 1]} : vector<8x64xf32> to vector<8x16xf32>
    %333 = arith.negf %332 : vector<8x16xf32>
    %334 = math.exp %333 : vector<8x16xf32>
    %cst_86 = arith.constant 1.000000e+00 : f32
    %335 = vector.broadcast %cst_86 : f32 to vector<8x16xf32>
    %336 = arith.addf %335, %334 : vector<8x16xf32>
    %337 = arith.divf %335, %336 : vector<8x16xf32>
    %338 = vector.extract_strided_slice %328 {offsets = [0, 16], sizes = [8, 16], strides = [1, 1]} : vector<8x64xf32> to vector<8x16xf32>
    %339 = arith.negf %338 : vector<8x16xf32>
    %340 = math.exp %339 : vector<8x16xf32>
    %cst_87 = arith.constant 1.000000e+00 : f32
    %341 = vector.broadcast %cst_87 : f32 to vector<8x16xf32>
    %342 = arith.addf %341, %340 : vector<8x16xf32>
    %343 = arith.divf %341, %342 : vector<8x16xf32>
    %344 = vector.extract_strided_slice %328 {offsets = [0, 32], sizes = [8, 16], strides = [1, 1]} : vector<8x64xf32> to vector<8x16xf32>
    %345 = math.tanh %344 : vector<8x16xf32>
    %346 = vector.extract_strided_slice %328 {offsets = [0, 48], sizes = [8, 16], strides = [1, 1]} : vector<8x64xf32> to vector<8x16xf32>
    %347 = arith.negf %346 : vector<8x16xf32>
    %348 = math.exp %347 : vector<8x16xf32>
    %cst_88 = arith.constant 1.000000e+00 : f32
    %349 = vector.broadcast %cst_88 : f32 to vector<8x16xf32>
    %350 = arith.addf %349, %348 : vector<8x16xf32>
    %351 = arith.divf %349, %350 : vector<8x16xf32>
    %352 = arith.mulf %343, %296 : vector<8x16xf32>
    %353 = arith.mulf %337, %345 : vector<8x16xf32>
    %354 = arith.addf %352, %353 : vector<8x16xf32>
    %355 = math.tanh %354 : vector<8x16xf32>
    %356 = arith.mulf %351, %355 : vector<8x16xf32>
    %357 = vector.extract_strided_slice %331 {offsets = [0, 0], sizes = [8, 16], strides = [1, 1]} : vector<8x64xf32> to vector<8x16xf32>
    %358 = arith.negf %357 : vector<8x16xf32>
    %359 = math.exp %358 : vector<8x16xf32>
    %cst_89 = arith.constant 1.000000e+00 : f32
    %360 = vector.broadcast %cst_89 : f32 to vector<8x16xf32>
    %361 = arith.addf %360, %359 : vector<8x16xf32>
    %362 = arith.divf %360, %361 : vector<8x16xf32>
    %363 = vector.extract_strided_slice %331 {offsets = [0, 16], sizes = [8, 16], strides = [1, 1]} : vector<8x64xf32> to vector<8x16xf32>
    %364 = arith.negf %363 : vector<8x16xf32>
    %365 = math.exp %364 : vector<8x16xf32>
    %cst_90 = arith.constant 1.000000e+00 : f32
    %366 = vector.broadcast %cst_90 : f32 to vector<8x16xf32>
    %367 = arith.addf %366, %365 : vector<8x16xf32>
    %368 = arith.divf %366, %367 : vector<8x16xf32>
    %369 = vector.extract_strided_slice %331 {offsets = [0, 32], sizes = [8, 16], strides = [1, 1]} : vector<8x64xf32> to vector<8x16xf32>
    %370 = math.tanh %369 : vector<8x16xf32>
    %371 = vector.extract_strided_slice %331 {offsets = [0, 48], sizes = [8, 16], strides = [1, 1]} : vector<8x64xf32> to vector<8x16xf32>
    %372 = arith.negf %371 : vector<8x16xf32>
    %373 = math.exp %372 : vector<8x16xf32>
    %cst_91 = arith.constant 1.000000e+00 : f32
    %374 = vector.broadcast %cst_91 : f32 to vector<8x16xf32>
    %375 = arith.addf %374, %373 : vector<8x16xf32>
    %376 = arith.divf %374, %375 : vector<8x16xf32>
    %377 = arith.mulf %368, %321 : vector<8x16xf32>
    %378 = arith.mulf %362, %370 : vector<8x16xf32>
    %379 = arith.addf %377, %378 : vector<8x16xf32>
    %380 = math.tanh %379 : vector<8x16xf32>
    %381 = arith.mulf %376, %380 : vector<8x16xf32>
    %c40_92 = arith.constant 40 : index
    %c0_93 = arith.constant 0 : index
    %382 = vector.load %arg15[%c40_92, %c0_93] : memref<64x32xf32, #tpu.memory_space<vmem>>, vector<8x16xf32>
    tpu.vector_store %arg15[%c40_92, %c0_93], %356 {strides = array<i32>} : memref<64x32xf32, #tpu.memory_space<vmem>>, vector<8x16xf32>,
    %c16_94 = arith.constant 16 : index
    %c16_95 = arith.constant 16 : index
    %383 = vector.load %arg15[%c16_94, %c16_95] : memref<64x32xf32, #tpu.memory_space<vmem>>, vector<8x16xf32>
    tpu.vector_store %arg15[%c16_94, %c16_95], %381 {strides = array<i32>} : memref<64x32xf32, #tpu.memory_space<vmem>>, vector<8x16xf32>,
    %384 = vector.extract_strided_slice %29 {offsets = [48, 0], sizes = [8, 64], strides = [1, 1]} : vector<64x128xf32> to vector<8x64xf32>
    %cst_96 = arith.constant dense<0.000000e+00> : vector<8x64xf32>
    %385 = tpu.matmul %356, %30, %cst_96 {dimension_numbers = #tpu.dot_dimension_numbers<[1], [0], [0], [1], [0, 0, 1, 1], [], []>} : vector<8x16xf32>, vector<16x64xf32>, vector<8x64xf32> -> vector<8x64xf32>
    %386 = arith.addf %384, %385 : vector<8x64xf32>
    %387 = vector.extract_strided_slice %29 {offsets = [8, 64], sizes = [8, 64], strides = [1, 1]} : vector<64x128xf32> to vector<8x64xf32>
    %cst_97 = arith.constant dense<0.000000e+00> : vector<8x64xf32>
    %388 = tpu.matmul %381, %31, %cst_97 {dimension_numbers = #tpu.dot_dimension_numbers<[1], [0], [0], [1], [0, 0, 1, 1], [], []>} : vector<8x16xf32>, vector<16x64xf32>, vector<8x64xf32> -> vector<8x64xf32>
    %389 = arith.addf %387, %388 : vector<8x64xf32>
    %390 = vector.extract_strided_slice %386 {offsets = [0, 0], sizes = [8, 16], strides = [1, 1]} : vector<8x64xf32> to vector<8x16xf32>
    %391 = arith.negf %390 : vector<8x16xf32>
    %392 = math.exp %391 : vector<8x16xf32>
    %cst_98 = arith.constant 1.000000e+00 : f32
    %393 = vector.broadcast %cst_98 : f32 to vector<8x16xf32>
    %394 = arith.addf %393, %392 : vector<8x16xf32>
    %395 = arith.divf %393, %394 : vector<8x16xf32>
    %396 = vector.extract_strided_slice %386 {offsets = [0, 16], sizes = [8, 16], strides = [1, 1]} : vector<8x64xf32> to vector<8x16xf32>
    %397 = arith.negf %396 : vector<8x16xf32>
    %398 = math.exp %397 : vector<8x16xf32>
    %cst_99 = arith.constant 1.000000e+00 : f32
    %399 = vector.broadcast %cst_99 : f32 to vector<8x16xf32>
    %400 = arith.addf %399, %398 : vector<8x16xf32>
    %401 = arith.divf %399, %400 : vector<8x16xf32>
    %402 = vector.extract_strided_slice %386 {offsets = [0, 32], sizes = [8, 16], strides = [1, 1]} : vector<8x64xf32> to vector<8x16xf32>
    %403 = math.tanh %402 : vector<8x16xf32>
    %404 = vector.extract_strided_slice %386 {offsets = [0, 48], sizes = [8, 16], strides = [1, 1]} : vector<8x64xf32> to vector<8x16xf32>
    %405 = arith.negf %404 : vector<8x16xf32>
    %406 = math.exp %405 : vector<8x16xf32>
    %cst_100 = arith.constant 1.000000e+00 : f32
    %407 = vector.broadcast %cst_100 : f32 to vector<8x16xf32>
    %408 = arith.addf %407, %406 : vector<8x16xf32>
    %409 = arith.divf %407, %408 : vector<8x16xf32>
    %410 = arith.mulf %401, %354 : vector<8x16xf32>
    %411 = arith.mulf %395, %403 : vector<8x16xf32>
    %412 = arith.addf %410, %411 : vector<8x16xf32>
    %413 = math.tanh %412 : vector<8x16xf32>
    %414 = arith.mulf %409, %413 : vector<8x16xf32>
    %415 = vector.extract_strided_slice %389 {offsets = [0, 0], sizes = [8, 16], strides = [1, 1]} : vector<8x64xf32> to vector<8x16xf32>
    %416 = arith.negf %415 : vector<8x16xf32>
    %417 = math.exp %416 : vector<8x16xf32>
    %cst_101 = arith.constant 1.000000e+00 : f32
    %418 = vector.broadcast %cst_101 : f32 to vector<8x16xf32>
    %419 = arith.addf %418, %417 : vector<8x16xf32>
    %420 = arith.divf %418, %419 : vector<8x16xf32>
    %421 = vector.extract_strided_slice %389 {offsets = [0, 16], sizes = [8, 16], strides = [1, 1]} : vector<8x64xf32> to vector<8x16xf32>
    %422 = arith.negf %421 : vector<8x16xf32>
    %423 = math.exp %422 : vector<8x16xf32>
    %cst_102 = arith.constant 1.000000e+00 : f32
    %424 = vector.broadcast %cst_102 : f32 to vector<8x16xf32>
    %425 = arith.addf %424, %423 : vector<8x16xf32>
    %426 = arith.divf %424, %425 : vector<8x16xf32>
    %427 = vector.extract_strided_slice %389 {offsets = [0, 32], sizes = [8, 16], strides = [1, 1]} : vector<8x64xf32> to vector<8x16xf32>
    %428 = math.tanh %427 : vector<8x16xf32>
    %429 = vector.extract_strided_slice %389 {offsets = [0, 48], sizes = [8, 16], strides = [1, 1]} : vector<8x64xf32> to vector<8x16xf32>
    %430 = arith.negf %429 : vector<8x16xf32>
    %431 = math.exp %430 : vector<8x16xf32>
    %cst_103 = arith.constant 1.000000e+00 : f32
    %432 = vector.broadcast %cst_103 : f32 to vector<8x16xf32>
    %433 = arith.addf %432, %431 : vector<8x16xf32>
    %434 = arith.divf %432, %433 : vector<8x16xf32>
    %435 = arith.mulf %426, %379 : vector<8x16xf32>
    %436 = arith.mulf %420, %428 : vector<8x16xf32>
    %437 = arith.addf %435, %436 : vector<8x16xf32>
    %438 = math.tanh %437 : vector<8x16xf32>
    %439 = arith.mulf %434, %438 : vector<8x16xf32>
    %c48_104 = arith.constant 48 : index
    %c0_105 = arith.constant 0 : index
    %440 = vector.load %arg15[%c48_104, %c0_105] : memref<64x32xf32, #tpu.memory_space<vmem>>, vector<8x16xf32>
    tpu.vector_store %arg15[%c48_104, %c0_105], %414 {strides = array<i32>} : memref<64x32xf32, #tpu.memory_space<vmem>>, vector<8x16xf32>,
    %c8_106 = arith.constant 8 : index
    %c16_107 = arith.constant 16 : index
    %441 = vector.load %arg15[%c8_106, %c16_107] : memref<64x32xf32, #tpu.memory_space<vmem>>, vector<8x16xf32>
    tpu.vector_store %arg15[%c8_106, %c16_107], %439 {strides = array<i32>} : memref<64x32xf32, #tpu.memory_space<vmem>>, vector<8x16xf32>,
    %442 = vector.extract_strided_slice %29 {offsets = [56, 0], sizes = [8, 64], strides = [1, 1]} : vector<64x128xf32> to vector<8x64xf32>
    %cst_108 = arith.constant dense<0.000000e+00> : vector<8x64xf32>
    %443 = tpu.matmul %414, %30, %cst_108 {dimension_numbers = #tpu.dot_dimension_numbers<[1], [0], [0], [1], [0, 0, 1, 1], [], []>} : vector<8x16xf32>, vector<16x64xf32>, vector<8x64xf32> -> vector<8x64xf32>
    %444 = arith.addf %442, %443 : vector<8x64xf32>
    %445 = vector.extract_strided_slice %29 {offsets = [0, 64], sizes = [8, 64], strides = [1, 1]} : vector<64x128xf32> to vector<8x64xf32>
    %cst_109 = arith.constant dense<0.000000e+00> : vector<8x64xf32>
    %446 = tpu.matmul %439, %31, %cst_109 {dimension_numbers = #tpu.dot_dimension_numbers<[1], [0], [0], [1], [0, 0, 1, 1], [], []>} : vector<8x16xf32>, vector<16x64xf32>, vector<8x64xf32> -> vector<8x64xf32>
    %447 = arith.addf %445, %446 : vector<8x64xf32>
    %448 = vector.extract_strided_slice %444 {offsets = [0, 0], sizes = [8, 16], strides = [1, 1]} : vector<8x64xf32> to vector<8x16xf32>
    %449 = arith.negf %448 : vector<8x16xf32>
    %450 = math.exp %449 : vector<8x16xf32>
    %cst_110 = arith.constant 1.000000e+00 : f32
    %451 = vector.broadcast %cst_110 : f32 to vector<8x16xf32>
    %452 = arith.addf %451, %450 : vector<8x16xf32>
    %453 = arith.divf %451, %452 : vector<8x16xf32>
    %454 = vector.extract_strided_slice %444 {offsets = [0, 16], sizes = [8, 16], strides = [1, 1]} : vector<8x64xf32> to vector<8x16xf32>
    %455 = arith.negf %454 : vector<8x16xf32>
    %456 = math.exp %455 : vector<8x16xf32>
    %cst_111 = arith.constant 1.000000e+00 : f32
    %457 = vector.broadcast %cst_111 : f32 to vector<8x16xf32>
    %458 = arith.addf %457, %456 : vector<8x16xf32>
    %459 = arith.divf %457, %458 : vector<8x16xf32>
    %460 = vector.extract_strided_slice %444 {offsets = [0, 32], sizes = [8, 16], strides = [1, 1]} : vector<8x64xf32> to vector<8x16xf32>
    %461 = math.tanh %460 : vector<8x16xf32>
    %462 = vector.extract_strided_slice %444 {offsets = [0, 48], sizes = [8, 16], strides = [1, 1]} : vector<8x64xf32> to vector<8x16xf32>
    %463 = arith.negf %462 : vector<8x16xf32>
    %464 = math.exp %463 : vector<8x16xf32>
    %cst_112 = arith.constant 1.000000e+00 : f32
    %465 = vector.broadcast %cst_112 : f32 to vector<8x16xf32>
    %466 = arith.addf %465, %464 : vector<8x16xf32>
    %467 = arith.divf %465, %466 : vector<8x16xf32>
    %468 = arith.mulf %459, %412 : vector<8x16xf32>
    %469 = arith.mulf %453, %461 : vector<8x16xf32>
    %470 = arith.addf %468, %469 : vector<8x16xf32>
    %471 = math.tanh %470 : vector<8x16xf32>
    %472 = arith.mulf %467, %471 : vector<8x16xf32>
    %473 = vector.extract_strided_slice %447 {offsets = [0, 0], sizes = [8, 16], strides = [1, 1]} : vector<8x64xf32> to vector<8x16xf32>
    %474 = arith.negf %473 : vector<8x16xf32>
    %475 = math.exp %474 : vector<8x16xf32>
    %cst_113 = arith.constant 1.000000e+00 : f32
    %476 = vector.broadcast %cst_113 : f32 to vector<8x16xf32>
    %477 = arith.addf %476, %475 : vector<8x16xf32>
    %478 = arith.divf %476, %477 : vector<8x16xf32>
    %479 = vector.extract_strided_slice %447 {offsets = [0, 16], sizes = [8, 16], strides = [1, 1]} : vector<8x64xf32> to vector<8x16xf32>
    %480 = arith.negf %479 : vector<8x16xf32>
    %481 = math.exp %480 : vector<8x16xf32>
    %cst_114 = arith.constant 1.000000e+00 : f32
    %482 = vector.broadcast %cst_114 : f32 to vector<8x16xf32>
    %483 = arith.addf %482, %481 : vector<8x16xf32>
    %484 = arith.divf %482, %483 : vector<8x16xf32>
    %485 = vector.extract_strided_slice %447 {offsets = [0, 32], sizes = [8, 16], strides = [1, 1]} : vector<8x64xf32> to vector<8x16xf32>
    %486 = math.tanh %485 : vector<8x16xf32>
    %487 = vector.extract_strided_slice %447 {offsets = [0, 48], sizes = [8, 16], strides = [1, 1]} : vector<8x64xf32> to vector<8x16xf32>
    %488 = arith.negf %487 : vector<8x16xf32>
    %489 = math.exp %488 : vector<8x16xf32>
    %cst_115 = arith.constant 1.000000e+00 : f32
    %490 = vector.broadcast %cst_115 : f32 to vector<8x16xf32>
    %491 = arith.addf %490, %489 : vector<8x16xf32>
    %492 = arith.divf %490, %491 : vector<8x16xf32>
    %493 = arith.mulf %484, %437 : vector<8x16xf32>
    %494 = arith.mulf %478, %486 : vector<8x16xf32>
    %495 = arith.addf %493, %494 : vector<8x16xf32>
    %496 = math.tanh %495 : vector<8x16xf32>
    %497 = arith.mulf %492, %496 : vector<8x16xf32>
    %c56_116 = arith.constant 56 : index
    %c0_117 = arith.constant 0 : index
    %498 = vector.load %arg15[%c56_116, %c0_117] : memref<64x32xf32, #tpu.memory_space<vmem>>, vector<8x16xf32>
    tpu.vector_store %arg15[%c56_116, %c0_117], %472 {strides = array<i32>} : memref<64x32xf32, #tpu.memory_space<vmem>>, vector<8x16xf32>,
    %c0_118 = arith.constant 0 : index
    %c16_119 = arith.constant 16 : index
    %499 = vector.load %arg15[%c0_118, %c16_119] : memref<64x32xf32, #tpu.memory_space<vmem>>, vector<8x16xf32>
    tpu.vector_store %arg15[%c0_118, %c16_119], %497 {strides = array<i32>} : memref<64x32xf32, #tpu.memory_space<vmem>>, vector<8x16xf32>,
    %c0_120 = arith.constant 0 : index
    %c0_121 = arith.constant 0 : index
    %500 = vector.load %arg15[%c0_120, %c0_121] : memref<64x32xf32, #tpu.memory_space<vmem>>, vector<64x32xf32>
    %c0_122 = arith.constant 0 : index
    %c0_123 = arith.constant 0 : index
    %501 = vector.load %arg11[%c0_122, %c0_123] : memref<32x1xf32, #tpu.memory_space<vmem>>, vector<32x1xf32>
    %cst_124 = arith.constant dense<0.000000e+00> : vector<64x1xf32>
    %502 = tpu.matmul %500, %501, %cst_124 {dimension_numbers = #tpu.dot_dimension_numbers<[1], [0], [0], [1], [0, 0, 1, 1], [], []>} : vector<64x32xf32>, vector<32x1xf32>, vector<64x1xf32> -> vector<64x1xf32>
    %c0_125 = arith.constant 0 : index
    %c0_126 = arith.constant 0 : index
    %503 = vector.load %arg12[%c0_125, %c0_126] : memref<1x1xf32, #tpu.memory_space<vmem>>, vector<1x1xf32>
    %504 = vector.broadcast %503 : vector<1x1xf32> to vector<64x1xf32>
    %505 = arith.addf %502, %504 : vector<64x1xf32>
    %c0_127 = arith.constant 0 : index
    %c0_128 = arith.constant 0 : index
    %506 = vector.load %arg6[%c0_127, %c0_128] : memref<16x64xf32, #tpu.memory_space<vmem>>, vector<16x64xf32>
    %cst_129 = arith.constant dense<0.000000e+00> : vector<16x1xf32>
    %507 = tpu.matmul %506, %505, %cst_129 {dimension_numbers = #tpu.dot_dimension_numbers<[1], [0], [0], [1], [0, 0, 1, 1], [], []>} : vector<16x64xf32>, vector<64x1xf32>, vector<16x1xf32> -> vector<16x1xf32>
    %c0_130 = arith.constant 0 : index
    %c0_131 = arith.constant 0 : index
    %508 = vector.load %arg14[%c0_130, %c0_131] : memref<16x1xf32, #tpu.memory_space<vmem>>, vector<16x1xf32>
    tpu.vector_store %arg14[%c0_130, %c0_131], %507 {strides = array<i32>} : memref<16x1xf32, #tpu.memory_space<vmem>>, vector<16x1xf32>,
    return
  }
  func.func @transform_0(%arg0: i32) -> i32 {
    %c0_i32 = arith.constant 0 : i32
    %c0_i32_0 = arith.constant 0 : i32
    return %c0_i32 : i32
  }
  func.func @transform_1(%arg0: i32) -> (i32, i32, i32) {
    %c0_i32 = arith.constant 0 : i32
    %c0_i32_0 = arith.constant 0 : i32
    %c0_i32_1 = arith.constant 0 : i32
    %c0_i32_2 = arith.constant 0 : i32
    return %c0_i32, %c0_i32_0, %c0_i32_1 : i32, i32, i32
  }
  func.func @transform_2(%arg0: i32) -> (i32, i32) {
    %c0_i32 = arith.constant 0 : i32
    %c0_i32_0 = arith.constant 0 : i32
    %c0_i32_1 = arith.constant 0 : i32
    return %c0_i32, %c0_i32_0 : i32, i32
  }
  func.func @transform_3(%arg0: i32) -> (i32, i32) {
    %c0_i32 = arith.constant 0 : i32
    %c0_i32_0 = arith.constant 0 : i32
    %c0_i32_1 = arith.constant 0 : i32
    return %c0_i32, %c0_i32_0 : i32, i32
  }
  func.func @transform_4(%arg0: i32) -> (i32, i32) {
    %c0_i32 = arith.constant 0 : i32
    %c0_i32_0 = arith.constant 0 : i32
    %c0_i32_1 = arith.constant 0 : i32
    return %c0_i32, %c0_i32_0 : i32, i32
  }
  func.func @transform_5(%arg0: i32) -> (i32, i32) {
    %c0_i32 = arith.constant 0 : i32
    %c0_i32_0 = arith.constant 0 : i32
    %c0_i32_1 = arith.constant 0 : i32
    return %c0_i32, %c0_i32_0 : i32, i32
  }
  func.func @transform_6(%arg0: i32) -> (i32, i32) {
    %c0_i32 = arith.constant 0 : i32
    %c0_i32_0 = arith.constant 0 : i32
    %c0_i32_1 = arith.constant 0 : i32
    return %c0_i32, %c0_i32_0 : i32, i32
  }
  func.func @transform_7(%arg0: i32) -> (i32, i32) {
    %c0_i32 = arith.constant 0 : i32
    %c0_i32_0 = arith.constant 0 : i32
    %c0_i32_1 = arith.constant 0 : i32
    return %c0_i32, %c0_i32_0 : i32, i32
  }
  func.func @transform_8(%arg0: i32) -> (i32, i32) {
    %c0_i32 = arith.constant 0 : i32
    %c0_i32_0 = arith.constant 0 : i32
    %c0_i32_1 = arith.constant 0 : i32
    return %c0_i32, %c0_i32_0 : i32, i32
  }
  func.func @transform_9(%arg0: i32) -> (i32, i32) {
    %c0_i32 = arith.constant 0 : i32
    %c0_i32_0 = arith.constant 0 : i32
    %c0_i32_1 = arith.constant 0 : i32
    return %c0_i32, %c0_i32_0 : i32, i32
  }
  func.func @transform_10(%arg0: i32) -> (i32, i32) {
    %c0_i32 = arith.constant 0 : i32
    %c0_i32_0 = arith.constant 0 : i32
    %c0_i32_1 = arith.constant 0 : i32
    return %c0_i32, %c0_i32_0 : i32, i32
  }
  func.func @transform_11(%arg0: i32) -> (i32, i32) {
    %c0_i32 = arith.constant 0 : i32
    %c0_i32_0 = arith.constant 0 : i32
    %c0_i32_1 = arith.constant 0 : i32
    return %c0_i32, %c0_i32_0 : i32, i32
  }
  func.func @transform_12(%arg0: i32) -> (i32, i32) {
    %c0_i32 = arith.constant 0 : i32
    %c0_i32_0 = arith.constant 0 : i32
    %c0_i32_1 = arith.constant 0 : i32
    return %c0_i32, %c0_i32_0 : i32, i32
  }
  func.func @transform_13(%arg0: i32) -> (i32, i32) {
    %c0_i32 = arith.constant 0 : i32
    %c0_i32_0 = arith.constant 0 : i32
    %c0_i32_1 = arith.constant 0 : i32
    return %c0_i32, %c0_i32_0 : i32, i32
  }
}

</mosaic_0001>

<bundles_post_ra>
// kernel: srl_aux_forward.3
= control target key start
LH: loop header
LB: loop body
LE: loop exit
PB: predicated region body
PF: predicated region fallthrough
CT: control target
= control target key end

     0   :  { %s3469_s0 = inlined_call_operand.vmem [shape: f32[3], index: 0, kind: input, shape index: {}]   ;;  %s3470_s1 = inlined_call_operand.vmem [shape: f32[3,16,32], index: 1, kind: input, shape index: {}]   ;;  %s3471_s2 = inlined_call_operand.vmem [shape: f32[32,128], index: 2, kind: input, shape index: {}]   ;;  %s3472_s3 = inlined_call_operand.vmem [shape: f32[1,128], index: 3, kind: input, shape index: {}]   ;;  %s3473_s4 = inlined_call_operand.vmem [shape: f32[64,16], index: 4, kind: input, shape index: {}]   ;;  %s3474_s5 = inlined_call_operand.vmem [shape: f32[16,64], index: 5, kind: input, shape index: {}]   ;;  %s3475_s6 = inlined_call_operand.vmem [shape: f32[32,128], index: 6, kind: input, shape index: {}]   ;;  %s3476_s7 = inlined_call_operand.vmem [shape: f32[1,128], index: 7, kind: input, shape index: {}]   ;;  %s3477_s8 = inlined_call_operand.vmem [shape: f32[16,64], index: 8, kind: input, shape index: {}]   ;;  %s3478_s9 = inlined_call_operand.vmem [shape: f32[16,64], index: 9, kind: input, shape index: {}]   ;;  %s3479_s10 = inlined_call_operand.vmem [shape: f32[32,1], index: 10, kind: input, shape index: {}]   ;;  %s3480_s11 = inlined_call_operand.<no memory space> [shape: f32[1,1], index: 11, kind: input, shape index: {}]   ;;  %s3481_s12 = inlined_call_operand.vmem [shape: f32[16,128], index: 12, kind: output, shape index: {0}]   ;;  %s3482_s13 = inlined_call_operand.vmem [shape: f32[16,1], index: 13, kind: output, shape index: {1}]  }
   0x1   :  { %v19_v0 = vstv %s3480_s11 }
   0x2   :  { %20 = vst [vmem:[#allocation3] sm:$0x1] %v19_v0 }
   0x3   :  { %21 = vsyncpa [#allocation5], 0  ;;  %s28_s29 = sshll.u32 %s3469_s0, 4  ;;  %s29_s29 = int_to_ptr.vmem [resolvable:$true] %s28_s29 }
   0x4   :  { %s2973_s30 = scalar_lea.vmem %s29_s29, 16  ;;  %p2978_p1 = scmp.lt.s32.totalorder %s29_s29, %s29_s29 }
   0x5   :  { %p2974_p0 = scmp.ne.s32.totalorder %s29_s29, %s2973_s30  ;;  %p2979_p2 = scmp.lt.s32.totalorder %s2973_s30, %s2973_s30 }
   0x7   :  { %p2980_p3 = por %p2979_p2, %p2978_p1 }
   0x9   :  { %p2981_p4 = pnand %p2980_p3, %p2974_p0 }
   0xb   :  { %2984 = shalt.err (!%p2981_p4)
}
   0xc   :  { %s2987_s14 = smov [#allocation4]  }
   0xd   :  { %31 = dma.vmem_to_smem %s29_s29, 16, %s2987_s14, [#allocation5]  }
   0xe   :  { %2985 = dma.done.wait [#allocation5], 16  }
   0xf   :  { %2986 = vsyncadd [#allocation5], 4294967280 }
  0x10   :  { %57 = sfence }
  0x11   :  { %s58_s11 = sld [smem:[#allocation4]]  ;;  %s2381_s15 = sld [smem:[#allocation4 + $0x1]]  ;;  %vm185_vm0 = vcmask 130048   ;;  %v177_v1 = vld [vmem:[%s3473_s4] sm:$0xff]  ;;  %v60_v3 = vld [vmem:[%s3470_s1 + $0x8] sm:$0xff]  ;;  %v2382_v4 = vld [vmem:[%s3470_s1 + $0x10] sm:$0xff] }
  0x12   :  { %s2384_s16 = sld [smem:[#allocation4 + $0x2]]  ;;  %v59_v2 = vld [vmem:[%s3470_s1] sm:$0xff]  ;;  %2561 = vmatprep.mubr.msk.f32.mxu1 %vm185_vm0, %v177_v1  ;;  %v2383_v5 = vld [vmem:[%s3470_s1 + $0x18] sm:$0xff]  ;;  %v2386_v9 = vld [vmem:[%s3470_s1 + $0x28] sm:$0xff]  ;;  %vm93_vm1 = vcmask 261120   ;;  %v2988_v38 = vmov 0.0|0.0  }
  0x13   :  { %v2385_v6 = vld [vmem:[%s3470_s1 + $0x20] sm:$0xff]  ;;  %v83_v15 = vld [vmem:[%s3471_s2 + $0x8] sm:$0xff]  ;;  %v84_v16 = vld [vmem:[%s3471_s2 + $0x10] sm:$0xff]  ;;  %vm2989_vm2 = vmmov 0   ;;  %v2990_v47 = vmov 0.0   ;;  %s2993_s29 = smov 16  }
  0x14   :  { %v82_v10 = vld [vmem:[%s3471_s2] sm:$0xff]  ;;  %v85_v17 = vld [vmem:[%s3471_s2 + $0x18] sm:$0xff]  ;;  %v316_v26 = vld [vmem:[%s3475_s6 + $0x8] sm:$0xff]  ;;  %s2994_s30 = smov 32   ;;  %vm665_vm3 = vcmask 261248   ;;  %vm2287_vm4 = vcmask 523264  }
  0x15   :  { %v2744_v19 = vpack.c.bf16 %v83_v15, %v82_v10  ;;  %v2748_v20 = vpack.c.bf16 %v85_v17, %v84_v16  ;;  %v315_v25 = vld [vmem:[%s3475_s6] sm:$0xff]  ;;  %v456_v32 = vld [vmem:[%s3477_s8 + $0x8] sm:$0xff]  ;;  %v317_v33 = vld [vmem:[%s3475_s6 + $0x10] sm:$0xff]  ;;  %vm2369_vm5 = vcmask 7168  }
  0x16   :  { %v2756_v29 = vpack.c.bf16 %v316_v26, %v315_v25  ;;  %v455_v31 = vld [vmem:[%s3477_s8] sm:$0xff]  ;;  %v318_v34 = vld [vmem:[%s3475_s6 + $0x18] sm:$0xff]  ;;  %v178_v35 = vld [vmem:[%s3473_s4 + $0x8] sm:$0xff]  ;;  %s2995_s8 = smov 80  }
  0x17   :  { %v61_v7 = vstv %s58_s11  ;;  %v68_v8 = vstv %s2381_s15  ;;  %2745 = vmatprep.subr.bf16.mxu0 %v2744_v19  ;;  %v3128_v36 = vpack.c.bf16 %v456_v32, %v455_v31  ;;  %v179_v37 = vld [vmem:[%s3473_s4 + $0x10] sm:$0xff]  ;;  %v2760_v39 = vpack.c.bf16 %v318_v34, %v317_v33  ;;  %v180_v40 = vld [vmem:[%s3473_s4 + $0x18] sm:$0xff] }
  0x18   :  { %v62_v11 = vmul.f32 %v61_v7, %v59_v2  ;;  %v63_v12 = vmul.f32 %v61_v7, %v60_v3  ;;  %v69_v13 = vmul.f32 %v2382_v4, %v68_v8  ;;  %v70_v14 = vmul.f32 %v2383_v5, %v68_v8  ;;  %2747 = vmatpush3.bf16.msra.mxu0 %v2744_v19  ;;  %v181_v41 = vld [vmem:[%s3473_s4 + $0x20] sm:$0xff]  ;;  %v182_v42 = vld [vmem:[%s3473_s4 + $0x28] sm:$0xff]  ;;  %v183_v43 = vld [vmem:[%s3473_s4 + $0x30] sm:$0xff] }
  0x19   :  { %v77_v18 = vstv %s2384_s16  ;;  %2749 = vmatprep.subr.bf16.mxu0 %v2748_v20  ;;  %v184_v44 = vld [vmem:[%s3473_s4 + $0x38] sm:$0xff]  ;;  %v457_v45 = vld [vmem:[%s3478_s9] sm:$0xff]  ;;  %v458_v46 = vld [vmem:[%s3478_s9 + $0x8] sm:$0xff] }
  0x1a   :  { %v71_v21 = vadd.f32 %v69_v13, %v62_v11  ;;  %v72_v22 = vadd.f32 %v70_v14, %v63_v12  ;;  %v78_v23 = vmul.f32 %v2385_v6, %v77_v18  ;;  %v79_v24 = vmul.f32 %v2386_v9, %v77_v18  ;;  %v2387_v49 = vld [vmem:[%s3472_s3] ss:$0 sm:$0xff]  ;;  %s2991_s3 = smov 64  }
  0x1b   :  { %v3168_v48 = vpack.c.bf16 %v458_v46, %v457_v45  ;;  %v2398_v2 = vld [vmem:[%s3476_s7] ss:$0 sm:$0xff]  ;;  %s2992_s7 = smov 96  }
  0x1c   :  { %v80_v27 = vadd.f32 %v78_v23, %v71_v21  ;;  %v81_v28 = vadd.f32 %v79_v24, %v72_v22  ;;  %2751 = vmatpush3.bf16.msra.mxu0 %v2748_v20 }
  0x1d   :  { %2757 = vmatprep.subr.bf16.mxu0 %v2756_v29 }
  0x1e   :  { %v2752_v30 = vpack.c.bf16 %v81_v28, %v80_v27  ;;  %2554 = vmatprep.mubr.msk.f32.mxu0 %vm93_vm1, %v80_v27 }
  0x1f   :  { %2555 = vmatmul.mubr.msk.f32.vlgmr.msra.gmra.mrb[0].mxu0 %vm93_vm1, %v81_v28 }
  0x20   :  { %2753 = vmatprep.subr.bf16.mxu1 %v2752_v30  ;;  %2759 = vmatpush3.bf16.msra.mxu0 %v2756_v29 }
  0x21   :  { %2755 = vmatpush3.bf16.msra.mxu1 %v2752_v30  ;;  %2761 = vmatprep.subr.bf16.mxu0 %v2760_v39 }
  0x22   :  { %2764 = vmatprep.subr.bf16.mxu1 %v2988_v38 }
  0x24   :  { %2562 = vmatmul.mubr.msk.f32.vlgmr.msra.gmra.mrb[0].mxu1 %vm185_vm0, %v178_v35  ;;  %2763 = vmatpush3.bf16.msra.mxu0 %v2760_v39 }
  0x25   :  { %2564 = vmatprep.mubr.msk.f32.mxu1 %vm185_vm0, %v179_v37  ;;  %2766 = vmatpush3.bf16.msra.mxu1 %v3128_v36 }
  0x26   :  { %2767 = vmatprep.subr.bf16.mxu1 %v2988_v38  ;;  %2773 = vmatprep.subr.bf16.mxu0 %v2988_v38 }
  0x28   :  { %2565 = vmatmul.mubr.msk.f32.gmra.mrb[2].mxu1 %vm185_vm0, %v180_v40 }
  0x29   :  { %2567 = vmatprep.mubr.msk.f32.mxu1 %vm185_vm0, %v181_v41 }
  0x2c   :  { %2568 = vmatmul.mubr.msk.f32.gmra.mrb[4].mxu1 %vm185_vm0, %v182_v42 }
  0x2d   :  { %2570 = vmatprep.mubr.msk.f32.mxu1 %vm185_vm0, %v183_v43 }
  0x30   :  { %2571 = vmatmul.mubr.msk.f32.gmra.mrb[6].mxu1 %vm185_vm0, %v184_v44 }
  0x31   :  { %2597 = vmatprep.mubr.msk.f32.mxu1 %vm2989_vm2, %v2990_v47 }
  0x34   :  { %2598 = vmatmul.mubr.f32.vlgmr.msra.gmra.mrb[8].mxu1 %v2990_v47 }
  0x35   :  { %2769 = vmatpush3.bf16.msra.mxu1 %v3168_v48  ;;  %2604 = vmatprep.mubr.msk.f32.mxu1 %vm2989_vm2, %v2990_v47 }
  0x36   :  { %2770 = vmatprep.subr.bf16.mxu1 %v2988_v38 }
  0x38   :  { %2605 = vmatmul.mubr.f32.vlgmr.msra.gmra.mrb[10].mxu1 %v2990_v47 }
  0x39   :  { %2772 = vmatpush3.bf16.msra.mxu1 %v3128_v36  ;;  %2611 = vmatprep.mubr.msk.f32.mxu1 %vm2989_vm2, %v2990_v47 }
  0x3a   :  { %2776 = vmatprep.subr.bf16.mxu1 %v2988_v38 }
  0xf2   :  { %v2556_v50 = vpop.f32.mrb[0].mxu0 }
  0xf3   :  { %v172_v52 = vadd.f32 %v2556_v50, %v2387_v49  ;;  %v166_v53 = vpop.f32.mrb[1].mxu0 }
  0xf4   :  { %v167_v55 = vadd.f32 %v2387_v49, %v166_v53 }
  0xf5   :  { %176 = vst [vmem:[%s3481_s12 + $0x8] sm:$0xff] %v172_v52 }
  0xf6   :  { %175 = vst [vmem:[%s3481_s12] sm:$0xff] %v167_v55 }
  0xf7   :  { %v2563_v51 = vpop.f32.mrb[0].mxu1 }
  0xf8   :  { %v276_v54 = vpop.f32.mrb[1].mxu1 }
  0xf9   :  { %2581 = vmatprep.mubr.msk.f32.mxu0 %vm93_vm1, %v276_v54 }
  0xfa   :  { %2582 = vmatmul.mubr.msk.f32.vlgmr.msra.gmra.mrb[2].mxu0 %vm93_vm1, %v2563_v51 }
  0xfb   :  { %v2566_v56 = vpop.f32.mrb[2].mxu1  ;;  %2775 = vmatpush3.bf16.msra.mxu0 %v3168_v48 }
  0xfc   :  { %v286_v57 = vpop.f32.mrb[3].mxu1  ;;  %2779 = vmatprep.subr.bf16.mxu0 %v2988_v38 }
  0xfd   :  { %2584 = vmatprep.mubr.msk.f32.mxu0 %vm93_vm1, %v286_v57 }
  0xfe   :  { %2585 = vmatmul.mubr.msk.f32.gmra.mrb[4].mxu0 %vm93_vm1, %v2566_v56 }
  0xff   :  { %v2569_v58 = vpop.f32.mrb[4].mxu1 }
 0x100   :  { %v296_v59 = vpop.f32.mrb[5].mxu1 }
 0x101   :  { %2587 = vmatprep.mubr.msk.f32.mxu0 %vm93_vm1, %v296_v59 }
 0x102   :  { %2588 = vmatmul.mubr.msk.f32.gmra.mrb[6].mxu0 %vm93_vm1, %v2569_v58 }
 0x103   :  { %v2572_v60 = vpop.f32.mrb[6].mxu1 }
 0x104   :  { %v306_v61 = vpop.f32.mrb[7].mxu1 }
 0x105   :  { %2590 = vmatprep.mubr.msk.f32.mxu0 %vm93_vm1, %v306_v61 }
 0x106   :  { %2591 = vmatmul.mubr.msk.f32.gmra.mrb[8].mxu0 %vm93_vm1, %v2572_v60 }
 0x107   :  { %v528_v62 = vpop.f32.mrb[8].mxu1  ;;  %2618 = vmatprep.mubr.msk.f32.mxu0 %vm2989_vm2, %v2990_v47 }
 0x108   :  { %v2599_v63 = vpop.f32.mrb[9].mxu1 }
 0x10b   :  { %v599_v0 = vpop.f32.mrb[10].mxu1 }
 0x10c   :  { %v2606_v1 = vpop.f32.mrb[11].mxu1  ;;  %604 = vrot.lane.b32.xlu0 %v599_v0, %s2991_s3 }
 0x17e   :  { %v605_v16 = vpop.permute.xlu0 %604 }
 0x1cd   :  { %v2583_v3 = vpop.f32.mrb[2].mxu0 }
 0x1ce   :  { %v3205_v4 = vadd.f32 %v2583_v3, %v2398_v2  ;;  %v416_v5 = vpop.f32.mrb[3].mxu0 }
 0x1cf   :  { %v3207_v6 = vadd.f32 %v2398_v2, %v416_v5 }
 0x1d1   :  { %v2586_v7 = vpop.f32.mrb[4].mxu0  ;;  %v532_v31 = vadd.f32 %v528_v62, %v3207_v6 }
 0x1d2   :  { %v3209_v8 = vadd.f32 %v2586_v7, %v2398_v2  ;;  %v426_v9 = vpop.f32.mrb[5].mxu0 }
 0x1d3   :  { %v3211_v10 = vadd.f32 %v2398_v2, %v426_v9  ;;  %v2407_v34 = vmul.f32 -1.442695, %v532_v31 }
 0x1d5   :  { %v2589_v11 = vpop.f32.mrb[6].mxu0 }
 0x1d6   :  { %v3213_v12 = vadd.f32 %v2589_v11, %v2398_v2  ;;  %v436_v13 = vpop.f32.mrb[7].mxu0 }
 0x1d7   :  { %v3215_v14 = vadd.f32 %v2398_v2, %v436_v13 }
 0x1d9   :  { %v2592_v15 = vpop.f32.mrb[8].mxu0 }
 0x1da   :  { %v3217_v17 = vadd.f32 %v2592_v15, %v2398_v2  ;;  %v446_v18 = vpop.f32.mrb[9].mxu0 }
 0x1db   :  { %v3219_v19 = vadd.f32 %v2398_v2, %v446_v18 }
 0x1dc   :  { %v607_v20 = vadd.f32 %v605_v16, %v3217_v17 }
 0x1de   :  { %2845 = vtanh.f32 %v607_v20  ;;  %v2408_v22 = vmul.f32 -1.442695, %v607_v20 }
 0x1e0   :  { %2847 = vpow2.f32 %v2408_v22 }
 0x1e8   :  { %v2846_v21 = vpop.eup %2845 }
 0x1e9   :  { %641 = vrot.lane.b32.xlu0 %v2846_v21, %s2992_s7 }
 0x1ea   :  { %v2848_v23 = vpop.eup %2847 }
 0x1eb   :  { %v635_v24 = vadd.f32 1.0, %v2848_v23 }
 0x1ed   :  { %2849 = vrcp.f32 %v635_v24 }
 0x1f7   :  { %v2850_v25 = vpop.eup %2849 }
 0x1f8   :  { %v639_v28 = vmul.f32 0.0, %v2850_v25 }
 0x25b   :  { %v642_v26 = vpop.permute.xlu0 %641 }
 0x25c   :  { %v644_v27 = vmul.f32 %v2850_v25, %v642_v26 }
 0x25e   :  { %646 = vrot.lane.b32.xlu1 %v644_v27, %s2993_s29 }
 0x2d0   :  { %v647_v29 = vpop.permute.xlu1 %646 }
 0x2d1   :  { %v649_v30 = vadd.f32 %v647_v29, %v639_v28 }
 0x2d3   :  { %2851 = vtanh.f32 %v649_v30 }
 0x2d4   :  { %2853 = vtanh.f32 %v532_v31 }
 0x2d5   :  { %2855 = vpow2.f32 %v2407_v34 }
 0x2dd   :  { %v2852_v32 = vpop.eup %2851 }
 0x2de   :  { %652 = vrot.lane.b32.xlu1 %v2852_v32, %s2994_s30  ;;  %v2854_v33 = vpop.eup %2853 }
 0x2df   :  { %v2856_v35 = vpop.eup %2855 }
 0x2e0   :  { %v611_v37 = vadd.f32 1.0, %v2856_v35 }
 0x2e2   :  { %617 = vrot.lane.b32.xlu1 %v2854_v33, %s2992_s7  ;;  %2857 = vrcp.f32 %v611_v37 }
 0x2ec   :  { %v2858_v41 = vpop.eup %2857 }
 0x2ed   :  { %v615_v45 = vmul.f32 0.0, %v2858_v41 }
 0x350   :  { %v653_v39 = vpop.permute.xlu1 %652 }
 0x351   :  { %v3227_v40 = vmul.f32 %v2850_v25, %v653_v39 }
 0x353   :  { %740 = vrot.lane.b32.xlu0 %v3227_v40, %s2993_s29 }
 0x354   :  { %v618_v42 = vpop.permute.xlu1 %617 }
 0x355   :  { %v620_v43 = vmul.f32 %v2858_v41, %v618_v42 }
 0x357   :  { %622 = vrot.lane.b32.xlu1 %v620_v43, %s2993_s29 }
 0x3c5   :  { %v741_v44 = vpop.permute.xlu0 %740 }
 0x3c6   :  { %2619 = vmatmul.mubr.msk.f32.vlgmr.msra.gmra.mrb[10].mxu0 %vm185_vm0, %v741_v44 }
 0x3c7   :  { %2781 = vmatpush3.bf16.msra.mxu0 %v3168_v48  ;;  %2632 = vmatprep.mubr.msk.f32.mxu0 %vm2989_vm2, %v2990_v47 }
 0x3c8   :  { %2785 = vmatprep.subr.bf16.mxu0 %v2988_v38 }
 0x3c9   :  { %v623_v46 = vpop.permute.xlu1 %622 }
 0x3ca   :  { %v625_v49 = vadd.f32 %v623_v46, %v615_v45 }
 0x3cc   :  { %2859 = vtanh.f32 %v625_v49 }
 0x3d6   :  { %v2860_v50 = vpop.eup %2859 }
 0x3d7   :  { %628 = vrot.lane.b32.xlu1 %v2860_v50, %s2994_s30 }
 0x449   :  { %v629_v51 = vpop.permute.xlu1 %628 }
 0x44a   :  { %v631_v52 = vmul.f32 %v2858_v41, %v629_v51 }
 0x44c   :  { %657 = vrot.lane.b32.xlu1 %v631_v52, %s2995_s8 }
 0x499   :  { %v810_v53 = vpop.f32.mrb[10].mxu0 }
 0x49a   :  { %815 = vrot.lane.b32.xlu0 %v810_v53, %s2991_s3  ;;  %v2620_v54 = vpop.f32.mrb[11].mxu0 }
 0x4be   :  { %v658_v55 = vpop.permute.xlu1 %657 }
 0x4bf   :  { %660 = vst.msk [vmem:[#allocation2] sm:$0xff] %vm185_vm0, %v658_v55  ;;  %2612 = vmatmul.mubr.msk.f32.vlgmr.msra.gmra.mrb[12].mxu1 %vm185_vm0, %v658_v55 }
 0x4c0   :  { %2778 = vmatpush3.bf16.msra.mxu1 %v3128_v36  ;;  %2625 = vmatprep.mubr.msk.f32.mxu1 %vm2989_vm2, %v2990_v47 }
 0x4c1   :  { %2782 = vmatprep.subr.bf16.mxu1 %v2988_v38 }
 0x50c   :  { %v816_v56 = vpop.permute.xlu0 %815 }
 0x50d   :  { %v818_v57 = vadd.f32 %v816_v56, %v3219_v19 }
 0x50f   :  { %2861 = vtanh.f32 %v818_v57  ;;  %v2412_v59 = vmul.f32 -1.442695, %v818_v57 }
 0x511   :  { %2863 = vpow2.f32 %v2412_v59 }
 0x519   :  { %v2862_v58 = vpop.eup %2861 }
 0x51a   :  { %852 = vrot.lane.b32.xlu0 %v2862_v58, %s2992_s7 }
 0x51b   :  { %v2864_v60 = vpop.eup %2863 }
 0x51c   :  { %v846_v61 = vadd.f32 1.0, %v2864_v60 }
 0x51e   :  { %2865 = vrcp.f32 %v846_v61 }
 0x528   :  { %v2866_v62 = vpop.eup %2865 }
 0x529   :  { %v850_v3 = vmul.f32 %v2866_v62, %v649_v30 }
 0x58c   :  { %v853_v63 = vpop.permute.xlu0 %852 }
 0x58d   :  { %v855_v0 = vmul.f32 %v2866_v62, %v853_v63 }
 0x58f   :  { %857 = vrot.lane.b32.xlu0 %v855_v0, %s2993_s29 }
 0x592   :  { %v735_v1 = vpop.f32.mrb[12].mxu1 }
 0x593   :  { %v2613_v2 = vpop.f32.mrb[13].mxu1  ;;  %v739_v9 = vadd.f32 %v735_v1, %v3205_v4 }
 0x595   :  { %v2411_v15 = vmul.f32 -1.442695, %v739_v9 }
 0x601   :  { %v858_v5 = vpop.permute.xlu0 %857 }
 0x602   :  { %v860_v7 = vadd.f32 %v858_v5, %v850_v3 }
 0x604   :  { %2867 = vtanh.f32 %v860_v7 }
 0x605   :  { %2869 = vtanh.f32 %v739_v9 }
 0x606   :  { %2871 = vpow2.f32 %v2411_v15 }
 0x60e   :  { %v2868_v11 = vpop.eup %2867 }
 0x60f   :  { %863 = vrot.lane.b32.xlu0 %v2868_v11, %s2994_s30  ;;  %v2870_v13 = vpop.eup %2869 }
 0x610   :  { %v2872_v16 = vpop.eup %2871 }
 0x611   :  { %v822_v18 = vadd.f32 1.0, %v2872_v16 }
 0x613   :  { %828 = vrot.lane.b32.xlu0 %v2870_v13, %s2992_s7  ;;  %2873 = vrcp.f32 %v822_v18 }
 0x61d   :  { %v2874_v22 = vpop.eup %2873 }
 0x61e   :  { %v826_v26 = vmul.f32 %v2874_v22, %v625_v49 }
 0x681   :  { %v864_v20 = vpop.permute.xlu0 %863 }
 0x682   :  { %v3252_v21 = vmul.f32 %v2866_v62, %v864_v20 }
 0x684   :  { %950 = vrot.lane.b32.xlu1 %v3252_v21, %s2993_s29 }
 0x685   :  { %v829_v23 = vpop.permute.xlu0 %828 }
 0x686   :  { %v831_v24 = vmul.f32 %v2874_v22, %v829_v23 }
 0x688   :  { %833 = vrot.lane.b32.xlu1 %v831_v24, %s2993_s29 }
 0x6f6   :  { %v951_v25 = vpop.permute.xlu1 %950 }
 0x6f7   :  { %2633 = vmatmul.mubr.msk.f32.vlgmr.msra.gmra.mrb[12].mxu0 %vm185_vm0, %v951_v25 }
 0x6f8   :  { %2787 = vmatpush3.bf16.msra.mxu0 %v3168_v48  ;;  %2646 = vmatprep.mubr.msk.f32.mxu0 %vm2989_vm2, %v2990_v47 }
 0x6f9   :  { %2791 = vmatprep.subr.bf16.mxu0 %v2988_v38 }
 0x6fa   :  { %v834_v27 = vpop.permute.xlu1 %833 }
 0x6fb   :  { %v836_v28 = vadd.f32 %v834_v27, %v826_v26 }
 0x6fd   :  { %2875 = vtanh.f32 %v836_v28 }
 0x707   :  { %v2876_v29 = vpop.eup %2875 }
 0x708   :  { %839 = vrot.lane.b32.xlu1 %v2876_v29, %s2994_s30 }
 0x77a   :  { %v840_v30 = vpop.permute.xlu1 %839 }
 0x77b   :  { %v842_v31 = vmul.f32 %v2874_v22, %v840_v30 }
 0x77d   :  { %868 = vrot.lane.b32.xlu1 %v842_v31, %s2995_s8 }
 0x7ca   :  { %v1020_v32 = vpop.f32.mrb[12].mxu0 }
 0x7cb   :  { %1025 = vrot.lane.b32.xlu0 %v1020_v32, %s2991_s3  ;;  %v2634_v33 = vpop.f32.mrb[13].mxu0 }
 0x7ef   :  { %v869_v34 = vpop.permute.xlu1 %868 }
 0x7f0   :  { %871 = vst.msk [vmem:[#allocation2 + $0x8] sm:$0xff] %vm185_vm0, %v869_v34  ;;  %2626 = vmatmul.mubr.msk.f32.vlgmr.msra.gmra.mrb[14].mxu1 %vm185_vm0, %v869_v34 }
 0x7f1   :  { %2784 = vmatpush3.bf16.msra.mxu1 %v3128_v36  ;;  %2639 = vmatprep.mubr.msk.f32.mxu1 %vm2989_vm2, %v2990_v47 }
 0x7f2   :  { %2788 = vmatprep.subr.bf16.mxu1 %v2988_v38 }
 0x83d   :  { %v1026_v35 = vpop.permute.xlu0 %1025 }
 0x83e   :  { %v1028_v37 = vadd.f32 %v1026_v35, %v3213_v12 }
 0x840   :  { %2877 = vtanh.f32 %v1028_v37  ;;  %v2416_v41 = vmul.f32 -1.442695, %v1028_v37 }
 0x842   :  { %2879 = vpow2.f32 %v2416_v41 }
 0x84a   :  { %v2878_v39 = vpop.eup %2877 }
 0x84b   :  { %1062 = vrot.lane.b32.xlu0 %v2878_v39, %s2992_s7 }
 0x84c   :  { %v2880_v42 = vpop.eup %2879 }
 0x84d   :  { %v1056_v43 = vadd.f32 1.0, %v2880_v42 }
 0x84f   :  { %2881 = vrcp.f32 %v1056_v43 }
 0x859   :  { %v2882_v44 = vpop.eup %2881 }
 0x85a   :  { %v1060_v51 = vmul.f32 %v2882_v44, %v860_v7 }
 0x8bd   :  { %v1063_v45 = vpop.permute.xlu0 %1062 }
 0x8be   :  { %v1065_v46 = vmul.f32 %v2882_v44, %v1063_v45 }
 0x8c0   :  { %1067 = vrot.lane.b32.xlu0 %v1065_v46, %s2993_s29 }
 0x8c3   :  { %v945_v49 = vpop.f32.mrb[14].mxu1 }
 0x8c4   :  { %v2627_v50 = vpop.f32.mrb[15].mxu1  ;;  %v949_v54 = vadd.f32 %v945_v49, %v3211_v10 }
 0x8c6   :  { %v2415_v57 = vmul.f32 -1.442695, %v949_v54 }
 0x932   :  { %v1068_v52 = vpop.permute.xlu0 %1067 }
 0x933   :  { %v1070_v53 = vadd.f32 %v1068_v52, %v1060_v51 }
 0x935   :  { %2883 = vtanh.f32 %v1070_v53 }
 0x936   :  { %2885 = vtanh.f32 %v949_v54 }
 0x937   :  { %2887 = vpow2.f32 %v2415_v57 }
 0x93f   :  { %v2884_v55 = vpop.eup %2883 }
 0x940   :  { %1073 = vrot.lane.b32.xlu1 %v2884_v55, %s2994_s30  ;;  %v2886_v56 = vpop.eup %2885 }
 0x941   :  { %v2888_v58 = vpop.eup %2887 }
 0x942   :  { %v1032_v59 = vadd.f32 1.0, %v2888_v58 }
 0x944   :  { %1038 = vrot.lane.b32.xlu1 %v2886_v56, %s2992_s7  ;;  %2889 = vrcp.f32 %v1032_v59 }
 0x94e   :  { %v2890_v62 = vpop.eup %2889 }
 0x94f   :  { %v1036_v2 = vmul.f32 %v2890_v62, %v836_v28 }
 0x9b2   :  { %v1074_v60 = vpop.permute.xlu1 %1073 }
 0x9b3   :  { %v3277_v61 = vmul.f32 %v2882_v44, %v1074_v60 }
 0x9b5   :  { %1160 = vrot.lane.b32.xlu0 %v3277_v61, %s2993_s29 }
 0x9b6   :  { %v1039_v63 = vpop.permute.xlu1 %1038 }
 0x9b7   :  { %v1041_v0 = vmul.f32 %v2890_v62, %v1039_v63 }
 0x9b9   :  { %1043 = vrot.lane.b32.xlu0 %v1041_v0, %s2993_s29 }
 0xa27   :  { %v1161_v1 = vpop.permute.xlu0 %1160 }
 0xa28   :  { %2647 = vmatmul.mubr.msk.f32.vlgmr.msra.gmra.mrb[14].mxu0 %vm185_vm0, %v1161_v1 }
 0xa29   :  { %2793 = vmatpush3.bf16.msra.mxu0 %v3168_v48  ;;  %2660 = vmatprep.mubr.msk.f32.mxu0 %vm2989_vm2, %v2990_v47 }
 0xa2a   :  { %2797 = vmatprep.subr.bf16.mxu0 %v2988_v38 }
 0xa2b   :  { %v1044_v3 = vpop.permute.xlu0 %1043 }
 0xa2c   :  { %v1046_v5 = vadd.f32 %v1044_v3, %v1036_v2 }
 0xa2e   :  { %2891 = vtanh.f32 %v1046_v5 }
 0xa38   :  { %v2892_v7 = vpop.eup %2891 }
 0xa39   :  { %1049 = vrot.lane.b32.xlu1 %v2892_v7, %s2994_s30 }
 0xaab   :  { %v1050_v9 = vpop.permute.xlu1 %1049 }
 0xaac   :  { %v1052_v11 = vmul.f32 %v2890_v62, %v1050_v9 }
 0xaae   :  { %1078 = vrot.lane.b32.xlu1 %v1052_v11, %s2995_s8 }
 0xafb   :  { %v1230_v13 = vpop.f32.mrb[14].mxu0 }
 0xafc   :  { %v2648_v15 = vpop.f32.mrb[15].mxu0  ;;  %1235 = vrot.lane.b32.xlu0 %v1230_v13, %s2991_s3 }
 0xb20   :  { %v1079_v16 = vpop.permute.xlu1 %1078 }
 0xb21   :  { %1081 = vst.msk [vmem:[#allocation2 + $0x10] sm:$0xff] %vm185_vm0, %v1079_v16  ;;  %2640 = vmatmul.mubr.msk.f32.vlgmr.msra.gmra.mrb[16].mxu1 %vm185_vm0, %v1079_v16 }
 0xb22   :  { %2790 = vmatpush3.bf16.msra.mxu1 %v3128_v36  ;;  %2653 = vmatprep.mubr.msk.f32.mxu1 %vm2989_vm2, %v2990_v47 }
 0xb23   :  { %2794 = vmatprep.subr.bf16.mxu1 %v2988_v38 }
 0xb6e   :  { %v1236_v18 = vpop.permute.xlu0 %1235 }
 0xb6f   :  { %v1238_v20 = vadd.f32 %v1236_v18, %v3215_v14 }
 0xb71   :  { %2893 = vtanh.f32 %v1238_v20  ;;  %v2420_v23 = vmul.f32 -1.442695, %v1238_v20 }
 0xb73   :  { %2895 = vpow2.f32 %v2420_v23 }
 0xb7b   :  { %v2894_v22 = vpop.eup %2893 }
 0xb7c   :  { %1272 = vrot.lane.b32.xlu0 %v2894_v22, %s2992_s7 }
 0xb7d   :  { %v2896_v24 = vpop.eup %2895 }
 0xb7e   :  { %v1266_v25 = vadd.f32 1.0, %v2896_v24 }
 0xb80   :  { %2897 = vrcp.f32 %v1266_v25 }
 0xb8a   :  { %v2898_v26 = vpop.eup %2897 }
 0xb8b   :  { %v1270_v31 = vmul.f32 %v2898_v26, %v1070_v53 }
 0xbee   :  { %v1273_v27 = vpop.permute.xlu0 %1272 }
 0xbef   :  { %v1275_v28 = vmul.f32 %v2898_v26, %v1273_v27 }
 0xbf1   :  { %1277 = vrot.lane.b32.xlu1 %v1275_v28, %s2993_s29 }
 0xbf4   :  { %v1155_v29 = vpop.f32.mrb[16].mxu1 }
 0xbf5   :  { %v2641_v30 = vpop.f32.mrb[17].mxu1  ;;  %v1159_v34 = vadd.f32 %v1155_v29, %v3209_v8 }
 0xbf7   :  { %v2419_v39 = vmul.f32 -1.442695, %v1159_v34 }
 0xc63   :  { %v1278_v32 = vpop.permute.xlu1 %1277 }
 0xc64   :  { %v3299_v33 = vadd.f32 %v1278_v32, %v1270_v31 }
 0xc66   :  { %2899 = vtanh.f32 %v3299_v33 }
 0xc67   :  { %2901 = vtanh.f32 %v1159_v34 }
 0xc68   :  { %2903 = vpow2.f32 %v2419_v39 }
 0xc70   :  { %v2900_v35 = vpop.eup %2899 }
 0xc71   :  { %1283 = vrot.lane.b32.xlu0 %v2900_v35, %s2994_s30  ;;  %v2902_v37 = vpop.eup %2901 }
 0xc72   :  { %v2904_v41 = vpop.eup %2903 }
 0xc73   :  { %v1242_v42 = vadd.f32 1.0, %v2904_v41 }
 0xc75   :  { %1248 = vrot.lane.b32.xlu0 %v2902_v37, %s2992_s7  ;;  %2905 = vrcp.f32 %v1242_v42 }
 0xc7f   :  { %v2906_v45 = vpop.eup %2905 }
 0xc80   :  { %v1246_v51 = vmul.f32 %v2906_v45, %v1046_v5 }
 0xce3   :  { %v1284_v43 = vpop.permute.xlu0 %1283 }
 0xce4   :  { %v3305_v44 = vmul.f32 %v2898_v26, %v1284_v43 }
 0xce6   :  { %1370 = vrot.lane.b32.xlu1 %v3305_v44, %s2993_s29 }
 0xce7   :  { %v1249_v46 = vpop.permute.xlu0 %1248 }
 0xce8   :  { %v1251_v49 = vmul.f32 %v2906_v45, %v1249_v46 }
 0xcea   :  { %1253 = vrot.lane.b32.xlu1 %v1251_v49, %s2993_s29 }
 0xd58   :  { %v1371_v50 = vpop.permute.xlu1 %1370 }
 0xd59   :  { %2661 = vmatmul.mubr.msk.f32.vlgmr.msra.gmra.mrb[16].mxu0 %vm185_vm0, %v1371_v50 }
 0xd5a   :  { %2799 = vmatpush3.bf16.msra.mxu0 %v3168_v48  ;;  %2674 = vmatprep.mubr.msk.f32.mxu0 %vm2989_vm2, %v2990_v47 }
 0xd5b   :  { %2803 = vmatprep.subr.bf16.mxu0 %v2988_v38 }
 0xd5c   :  { %v1254_v52 = vpop.permute.xlu1 %1253 }
 0xd5d   :  { %v1256_v53 = vadd.f32 %v1254_v52, %v1246_v51 }
 0xd5f   :  { %2907 = vtanh.f32 %v1256_v53 }
 0xd69   :  { %v2908_v54 = vpop.eup %2907 }
 0xd6a   :  { %1259 = vrot.lane.b32.xlu0 %v2908_v54, %s2994_s30 }
 0xddc   :  { %v1260_v55 = vpop.permute.xlu0 %1259 }
 0xddd   :  { %v1262_v56 = vmul.f32 %v2906_v45, %v1260_v55 }
 0xddf   :  { %1288 = vrot.lane.b32.xlu1 %v1262_v56, %s2995_s8 }
 0xe2c   :  { %v1440_v57 = vpop.f32.mrb[16].mxu0 }
 0xe2d   :  { %v2662_v58 = vpop.f32.mrb[17].mxu0  ;;  %1445 = vrot.lane.b32.xlu0 %v1440_v57, %s2991_s3 }
 0xe51   :  { %v1289_v59 = vpop.permute.xlu1 %1288 }
 0xe52   :  { %1291 = vst.msk [vmem:[#allocation2 + $0x18] sm:$0xff] %vm185_vm0, %v1289_v59  ;;  %2654 = vmatmul.mubr.msk.f32.vlgmr.msra.gmra.mrb[18].mxu1 %vm185_vm0, %v1289_v59 }
 0xe53   :  { %2796 = vmatpush3.bf16.msra.mxu1 %v3128_v36  ;;  %2667 = vmatprep.mubr.msk.f32.mxu1 %vm2989_vm2, %v2990_v47 }
 0xe54   :  { %2800 = vmatprep.subr.bf16.mxu1 %v2988_v38 }
 0xe9f   :  { %v1446_v60 = vpop.permute.xlu0 %1445 }
 0xea0   :  { %v1448_v62 = vadd.f32 %v1446_v60, %v3209_v8 }
 0xea2   :  { %2909 = vtanh.f32 %v1448_v62  ;;  %v2424_v0 = vmul.f32 -1.442695, %v1448_v62 }
 0xea4   :  { %2911 = vpow2.f32 %v2424_v0 }
 0xeac   :  { %v2910_v63 = vpop.eup %2909 }
 0xead   :  { %1482 = vrot.lane.b32.xlu1 %v2910_v63, %s2992_s7 }
 0xeae   :  { %v2912_v1 = vpop.eup %2911 }
 0xeaf   :  { %v1476_v2 = vadd.f32 1.0, %v2912_v1 }
 0xeb1   :  { %2913 = vrcp.f32 %v1476_v2 }
 0xebb   :  { %v2914_v3 = vpop.eup %2913 }
 0xebc   :  { %v1480_v16 = vmul.f32 %v2914_v3, %v3299_v33 }
 0xf1f   :  { %v1483_v5 = vpop.permute.xlu1 %1482 }
 0xf20   :  { %v1485_v7 = vmul.f32 %v2914_v3, %v1483_v5 }
 0xf22   :  { %1487 = vrot.lane.b32.xlu0 %v1485_v7, %s2993_s29 }
 0xf25   :  { %v1365_v9 = vpop.f32.mrb[18].mxu1 }
 0xf26   :  { %v1369_v11 = vadd.f32 %v1365_v9, %v3215_v14  ;;  %v2655_v13 = vpop.f32.mrb[19].mxu1 }
 0xf28   :  { %2915 = vtanh.f32 %v1369_v11  ;;  %v2423_v15 = vmul.f32 -1.442695, %v1369_v11 }
 0xf2a   :  { %2917 = vpow2.f32 %v2423_v15 }
 0xf32   :  { %v2916_v8 = vpop.eup %2915 }
 0xf33   :  { %1458 = vrot.lane.b32.xlu0 %v2916_v8, %s2992_s7 }
 0xf34   :  { %v2918_v18 = vpop.eup %2917 }
 0xf35   :  { %v1452_v23 = vadd.f32 1.0, %v2918_v18 }
 0xf94   :  { %v1488_v20 = vpop.permute.xlu0 %1487 }
 0xf95   :  { %v3330_v22 = vadd.f32 %v1488_v20, %v1480_v16 }
 0xf97   :  { %2919 = vtanh.f32 %v3330_v22 }
 0xf98   :  { %2921 = vrcp.f32 %v1452_v23 }
 0xfa1   :  { %v2920_v24 = vpop.eup %2919 }
 0xfa2   :  { %1493 = vrot.lane.b32.xlu1 %v2920_v24, %s2994_s30  ;;  %v2922_v14 = vpop.eup %2921 }
 0xfa3   :  { %v1456_v29 = vmul.f32 %v2922_v14, %v1256_v53 }
 0xfa5   :  { %v1459_v25 = vpop.permute.xlu0 %1458 }
 0xfa6   :  { %v1461_v26 = vmul.f32 %v2922_v14, %v1459_v25 }
 0xfa8   :  { %1463 = vrot.lane.b32.xlu0 %v1461_v26, %s2993_s29 }
0x1014   :  { %v1494_v27 = vpop.permute.xlu1 %1493 }
0x1015   :  { %v3335_v28 = vmul.f32 %v2914_v3, %v1494_v27 }
0x1017   :  { %1580 = vrot.lane.b32.xlu1 %v3335_v28, %s2993_s29 }
0x101a   :  { %v1464_v30 = vpop.permute.xlu0 %1463 }
0x101b   :  { %v1466_v31 = vadd.f32 %v1464_v30, %v1456_v29 }
0x101d   :  { %2923 = vtanh.f32 %v1466_v31 }
0x1027   :  { %v2924_v32 = vpop.eup %2923 }
0x1028   :  { %1469 = vrot.lane.b32.xlu1 %v2924_v32, %s2994_s30 }
0x1089   :  { %v1581_v33 = vpop.permute.xlu1 %1580 }
0x108a   :  { %2675 = vmatmul.mubr.msk.f32.vlgmr.msra.gmra.mrb[18].mxu0 %vm185_vm0, %v1581_v33 }
0x108b   :  { %2805 = vmatpush3.bf16.msra.mxu0 %v3168_v48  ;;  %2688 = vmatprep.mubr.msk.f32.mxu0 %vm2989_vm2, %v2990_v47 }
0x108c   :  { %2809 = vmatprep.subr.bf16.mxu0 %v2988_v38 }
0x109a   :  { %v1470_v34 = vpop.permute.xlu1 %1469 }
0x109b   :  { %v1472_v35 = vmul.f32 %v2922_v14, %v1470_v34 }
0x109d   :  { %1498 = vrot.lane.b32.xlu0 %v1472_v35, %s2995_s8 }
0x110f   :  { %v3346_v37 = vpop.permute.xlu0 %1498 }
0x1110   :  { %2668 = vmatmul.mubr.msk.f32.vlgmr.msra.gmra.mrb[20].mxu1 %vm185_vm0, %v3346_v37 }
0x1111   :  { %2802 = vmatpush3.bf16.msra.mxu1 %v3128_v36  ;;  %2681 = vmatprep.mubr.msk.f32.mxu1 %vm2989_vm2, %v2990_v47 }
0x1112   :  { %2806 = vmatprep.subr.bf16.mxu1 %v2988_v38 }
0x115d   :  { %v1650_v39 = vpop.f32.mrb[18].mxu0 }
0x115e   :  { %1655 = vrot.lane.b32.xlu1 %v1650_v39, %s2991_s3  ;;  %v2676_v41 = vpop.f32.mrb[19].mxu0 }
0x11d0   :  { %v1656_v42 = vpop.permute.xlu1 %1655 }
0x11d1   :  { %v1658_v43 = vadd.f32 %v1656_v42, %v3211_v10 }
0x11d3   :  { %2925 = vtanh.f32 %v1658_v43  ;;  %v2428_v38 = vmul.f32 -1.442695, %v1658_v43 }
0x11dd   :  { %v2926_v45 = vpop.eup %2925 }
0x11de   :  { %1692 = vrot.lane.b32.xlu0 %v2926_v45, %s2992_s7 }
0x11e3   :  { %v1575_v46 = vpop.f32.mrb[20].mxu1 }
0x11e4   :  { %v1579_v49 = vadd.f32 %v1575_v46, %v3213_v12  ;;  %v2669_v50 = vpop.f32.mrb[21].mxu1 }
0x11e6   :  { %2927 = vtanh.f32 %v1579_v49  ;;  %v2427_v54 = vmul.f32 -1.442695, %v1579_v49 }
0x11e7   :  { %2929 = vpow2.f32 %v2428_v38 }
0x11f0   :  { %v2928_v51 = vpop.eup %2927 }
0x11f1   :  { %1668 = vrot.lane.b32.xlu0 %v2928_v51, %s2992_s7  ;;  %v2930_v52 = vpop.eup %2929 }
0x11f2   :  { %v1686_v53 = vadd.f32 1.0, %v2930_v52 }
0x11f4   :  { %2931 = vrcp.f32 %v1686_v53 }
0x11f5   :  { %2933 = vpow2.f32 %v2427_v54 }
0x11fe   :  { %v2932_v10 = vpop.eup %2931 }
0x11ff   :  { %v2934_v57 = vpop.eup %2933  ;;  %v1690_v62 = vmul.f32 %v2932_v10, %v3330_v22 }
0x1200   :  { %v1662_v58 = vadd.f32 1.0, %v2934_v57 }
0x1202   :  { %2935 = vrcp.f32 %v1662_v58 }
0x120c   :  { %v2936_v12 = vpop.eup %2935 }
0x120d   :  { %v1666_v2 = vmul.f32 %v2936_v12, %v1466_v31 }
0x1250   :  { %v1693_v55 = vpop.permute.xlu0 %1692 }
0x1251   :  { %v1695_v56 = vmul.f32 %v2932_v10, %v1693_v55 }
0x1253   :  { %1697 = vrot.lane.b32.xlu1 %v1695_v56, %s2993_s29 }
0x1263   :  { %v1669_v59 = vpop.permute.xlu0 %1668 }
0x1264   :  { %v1671_v60 = vmul.f32 %v2936_v12, %v1669_v59 }
0x1266   :  { %1673 = vrot.lane.b32.xlu0 %v1671_v60, %s2993_s29 }
0x12c5   :  { %v1698_v63 = vpop.permute.xlu1 %1697 }
0x12c6   :  { %v1700_v0 = vadd.f32 %v1698_v63, %v1690_v62 }
0x12c8   :  { %2937 = vtanh.f32 %v1700_v0 }
0x12d2   :  { %v2938_v1 = vpop.eup %2937 }
0x12d3   :  { %1703 = vrot.lane.b32.xlu1 %v2938_v1, %s2994_s30 }
0x12d8   :  { %v1674_v3 = vpop.permute.xlu0 %1673 }
0x12d9   :  { %v1676_v5 = vadd.f32 %v1674_v3, %v1666_v2 }
0x12db   :  { %2939 = vtanh.f32 %v1676_v5 }
0x12e5   :  { %v2940_v7 = vpop.eup %2939 }
0x12e6   :  { %1679 = vrot.lane.b32.xlu0 %v2940_v7, %s2994_s30 }
0x1345   :  { %v1704_v9 = vpop.permute.xlu1 %1703 }
0x1346   :  { %v3364_v11 = vmul.f32 %v2932_v10, %v1704_v9 }
0x1348   :  { %1790 = vrot.lane.b32.xlu1 %v3364_v11, %s2993_s29 }
0x1358   :  { %v1680_v13 = vpop.permute.xlu0 %1679 }
0x1359   :  { %v1682_v8 = vmul.f32 %v2936_v12, %v1680_v13 }
0x135b   :  { %1708 = vrot.lane.b32.xlu1 %v1682_v8, %s2995_s8 }
0x13ba   :  { %v1791_v15 = vpop.permute.xlu1 %1790 }
0x13bb   :  { %2689 = vmatmul.mubr.msk.f32.vlgmr.msra.gmra.mrb[20].mxu0 %vm185_vm0, %v1791_v15 }
0x13bc   :  { %2811 = vmatpush3.bf16.msra.mxu0 %v3168_v48  ;;  %2702 = vmatprep.mubr.msk.f32.mxu0 %vm2989_vm2, %v2990_v47 }
0x13cd   :  { %v3373_v16 = vpop.permute.xlu1 %1708 }
0x13ce   :  { %2682 = vmatmul.mubr.msk.f32.vlgmr.msra.gmra.mrb[22].mxu1 %vm185_vm0, %v3373_v16 }
0x13cf   :  { %2808 = vmatpush3.bf16.msra.mxu1 %v3128_v36  ;;  %2695 = vmatprep.mubr.msk.f32.mxu1 %vm2989_vm2, %v2990_v47 }
0x148e   :  { %v1860_v18 = vpop.f32.mrb[20].mxu0 }
0x148f   :  { %1865 = vrot.lane.b32.xlu0 %v1860_v18, %s2991_s3  ;;  %v2690_v20 = vpop.f32.mrb[21].mxu0 }
0x14a1   :  { %v1785_v22 = vpop.f32.mrb[22].mxu1 }
0x14a2   :  { %v2683_v23 = vpop.f32.mrb[23].mxu1  ;;  %v1789_v14 = vadd.f32 %v1785_v22, %v3219_v19 }
0x14a4   :  { %v2431_v26 = vmul.f32 -1.442695, %v1789_v14 }
0x1501   :  { %v1866_v48 = vpop.permute.xlu0 %1865 }
0x1502   :  { %v1868_v24 = vadd.f32 %v1866_v48, %v3205_v4 }
0x1504   :  { %2941 = vtanh.f32 %v1868_v24  ;;  %v2432_v47 = vmul.f32 -1.442695, %v1868_v24 }
0x1505   :  { %2943 = vtanh.f32 %v1789_v14 }
0x1506   :  { %2945 = vpow2.f32 %v2432_v47 }
0x1507   :  { %2947 = vpow2.f32 %v2431_v26 }
0x150e   :  { %v2942_v25 = vpop.eup %2941 }
0x150f   :  { %1902 = vrot.lane.b32.xlu1 %v2942_v25, %s2992_s7  ;;  %v2944_v36 = vpop.eup %2943 }
0x1510   :  { %v2946_v27 = vpop.eup %2945 }
0x1511   :  { %v1896_v29 = vadd.f32 1.0, %v2946_v27  ;;  %v2948_v30 = vpop.eup %2947  ;;  %v2146_v27 = vld [vmem:[%s3479_s10 + $0x8] sm:$0xff] }
0x1512   :  { %v1872_v31 = vadd.f32 1.0, %v2948_v30  ;;  %v2147_v30 = vld [vmem:[%s3479_s10 + $0x10] sm:$0xff] }
0x1513   :  { %1878 = vrot.lane.b32.xlu1 %v2944_v36, %s2992_s7  ;;  %2949 = vrcp.f32 %v1896_v29 }
0x1514   :  { %2951 = vrcp.f32 %v1872_v31 }
0x151d   :  { %v2950_v4 = vpop.eup %2949 }
0x151e   :  { %v2952_v33 = vpop.eup %2951  ;;  %v1900_v39 = vmul.f32 %v2950_v4, %v1700_v0 }
0x151f   :  { %v1876_v43 = vmul.f32 %v2952_v33, %v1676_v5 }
0x1581   :  { %v1903_v19 = vpop.permute.xlu1 %1902 }
0x1582   :  { %v1905_v32 = vmul.f32 %v2950_v4, %v1903_v19 }
0x1584   :  { %1907 = vrot.lane.b32.xlu0 %v1905_v32, %s2993_s29 }
0x1585   :  { %v1879_v34 = vpop.permute.xlu1 %1878 }
0x1586   :  { %v1881_v35 = vmul.f32 %v2952_v33, %v1879_v34 }
0x1588   :  { %1883 = vrot.lane.b32.xlu0 %v1881_v35, %s2993_s29 }
0x15f6   :  { %v1908_v41 = vpop.permute.xlu0 %1907 }
0x15f7   :  { %v1910_v42 = vadd.f32 %v1908_v41, %v1900_v39 }
0x15f9   :  { %2953 = vtanh.f32 %v1910_v42 }
0x15fa   :  { %v1884_v45 = vpop.permute.xlu0 %1883 }
0x15fb   :  { %v1886_v46 = vadd.f32 %v1884_v45, %v1876_v43 }
0x15fd   :  { %2955 = vtanh.f32 %v1886_v46 }
0x1603   :  { %v2954_v49 = vpop.eup %2953 }
0x1604   :  { %1913 = vrot.lane.b32.xlu1 %v2954_v49, %s2994_s30  ;;  %v2285_v49 = vld [vmem:[%s3474_s5] sm:$0xff] }
0x1607   :  { %v2956_v50 = vpop.eup %2955 }
0x1608   :  { %1889 = vrot.lane.b32.xlu1 %v2956_v50, %s2994_s30  ;;  %v2437_v50 = vld [vmem:[#allocation3] ss:$0 sm:$0xff] }
0x1676   :  { %v1914_v51 = vpop.permute.xlu1 %1913 }
0x1677   :  { %v1916_v38 = vmul.f32 %v2950_v4, %v1914_v51 }
0x1679   :  { %2000 = vrot.lane.b32.xlu0 %v1916_v38, %s2993_s29 }
0x167a   :  { %v1890_v52 = vpop.permute.xlu1 %1889 }
0x167b   :  { %v1892_v53 = vmul.f32 %v2952_v33, %v1890_v52 }
0x167d   :  { %1918 = vrot.lane.b32.xlu0 %v1892_v53, %s2995_s8 }
0x16eb   :  { %v2001_v54 = vpop.permute.xlu0 %2000 }
0x16ec   :  { %2703 = vmatmul.mubr.msk.f32.vlgmr.msra.gmra.mrb[22].mxu0 %vm185_vm0, %v2001_v54 }
0x16ed   :  { %2741 = vmatprep.mubr.msk.f32.mxu0 %vm2287_vm4, %v2285_v49 }
0x16ef   :  { %v3392_v10 = vpop.permute.xlu0 %1918 }
0x16f0   :  { %2696 = vmatmul.mubr.msk.f32.vlgmr.msra.gmra.mrb[24].mxu1 %vm185_vm0, %v3392_v10 }
0x17bf   :  { %v2070_v55 = vpop.f32.mrb[22].mxu0 }
0x17c0   :  { %2075 = vrot.lane.b32.xlu1 %v2070_v55, %s2991_s3  ;;  %v2704_v56 = vpop.f32.mrb[23].mxu0 }
0x17c3   :  { %v1995_v57 = vpop.f32.mrb[24].mxu1 }
0x17c4   :  { %v1999_v58 = vadd.f32 %v1995_v57, %v3217_v17  ;;  %v2697_v12 = vpop.f32.mrb[25].mxu1 }
0x17c6   :  { %2957 = vtanh.f32 %v1999_v58  ;;  %v2435_v60 = vmul.f32 -1.442695, %v1999_v58 }
0x17c8   :  { %2959 = vpow2.f32 %v2435_v60 }
0x17d0   :  { %v2958_v59 = vpop.eup %2957 }
0x17d1   :  { %2088 = vrot.lane.b32.xlu1 %v2958_v59, %s2992_s7 }
0x17d2   :  { %v2960_v62 = vpop.eup %2959 }
0x17d3   :  { %v2082_v1 = vadd.f32 1.0, %v2960_v62 }
0x1832   :  { %v2076_v63 = vpop.permute.xlu1 %2075 }
0x1833   :  { %v2078_v0 = vadd.f32 %v2076_v63, %v3207_v6 }
0x1835   :  { %2961 = vtanh.f32 %v2078_v0  ;;  %v2436_v7 = vmul.f32 -1.442695, %v2078_v0 }
0x1836   :  { %2963 = vrcp.f32 %v2082_v1 }
0x1837   :  { %2965 = vpow2.f32 %v2436_v7 }
0x183f   :  { %v2962_v2 = vpop.eup %2961 }
0x1840   :  { %2112 = vrot.lane.b32.xlu0 %v2962_v2, %s2992_s7  ;;  %v2964_v3 = vpop.eup %2963 }
0x1841   :  { %v2966_v9 = vpop.eup %2965  ;;  %v2086_v6 = vmul.f32 %v2964_v3, %v1886_v46 }
0x1842   :  { %v2106_v13 = vadd.f32 1.0, %v2966_v9 }
0x1843   :  { %v2089_v5 = vpop.permute.xlu1 %2088 }
0x1844   :  { %v2091_v17 = vmul.f32 %v2964_v3, %v2089_v5  ;;  %2967 = vrcp.f32 %v2106_v13 }
0x1846   :  { %2093 = vrot.lane.b32.xlu1 %v2091_v17, %s2993_s29  ;;  %v2286_v17 = vld [vmem:[%s3474_s5 + $0x8] sm:$0xff] }
0x184e   :  { %v2968_v8 = vpop.eup %2967 }
0x184f   :  { %v2110_v48 = vmul.f32 %v2968_v8, %v1910_v42 }
0x18b2   :  { %v2113_v15 = vpop.permute.xlu0 %2112 }
0x18b3   :  { %v2115_v18 = vmul.f32 %v2968_v8, %v2113_v15 }
0x18b5   :  { %2117 = vrot.lane.b32.xlu0 %v2115_v18, %s2993_s29 }
0x18b8   :  { %v2094_v20 = vpop.permute.xlu1 %2093 }
0x18b9   :  { %v2096_v22 = vadd.f32 %v2094_v20, %v2086_v6 }
0x18bb   :  { %2969 = vtanh.f32 %v2096_v22 }
0x18c5   :  { %v2970_v23 = vpop.eup %2969 }
0x18c6   :  { %2099 = vrot.lane.b32.xlu1 %v2970_v23, %s2994_s30 }
0x18ca   :  { %1923 = vrot.lane.b32.xlu1 %v1916_v38, %s2994_s30 }
0x18ce   :  { %1503 = vrot.lane.b32.xlu1 %v3335_v28, %s2994_s30 }
0x18d2   :  { %1083 = vrot.lane.b32.xlu1 %v3277_v61, %s2994_s30  ;;  %v2145_v61 = vld [vmem:[%s3479_s10] sm:$0xff] }
0x18d3   :  { %v2812_v29 = vpack.c.bf16 %v2146_v27, %v2145_v61 }
0x18d5   :  { %2813 = vmatprep.subr.bf16.mxu1 %v2812_v29 }
0x18d6   :  { %662 = vrot.lane.b32.xlu1 %v3227_v40, %s2994_s30  ;;  %2815 = vmatpush3.bf16.msra.mxu1 %v2812_v29 }
0x1927   :  { %v2118_v24 = vpop.permute.xlu0 %2117 }
0x1928   :  { %v2120_v14 = vadd.f32 %v2118_v24, %v2110_v48 }
0x192a   :  { %2971 = vtanh.f32 %v2120_v14 }
0x1934   :  { %v2972_v25 = vpop.eup %2971 }
0x1935   :  { %2123 = vrot.lane.b32.xlu0 %v2972_v25, %s2994_s30 }
0x1938   :  { %v2100_v36 = vpop.permute.xlu1 %2099 }
0x1939   :  { %v2102_v32 = vmul.f32 %v2964_v3, %v2100_v36 }
0x193c   :  { %v1924_v47 = vpop.permute.xlu1 %1923 }
0x193d   :  { %1926 = vst.msk [vmem:[#allocation2 + $0x8] sm:$0xff] %vm665_vm3, %v1924_v47 }
0x1940   :  { %v1504_v26 = vpop.permute.xlu1 %1503 }
0x1941   :  { %1506 = vst.msk [vmem:[#allocation2 + $0x18] sm:$0xff] %vm665_vm3, %v1504_v26 }
0x1944   :  { %v1084_v28 = vpop.permute.xlu1 %1083 }
0x1945   :  { %1086 = vst.msk [vmem:[#allocation2 + $0x28] sm:$0xff] %vm665_vm3, %v1084_v28 }
0x1946   :  { %1711 = vst.msk [vmem:[#allocation2 + $0x28] sm:$0xff] %vm185_vm0, %v3373_v16  ;;  %v2148_v16 = vld [vmem:[%s3479_s10 + $0x18] sm:$0xff] }
0x1947   :  { %v2816_v31 = vpack.c.bf16 %v2148_v16, %v2147_v30 }
0x1948   :  { %v663_v40 = vpop.permute.xlu1 %662  ;;  %v2140_v41 = vld [vmem:[#allocation2 + $0x18] sm:$0xff] }
0x1949   :  { %666 = vst.msk [vmem:[#allocation2 + $0x38] sm:$0xff] %vm665_vm3, %v663_v40  ;;  %2817 = vmatprep.subr.bf16.mxu1 %v2816_v31 }
0x194a   :  { %2819 = vmatpush3.bf16.msra.mxu1 %v2816_v31 }
0x19a7   :  { %v2124_v4 = vpop.permute.xlu0 %2123 }
0x19a8   :  { %v2126_v19 = vmul.f32 %v2968_v8, %v2124_v4 }
0x19aa   :  { %2133 = vrot.lane.b32.xlu0 %v2126_v19, %s2994_s30 }
0x19ae   :  { %1713 = vrot.lane.b32.xlu0 %v3364_v11, %s2994_s30  ;;  %v2138_v11 = vld [vmem:[#allocation2 + $0x8] sm:$0xff] }
0x19b2   :  { %1293 = vrot.lane.b32.xlu0 %v3305_v44, %s2994_s30 }
0x19b6   :  { %873 = vrot.lane.b32.xlu0 %v3252_v21, %s2994_s30 }
0x19ba   :  { %2128 = vrot.lane.b32.xlu0 %v2102_v32, %s2995_s8 }
0x1a1c   :  { %v2134_v33 = vpop.permute.xlu0 %2133 }
0x1a1d   :  { %2136 = vst.msk [vmem:[#allocation2] sm:$0xff] %vm665_vm3, %v2134_v33 }
0x1a20   :  { %v1714_v34 = vpop.permute.xlu0 %1713 }
0x1a21   :  { %1716 = vst.msk [vmem:[#allocation2 + $0x10] sm:$0xff] %vm665_vm3, %v1714_v34 }
0x1a24   :  { %v1294_v35 = vpop.permute.xlu0 %1293  ;;  %v2137_v39 = vld [vmem:[#allocation2] sm:$0xff] }
0x1a25   :  { %1296 = vst.msk [vmem:[#allocation2 + $0x20] sm:$0xff] %vm665_vm3, %v1294_v35  ;;  %2713 = vmatprep.mubr.msk.f32.mxu1 %vm93_vm1, %v2137_v39 }
0x1a26   :  { %1501 = vst.msk [vmem:[#allocation2 + $0x20] sm:$0xff] %vm185_vm0, %v3346_v37  ;;  %2714 = vmatmul.mubr.msk.f32.vlgmr.msra.gmra.mrb[26].mxu1 %vm93_vm1, %v2138_v11  ;;  %v2142_v37 = vld [vmem:[#allocation2 + $0x28] sm:$0xff] }
0x1a28   :  { %v874_v21 = vpop.permute.xlu0 %873  ;;  %v2139_v44 = vld [vmem:[#allocation2 + $0x10] sm:$0xff] }
0x1a29   :  { %876 = vst.msk [vmem:[#allocation2 + $0x30] sm:$0xff] %vm665_vm3, %v874_v21  ;;  %2716 = vmatprep.mubr.msk.f32.mxu1 %vm93_vm1, %v2139_v44 }
0x1a2a   :  { %1921 = vst.msk [vmem:[#allocation2 + $0x30] sm:$0xff] %vm185_vm0, %v3392_v10  ;;  %2717 = vmatmul.mubr.msk.f32.gmra.mrb[28].mxu1 %vm93_vm1, %v2140_v41 }
0x1a2c   :  { %v2129_v42 = vpop.permute.xlu0 %2128 }
0x1a2d   :  { %2131 = vst.msk [vmem:[#allocation2 + $0x38] sm:$0xff] %vm185_vm0, %v2129_v42  ;;  %v2141_v43 = vld [vmem:[#allocation2 + $0x20] sm:$0xff] }
0x1a2e   :  { %2719 = vmatprep.mubr.msk.f32.mxu1 %vm93_vm1, %v2141_v43 }
0x1a2f   :  { %2720 = vmatmul.mubr.msk.f32.gmra.mrb[30].mxu1 %vm93_vm1, %v2142_v37 }
0x1a31   :  { %v2143_v45 = vld [vmem:[#allocation2 + $0x30] sm:$0xff] }
0x1a32   :  { %2722 = vmatprep.mubr.msk.f32.mxu1 %vm93_vm1, %v2143_v45 }
0x1a34   :  { %v2144_v46 = vld [vmem:[#allocation2 + $0x38] sm:$0xff] }
0x1a35   :  { %2723 = vmatmul.mubr.msk.f32.gmra.mrb[32].mxu1 %vm93_vm1, %v2144_v46 }
0x1af9   :  { %v2715_v51 = vpop.f32.mrb[26].mxu1 }
0x1afa   :  { %v2252_v38 = vadd.f32 %v2715_v51, %v2437_v50  ;;  %v2246_v52 = vpop.f32.mrb[27].mxu1 }
0x1afb   :  { %v2247_v53 = vadd.f32 %v2437_v50, %v2246_v52 }
0x1afd   :  { %v2820_v54 = vpack.c.bf16 %v2252_v38, %v2247_v53  ;;  %v2718_v10 = vpop.f32.mrb[28].mxu1 }
0x1afe   :  { %v2262_v55 = vadd.f32 %v2718_v10, %v2437_v50  ;;  %v2256_v56 = vpop.f32.mrb[29].mxu1 }
0x1aff   :  { %v2257_v57 = vadd.f32 %v2437_v50, %v2256_v56  ;;  %2821 = vmatprep.subr.bf16.mxu0 %v2820_v54 }
0x1b00   :  { %2823 = vmatpush3.bf16.msra.mxu0 %v2820_v54 }
0x1b01   :  { %v2824_v58 = vpack.c.bf16 %v2262_v55, %v2257_v57 }
0x1b02   :  { %v2721_v12 = vpop.f32.mrb[30].mxu1 }
0x1b03   :  { %v2272_v59 = vadd.f32 %v2721_v12, %v2437_v50  ;;  %v2266_v60 = vpop.f32.mrb[31].mxu1  ;;  %2825 = vmatprep.subr.bf16.mxu0 %v2824_v58 }
0x1b04   :  { %v2267_v62 = vadd.f32 %v2437_v50, %v2266_v60  ;;  %2827 = vmatpush3.bf16.msra.mxu0 %v2824_v58 }
0x1b06   :  { %v2828_v63 = vpack.c.bf16 %v2272_v59, %v2267_v62 }
0x1b08   :  { %v2724_v0 = vpop.f32.mrb[32].mxu1  ;;  %2829 = vmatprep.subr.bf16.mxu0 %v2828_v63 }
0x1b09   :  { %v2282_v1 = vadd.f32 %v2724_v0, %v2437_v50  ;;  %v2276_v2 = vpop.f32.mrb[33].mxu1  ;;  %2831 = vmatpush3.bf16.msra.mxu0 %v2828_v63 }
0x1b0a   :  { %v2277_v3 = vadd.f32 %v2437_v50, %v2276_v2 }
0x1b0c   :  { %v2832_v5 = vpack.c.bf16 %v2282_v1, %v2277_v3 }
0x1b0e   :  { %2833 = vmatprep.subr.bf16.mxu0 %v2832_v5 }
0x1b0f   :  { %2835 = vmatpush3.bf16.msra.mxu0 %v2832_v5 }
0x1b12   :  { %2742 = vmatmul.mubr.msk.f32.vlgmr.msra.gmra.mrb[24].mxu0 %vm2287_vm4, %v2286_v17 }
0x1be5   :  { %v2743_v7 = vpop.f32.mrb[24].mxu0 }
0x1be6   :  { %2371 = vst.msk [vmem:[%s3482_s13 + $0x8] sm:$0xff] %vm2369_vm5, %v2743_v7  ;;  %v2360_v9 = vpop.f32.mrb[25].mxu0 }
0x1be7   :  { %2370 = vst.msk [vmem:[%s3482_s13] sm:$0xff] %vm2369_vm5, %v2360_v9 }
0x1be8   :  { %2380 = vsyncpa [#allocation5], 1 }

// kernel: srl_aux_forward.2
= control target key start
LH: loop header
LB: loop body
LE: loop exit
PB: predicated region body
PF: predicated region fallthrough
CT: control target
= control target key end

     0   :  { %vm67_vm0 = vcmask 261120   ;;  %vm4383_vm1 = vmmov 0   ;;  %s4384_s26 = smov 80   ;;  %s4385_s27 = smov 96   ;;  %vm238_vm2 = vcmask 130048   ;;  %vm314_vm3 = vcmask 64512   ;;  %s5087_s0 = inlined_call_operand.vmem [shape: f32[16,32], index: 0, kind: input, shape index: {}]   ;;  %s5088_s2 = inlined_call_operand.vmem [shape: f32[16,32], index: 2, kind: input, shape index: {}]   ;;  %s5089_s3 = inlined_call_operand.vmem [shape: f32[1,32], index: 3, kind: input, shape index: {}]   ;;  %s5090_s4 = inlined_call_operand.vmem [shape: f32[2,32], index: 4, kind: input, shape index: {}]   ;;  %s5091_s1 = inlined_call_operand.vmem [shape: f32[16,32], index: 1, kind: input, shape index: {}]   ;;  %s5092_s5 = inlined_call_operand.vmem [shape: f32[3,32,96], index: 5, kind: input, shape index: {}]   ;;  %s5093_s6 = inlined_call_operand.vmem [shape: f32[3,1,96], index: 6, kind: input, shape index: {}]   ;;  %s5094_s7 = inlined_call_operand.vmem [shape: f32[3,32,32], index: 7, kind: input, shape index: {}]   ;;  %s5095_s8 = inlined_call_operand.vmem [shape: f32[3,1,32], index: 8, kind: input, shape index: {}]   ;;  %s5096_s10 = inlined_call_operand.vmem [shape: f32[3,32,64], index: 10, kind: input, shape index: {}]   ;;  %s5097_s9 = inlined_call_operand.vmem [shape: f32[3,2,32], index: 9, kind: input, shape index: {}]   ;;  %s5098_s12 = inlined_call_operand.vmem [shape: f32[3,64,32], index: 12, kind: input, shape index: {}]   ;;  %s5099_s11 = inlined_call_operand.vmem [shape: f32[3,1,64], index: 11, kind: input, shape index: {}]   ;;  %s5100_s13 = inlined_call_operand.vmem [shape: f32[3,1,32], index: 13, kind: input, shape index: {}]   ;;  %s5101_s14 = inlined_call_operand.vmem [shape: f32[3,2,32], index: 14, kind: input, shape index: {}]   ;;  %s5102_s15 = inlined_call_operand.vmem [shape: f32[3,16,32], index: 15, kind: output, shape index: {}]  }
   0x1   :  { %v50_v0 = vld [vmem:[%s5088_s2] sm:$0xff]  ;;  %v51_v4 = vld [vmem:[%s5088_s2 + $0x8] sm:$0xff]  ;;  %v145_v57 = vld [vmem:[%s5092_s5 + $0x10] sm:$0xff]  ;;  %s4387_s2 = smov 48   ;;  %s4389_s28 = smov 16   ;;  %vm573_vm4 = vcmask 261248  }
   0x2   :  { %v3623_v1 = vld [vmem:[%s5089_s3] ss:$0 sm:$0xff]  ;;  %v64_v5 = vld [vmem:[%s5087_s0 + $0x8] sm:$0xff]  ;;  %v3625_v30 = vld [vmem:[%s5090_s4 + $0x1] ss:$0 sm:$0xff]  ;;  %s4388_s3 = smov 64  }
   0x3   :  { %v63_v2 = vld [vmem:[%s5087_s0] sm:$0xff]  ;;  %v59_v3 = vadd.f32 %v3623_v1, %v50_v0  ;;  %v60_v6 = vadd.f32 %v3623_v1, %v51_v4  ;;  %v108_v38 = vld [vmem:[%s5091_s1 + $0x8] sm:$0xff]  ;;  %v146_v59 = vld [vmem:[%s5092_s5 + $0x18] sm:$0xff]  ;;  %s4386_s0 = smov 112   ;;  %vm1172_vm5 = vcmask 523264  }
   0x4   :  { %v3624_v28 = vld [vmem:[%s5090_s4] ss:$0 sm:$0xff]  ;;  %v144_v56 = vld [vmem:[%s5092_s5 + $0x8] sm:$0xff]  ;;  %v4166_v60 = vpack.c.bf16 %v146_v59, %v145_v57 }
   0x5   :  { %v65_v7 = vadd.f32 %v63_v2, %v59_v3  ;;  %v66_v8 = vadd.f32 %v64_v5, %v60_v6  ;;  %v107_v33 = vld [vmem:[%s5091_s1] sm:$0xff] }
   0x6   :  { %v143_v55 = vld [vmem:[%s5092_s5] sm:$0xff] }
   0x7   :  { %v68_v9 = vsel %vm67_vm0, %v65_v7, 0.0  ;;  %v71_v10 = vsel %vm67_vm0, %v66_v8, 0.0  ;;  %v4162_v58 = vpack.c.bf16 %v144_v56, %v143_v55 }
   0x8   :  { %69 = vadd.xlane.f32.xlu0 %v68_v9 }
   0x9   :  { %4163 = vmatprep.subr.bf16.mxu1 %v4162_v58 }
   0xa   :  { %4165 = vmatpush3.bf16.msra.mxu1 %v4162_v58 }
   0xb   :  { %4167 = vmatprep.subr.bf16.mxu1 %v4166_v60 }
   0xc   :  { %72 = vadd.xlane.f32.xlu0 %v71_v10 }
   0xe   :  { %4169 = vmatpush3.bf16.msra.mxu1 %v4166_v60 }
  0x95   :  { %v70_v11 = vpop.xlane.xlu0 %69 }
  0x96   :  { %v75_v12 = vmul.f32 0.03125, %v70_v11  ;;  %v4382_v11 = vmov 0.0  }
  0x97   :  { %3897 = vmatprep.subr.mxu1 %v4382_v11  ;;  %3907 = vmatprep.subr.mxu0 %v4382_v11 }
  0x98   :  { %v77_v13 = vsub.f32 %v65_v7, %v75_v12  ;;  %3909 = vmatprep.mubr.msk.f32.mxu0 %vm4383_vm1, %v4382_v11  ;;  %v3626_v12 = vld [vmem:[%s5093_s6] ss:$0 sm:$0xff] }
  0x99   :  { %v73_v14 = vpop.xlane.xlu0 %72 }
  0x9a   :  { %v76_v15 = vmul.f32 0.03125, %v73_v14  ;;  %v79_v16 = vmul.f32 %v77_v13, %v77_v13 }
  0x9c   :  { %v78_v17 = vsub.f32 %v66_v8, %v76_v15  ;;  %v81_v18 = vsel %vm67_vm0, %v79_v16, 0.0 }
  0x9d   :  { %82 = vadd.xlane.f32.xlu1 %v81_v18 }
  0x9e   :  { %v80_v19 = vmul.f32 %v78_v17, %v78_v17 }
  0xa0   :  { %v84_v20 = vsel %vm67_vm0, %v80_v19, 0.0 }
  0xa1   :  { %85 = vadd.xlane.f32.xlu1 %v84_v20 }
 0x12a   :  { %v83_v21 = vpop.xlane.xlu1 %82 }
 0x12b   :  { %v87_v22 = vmul.f32 0.03125, %v83_v21 }
 0x12d   :  { %v89_v23 = vadd.f32 1e-12, %v87_v22 }
 0x12e   :  { %v86_v24 = vpop.xlane.xlu1 %85 }
 0x12f   :  { %4290 = vrsqrt.f32 %v89_v23  ;;  %v88_v25 = vmul.f32 0.03125, %v86_v24 }
 0x131   :  { %v90_v26 = vadd.f32 1e-12, %v88_v25 }
 0x133   :  { %4292 = vrsqrt.f32 %v90_v26 }
 0x139   :  { %v4291_v27 = vpop.eup %4290 }
 0x13a   :  { %v93_v29 = vmul.f32 %v4291_v27, %v77_v13 }
 0x13c   :  { %v99_v31 = vmul.f32 %v3624_v28, %v93_v29 }
 0x13d   :  { %v4293_v32 = vpop.eup %4292 }
 0x13e   :  { %v105_v34 = vadd.f32 %v3625_v30, %v99_v31  ;;  %v94_v35 = vmul.f32 %v4293_v32, %v78_v17 }
 0x140   :  { %v109_v36 = vadd.f32 %v107_v33, %v105_v34  ;;  %v100_v37 = vmul.f32 %v3624_v28, %v94_v35 }
 0x142   :  { %v111_v39 = vadd.f32 %v109_v36, %v59_v3  ;;  %v106_v40 = vadd.f32 %v3625_v30, %v100_v37 }
 0x144   :  { %v113_v41 = vsel %vm67_vm0, %v111_v39, 0.0  ;;  %v110_v42 = vadd.f32 %v108_v38, %v106_v40 }
 0x145   :  { %114 = vadd.xlane.f32.xlu0 %v113_v41 }
 0x146   :  { %v112_v43 = vadd.f32 %v110_v42, %v60_v6 }
 0x148   :  { %v116_v44 = vsel %vm67_vm0, %v112_v43, 0.0 }
 0x149   :  { %117 = vadd.xlane.f32.xlu1 %v116_v44 }
 0x1d2   :  { %v115_v45 = vpop.xlane.xlu0 %114 }
 0x1d3   :  { %v119_v46 = vmul.f32 0.03125, %v115_v45 }
 0x1d5   :  { %v121_v47 = vsub.f32 %v111_v39, %v119_v46 }
 0x1d6   :  { %v118_v48 = vpop.xlane.xlu1 %117 }
 0x1d7   :  { %v120_v49 = vmul.f32 0.03125, %v118_v48  ;;  %v123_v50 = vmul.f32 %v121_v47, %v121_v47 }
 0x1d9   :  { %v122_v51 = vsub.f32 %v112_v43, %v120_v49  ;;  %v125_v52 = vsel %vm67_vm0, %v123_v50, 0.0 }
 0x1da   :  { %126 = vadd.xlane.f32.xlu0 %v125_v52 }
 0x1db   :  { %v124_v53 = vmul.f32 %v122_v51, %v122_v51 }
 0x1dd   :  { %v128_v54 = vsel %vm67_vm0, %v124_v53, 0.0 }
 0x1de   :  { %129 = vadd.xlane.f32.xlu1 %v128_v54 }
 0x267   :  { %v127_v61 = vpop.xlane.xlu0 %126 }
 0x268   :  { %v131_v62 = vmul.f32 0.03125, %v127_v61 }
 0x26a   :  { %v133_v63 = vadd.f32 1e-12, %v131_v62 }
 0x26b   :  { %v130_v0 = vpop.xlane.xlu1 %129 }
 0x26c   :  { %4294 = vrsqrt.f32 %v133_v63  ;;  %v132_v1 = vmul.f32 0.03125, %v130_v0 }
 0x26e   :  { %v134_v2 = vadd.f32 1e-12, %v132_v1 }
 0x270   :  { %4296 = vrsqrt.f32 %v134_v2 }
 0x276   :  { %v4295_v3 = vpop.eup %4294 }
 0x277   :  { %v137_v4 = vmul.f32 %v4295_v3, %v121_v47 }
 0x279   :  { %v139_v5 = vmul.f32 %v3624_v28, %v137_v4 }
 0x27a   :  { %v4297_v6 = vpop.eup %4296 }
 0x27b   :  { %v4517_v7 = vadd.f32 %v3625_v30, %v139_v5  ;;  %v138_v8 = vmul.f32 %v4297_v6, %v122_v51 }
 0x27d   :  { %3894 = vmatprep.mubr.msk.f32.mxu1 %vm67_vm0, %v4517_v7  ;;  %v140_v9 = vmul.f32 %v3624_v28, %v138_v8 }
 0x27f   :  { %v4521_v10 = vadd.f32 %v3625_v30, %v140_v9 }
 0x281   :  { %3895 = vmatmul.mubr.msk.f32.vlgmr.msra.gmra.mrb[0].mxu1 %vm67_vm0, %v4521_v10 }
 0x282   :  { %3899 = vmatprep.mubr.msk.f32.mxu1 %vm4383_vm1, %v4382_v11 }
 0x354   :  { %v3896_v13 = vpop.f32.mrb[0].mxu1 }
 0x355   :  { %v226_v14 = vpop.f32.mrb[1].mxu1  ;;  %v4540_v16 = vadd.f32 %v3896_v13, %v3626_v12 }
 0x356   :  { %v4534_v15 = vadd.f32 %v3626_v12, %v226_v14 }
 0x358   :  { %405 = vrot.lane.b32.xlu1 %v4534_v15, %s4384_s26  ;;  %236 = vrot.lane.b32.xlu0 %v4534_v15, %s4385_s27 }
 0x35c   :  { %403 = vrot.lane.b32.xlu1 %v4534_v15, %s4386_s0  ;;  %743 = vrot.lane.b32.xlu0 %v4540_v16, %s4384_s26 }
 0x360   :  { %576 = vrot.lane.b32.xlu1 %v4540_v16, %s4385_s27 }
 0x364   :  { %741 = vrot.lane.b32.xlu1 %v4540_v16, %s4386_s0 }
 0x3ca   :  { %v406_v17 = vpop.permute.xlu1 %405  ;;  %v237_v18 = vpop.permute.xlu0 %236 }
 0x3cb   :  { %3898 = vmatpush3.xpose.msk.msra.mxu1 %vm238_vm2, %v237_v18  ;;  %3908 = vmatpush3.xpose.msk.msra.mxu0 %vm238_vm2, %v406_v17 }
 0x3cc   :  { %3917 = vmatprep.subr.mxu0 %v4382_v11  ;;  %3902 = vmatprep.subr.mxu1 %v4382_v11 }
 0x3ce   :  { %v404_v19 = vpop.permute.xlu1 %403  ;;  %3900 = vmatmul.mubr.msk.f32.vlgmr.msra.gmra.mrb[2].mxu1 %vm238_vm2, %v4534_v15  ;;  %v744_v21 = vpop.permute.xlu0 %743 }
 0x3cf   :  { %3910 = vmatmul.mubr.msk.f32.vlgmr.msra.gmra.mrb[0].mxu0 %vm238_vm2, %v404_v19  ;;  %3904 = vmatprep.mubr.msk.f32.mxu1 %vm4383_vm1, %v4382_v11 }
 0x3d0   :  { %3919 = vmatprep.mubr.msk.f32.mxu0 %vm4383_vm1, %v4382_v11 }
 0x3d2   :  { %v577_v20 = vpop.permute.xlu1 %576 }
 0x3d3   :  { %3918 = vmatpush3.xpose.msk.msra.mxu0 %vm238_vm2, %v577_v20  ;;  %v914_v20 = vld [vmem:[%s5094_s7] sm:$0xff] }
 0x3d4   :  { %3927 = vmatprep.subr.mxu0 %v4382_v11 }
 0x3d6   :  { %3920 = vmatmul.mubr.msk.f32.vlgmr.msra.gmra.mrb[2].mxu0 %vm238_vm2, %v4540_v16  ;;  %v742_v22 = vpop.permute.xlu1 %741 }
 0x3d7   :  { %3928 = vmatpush3.xpose.msk.msra.mxu0 %vm238_vm2, %v744_v21  ;;  %3929 = vmatprep.mubr.msk.f32.mxu0 %vm4383_vm1, %v4382_v11  ;;  %v915_v21 = vld [vmem:[%s5094_s7 + $0x8] sm:$0xff] }
 0x3da   :  { %3930 = vmatmul.mubr.msk.f32.vlgmr.msra.gmra.mrb[4].mxu0 %vm238_vm2, %v742_v22  ;;  %v4170_v22 = vpack.c.bf16 %v915_v21, %v914_v20  ;;  %v1161_v21 = vld [vmem:[%s5098_s12 + $0x20] sm:$0xff] }
 0x3dc   :  { %4171 = vmatprep.subr.bf16.mxu0 %v4170_v22 }
 0x3dd   :  { %4173 = vmatpush3.bf16.msra.mxu0 %v4170_v22  ;;  %v1162_v22 = vld [vmem:[%s5098_s12 + $0x28] sm:$0xff] }
 0x4a1   :  { %v309_v23 = vpop.f32.mrb[2].mxu1 }
 0x4a2   :  { %v313_v24 = vmul.f32 0.25, %v309_v23  ;;  %v3901_v25 = vpop.f32.mrb[3].mxu1  ;;  %v477_v26 = vpop.f32.mrb[0].mxu0  ;;  %v916_v23 = vld [vmem:[%s5094_s7 + $0x10] sm:$0xff] }
 0x4a3   :  { %v481_v27 = vmul.f32 0.25, %v477_v26  ;;  %v3911_v28 = vpop.f32.mrb[1].mxu0 }
 0x4a4   :  { %v315_v29 = vsel %vm314_vm3, %v313_v24, -inf }
 0x4a5   :  { %316 = vmax.xlane.f32.xlu0 %v315_v29  ;;  %v482_v30 = vsel %vm314_vm3, %v481_v27, -inf }
 0x4a6   :  { %483 = vmax.xlane.f32.xlu1 %v482_v30 }
 0x4a9   :  { %v648_v31 = vpop.f32.mrb[2].mxu0 }
 0x4aa   :  { %v652_v32 = vmul.f32 0.25, %v648_v31  ;;  %v3921_v33 = vpop.f32.mrb[3].mxu0 }
 0x4ac   :  { %v653_v34 = vsel %vm314_vm3, %v652_v32, -inf }
 0x4ad   :  { %654 = vmax.xlane.f32.xlu0 %v653_v34  ;;  %v815_v35 = vpop.f32.mrb[4].mxu0 }
 0x4ae   :  { %v819_v36 = vmul.f32 0.25, %v815_v35  ;;  %v3931_v37 = vpop.f32.mrb[5].mxu0 }
 0x4b0   :  { %v820_v38 = vsel %vm314_vm3, %v819_v36, -inf }
 0x4b1   :  { %821 = vmax.xlane.f32.xlu0 %v820_v38 }
 0x532   :  { %v317_v39 = vpop.xlane.xlu0 %316 }
 0x533   :  { %v318_v40 = vsub.f32 %v313_v24, %v317_v39  ;;  %v484_v41 = vpop.xlane.xlu1 %483  ;;  %v917_v24 = vld [vmem:[%s5094_s7 + $0x18] sm:$0xff] }
 0x534   :  { %v485_v42 = vsub.f32 %v481_v27, %v484_v41  ;;  %v4174_v25 = vpack.c.bf16 %v917_v24, %v916_v23  ;;  %v4194_v23 = vpack.c.bf16 %v1162_v22, %v1161_v21  ;;  %v1163_v24 = vld [vmem:[%s5098_s12 + $0x30] sm:$0xff] }
 0x535   :  { %v319_v43 = vmul.f32 1.442695, %v318_v40 }
 0x536   :  { %v486_v44 = vmul.f32 1.442695, %v485_v42  ;;  %4175 = vmatprep.subr.bf16.mxu0 %v4174_v25 }
 0x537   :  { %4298 = vpow2.f32 %v319_v43  ;;  %4177 = vmatpush3.bf16.msra.mxu0 %v4174_v25  ;;  %v1164_v25 = vld [vmem:[%s5098_s12 + $0x38] sm:$0xff] }
 0x538   :  { %4300 = vpow2.f32 %v486_v44 }
 0x53a   :  { %v655_v45 = vpop.xlane.xlu0 %654 }
 0x53b   :  { %v656_v46 = vsub.f32 %v652_v32, %v655_v45  ;;  %v3641_v32 = vld [vmem:[%s5095_s8] ss:$0 sm:$0xff] }
 0x53d   :  { %v657_v47 = vmul.f32 1.442695, %v656_v46 }
 0x53e   :  { %v822_v54 = vpop.xlane.xlu0 %821 }
 0x53f   :  { %4302 = vpow2.f32 %v657_v47  ;;  %v823_v55 = vsub.f32 %v819_v36, %v822_v54 }
 0x541   :  { %v4299_v48 = vpop.eup %4298  ;;  %v824_v56 = vmul.f32 1.442695, %v823_v55 }
 0x542   :  { %v4301_v49 = vpop.eup %4300  ;;  %v321_v50 = vsel %vm314_vm3, %v4299_v48, 0.0 }
 0x543   :  { %322 = vadd.xlane.f32.xlu0 %v321_v50  ;;  %v488_v51 = vsel %vm314_vm3, %v4301_v49, 0.0  ;;  %4304 = vpow2.f32 %v824_v56  ;;  %v1048_v50 = vld [vmem:[%s5096_s10 + $0x8] sm:$0xff] }
 0x544   :  { %489 = vadd.xlane.f32.xlu1 %v488_v51 }
 0x549   :  { %v4303_v52 = vpop.eup %4302 }
 0x54a   :  { %v659_v53 = vsel %vm314_vm3, %v4303_v52, 0.0 }
 0x54b   :  { %660 = vadd.xlane.f32.xlu0 %v659_v53  ;;  %v1050_v53 = vld [vmem:[%s5096_s10 + $0x18] sm:$0xff] }
 0x54d   :  { %v4305_v57 = vpop.eup %4304 }
 0x54e   :  { %v826_v58 = vsel %vm314_vm3, %v4305_v57, 0.0 }
 0x555   :  { %493 = vrot.lane.b32.xlu1 %v4534_v15, %s4387_s2 }
 0x559   :  { %664 = vrot.lane.b32.xlu1 %v4540_v16, %s4388_s3 }
 0x561   :  { %326 = vrot.lane.b32.xlu0 %v4534_v15, %s4388_s3 }
 0x57d   :  { %827 = vadd.xlane.f32.xlu1 %v826_v58 }
 0x58e   :  { %831 = vrot.lane.b32.xlu1 %v4540_v16, %s4387_s2 }
 0x5d0   :  { %v323_v59 = vpop.xlane.xlu0 %322 }
 0x5d1   :  { %4306 = vrcp.f32 %v323_v59  ;;  %v490_v60 = vpop.xlane.xlu1 %489 }
 0x5d2   :  { %4308 = vrcp.f32 %v490_v60 }
 0x5d5   :  { %v494_v0 = vpop.permute.xlu1 %493 }
 0x5d8   :  { %v661_v61 = vpop.xlane.xlu0 %660 }
 0x5d9   :  { %4310 = vrcp.f32 %v661_v61  ;;  %v665_v4 = vpop.permute.xlu1 %664 }
 0x5db   :  { %v4307_v62 = vpop.eup %4306 }
 0x5dc   :  { %v325_v63 = vmul.f32 %v4307_v62, %v4299_v48  ;;  %v327_v1 = vpop.permute.xlu0 %326  ;;  %v4309_v2 = vpop.eup %4308 }
 0x5dd   :  { %3903 = vmatpush3.msra.mxu1 %v327_v1  ;;  %v492_v3 = vmul.f32 %v4309_v2, %v4301_v49 }
 0x5de   :  { %3905 = vmatmul.mubr.msk.f32.vlgmr.msra.gmra.mrb[4].mxu1 %vm314_vm3, %v325_v63  ;;  %3912 = vmatprep.subr.mxu1 %v4382_v11 }
 0x5df   :  { %3913 = vmatpush3.msra.mxu1 %v494_v0  ;;  %3914 = vmatprep.mubr.msk.f32.mxu1 %vm4383_vm1, %v4382_v11  ;;  %v1006_v0 = vld [vmem:[%s5097_s9] sm:$0x3] }
 0x5e0   :  { %3922 = vmatprep.subr.mxu1 %v4382_v11 }
 0x5e2   :  { %3915 = vmatmul.mubr.msk.f32.vlgmr.msra.gmra.mrb[6].mxu1 %vm314_vm3, %v492_v3 }
 0x5e3   :  { %v4311_v5 = vpop.eup %4310  ;;  %3923 = vmatpush3.msra.mxu1 %v665_v4  ;;  %3924 = vmatprep.mubr.msk.f32.mxu1 %vm4383_vm1, %v4382_v11 }
 0x5e4   :  { %v663_v6 = vmul.f32 %v4311_v5, %v4303_v52  ;;  %3932 = vmatprep.subr.mxu1 %v4382_v11  ;;  %v1049_v52 = vld [vmem:[%s5096_s10 + $0x10] sm:$0xff] }
 0x5e5   :  { %v4182_v54 = vpack.c.bf16 %v1050_v53, %v1049_v52 }
 0x5e6   :  { %3925 = vmatmul.mubr.msk.f32.vlgmr.msra.gmra.mrb[8].mxu1 %vm314_vm3, %v663_v6 }
 0x5e7   :  { %3934 = vmatprep.mubr.msk.f32.mxu1 %vm4383_vm1, %v4382_v11 }
 0x60a   :  { %v828_v8 = vpop.xlane.xlu1 %827 }
 0x60b   :  { %4312 = vrcp.f32 %v828_v8 }
 0x60e   :  { %v832_v9 = vpop.permute.xlu1 %831 }
 0x60f   :  { %3933 = vmatpush3.msra.mxu1 %v832_v9 }
 0x615   :  { %v4313_v12 = vpop.eup %4312 }
 0x616   :  { %v830_v13 = vmul.f32 %v4313_v12, %v4305_v57  ;;  %v1035_v57 = vlaneseq }
 0x618   :  { %3935 = vmatmul.mubr.msk.f32.vlgmr.msra.gmra.mrb[10].mxu1 %vm314_vm3, %v830_v13  ;;  %v1036_v61 = vshrl.u32 %v1035_v57, 7 }
 0x61a   :  { %v4639_v63 = vsub.s32 0, %v1036_v61  ;;  %v4644_v1 = vsub.s32 1, %v1036_v61 }
 0x61c   :  { %v1038_v2 = vrot.slane %v1006_v0, %v4639_v63  ;;  %v1044_v5 = vrot.slane %v1006_v0, %v4644_v1 }
 0x6b1   :  { %v398_v14 = vpop.f32.mrb[4].mxu1 }
 0x6b2   :  { %402 = vst.msk [vmem:[#allocation2] sm:$0xff] %vm238_vm2, %v398_v14  ;;  %v3906_v15 = vpop.f32.mrb[5].mxu1 }
 0x6b3   :  { %v1157_v15 = vld [vmem:[%s5098_s12] sm:$0xff] }
 0x6b5   :  { %v565_v16 = vpop.f32.mrb[6].mxu1 }
 0x6b6   :  { %570 = vrot.lane.b32.xlu0 %v565_v16, %s4389_s28  ;;  %v3916_v17 = vpop.f32.mrb[7].mxu1  ;;  %v1158_v16 = vld [vmem:[%s5098_s12 + $0x8] sm:$0xff] }
 0x6b7   :  { %v4186_v17 = vpack.c.bf16 %v1158_v16, %v1157_v15 }
 0x6b9   :  { %v736_v18 = vpop.f32.mrb[8].mxu1  ;;  %4187 = vmatprep.subr.bf16.mxu0 %v4186_v17 }
 0x6ba   :  { %740 = vst.msk [vmem:[#allocation2 + $0x8] sm:$0xff] %vm238_vm2, %v736_v18  ;;  %v3926_v19 = vpop.f32.mrb[9].mxu1  ;;  %v1159_v18 = vld [vmem:[%s5098_s12 + $0x10] sm:$0xff] }
 0x6bb   :  { %v1160_v19 = vld [vmem:[%s5098_s12 + $0x18] sm:$0xff] }
 0x6bc   :  { %v4190_v20 = vpack.c.bf16 %v1160_v19, %v1159_v18 }
 0x6eb   :  { %v903_v26 = vpop.f32.mrb[10].mxu1 }
 0x6ec   :  { %908 = vrot.lane.b32.xlu1 %v903_v26, %s4389_s28  ;;  %v3936_v27 = vpop.f32.mrb[11].mxu1  ;;  %v4198_v26 = vpack.c.bf16 %v1164_v25, %v1163_v24 }
 0x6ed   :  { %v3644_v27 = vld [vmem:[%s5099_s11] ss:$0 sm:$0xff] }
 0x728   :  { %v571_v28 = vpop.permute.xlu0 %570 }
 0x729   :  { %574 = vst.msk [vmem:[#allocation2] sm:$0xff] %vm573_vm4, %v571_v28 }
 0x730   :  { %v912_v29 = vld [vmem:[#allocation2] sm:$0xff] }
 0x731   :  { %3945 = vmatprep.mubr.msk.f32.mxu0 %vm67_vm0, %v912_v29 }
 0x75e   :  { %v909_v30 = vpop.permute.xlu1 %908 }
 0x75f   :  { %911 = vst.msk [vmem:[#allocation2 + $0x8] sm:$0xff] %vm573_vm4, %v909_v30 }
 0x766   :  { %v913_v31 = vld [vmem:[#allocation2 + $0x8] sm:$0xff] }
 0x767   :  { %3946 = vmatmul.mubr.msk.f32.vlgmr.msra.gmra.mrb[6].mxu0 %vm67_vm0, %v913_v31 }
 0x768   :  { %4189 = vmatpush3.bf16.msra.mxu0 %v4186_v17 }
 0x769   :  { %4191 = vmatprep.subr.bf16.mxu0 %v4190_v20 }
 0x76c   :  { %4193 = vmatpush3.bf16.msra.mxu0 %v4190_v20  ;;  %v1254_v20 = vld [vmem:[%s5101_s14] sm:$0x3] }
 0x76d   :  { %4195 = vmatprep.subr.bf16.mxu0 %v4194_v23  ;;  %v1286_v21 = vrot.slane %v1254_v20, %v4639_v63  ;;  %v1292_v25 = vrot.slane %v1254_v20, %v4644_v1 }
 0x770   :  { %4197 = vmatpush3.bf16.msra.mxu0 %v4194_v23 }
 0x771   :  { %4199 = vmatprep.subr.bf16.mxu0 %v4198_v26 }
 0x774   :  { %4201 = vmatpush3.bf16.msra.mxu0 %v4198_v26 }
 0x775   :  { %3999 = vmatprep.subr.mxu0 %v4382_v11 }
 0x83a   :  { %v3947_v33 = vpop.f32.mrb[6].mxu0 }
 0x83b   :  { %v1003_v34 = vadd.f32 %v3947_v33, %v3641_v32  ;;  %v997_v35 = vpop.f32.mrb[7].mxu0 }
 0x83c   :  { %v998_v36 = vadd.f32 %v3641_v32, %v997_v35 }
 0x83d   :  { %v1008_v37 = vadd.f32 %v1003_v34, %v4521_v10 }
 0x83e   :  { %v1007_v38 = vadd.f32 %v998_v36, %v4517_v7  ;;  %v1047_v7 = vld [vmem:[%s5096_s10] sm:$0xff] }
 0x83f   :  { %v1012_v39 = vsel %vm67_vm0, %v1008_v37, 0.0  ;;  %v4178_v51 = vpack.c.bf16 %v1048_v50, %v1047_v7 }
 0x840   :  { %1013 = vadd.xlane.f32.xlu1 %v1012_v39  ;;  %v1009_v40 = vsel %vm67_vm0, %v1007_v38, 0.0 }
 0x841   :  { %1010 = vadd.xlane.f32.xlu0 %v1009_v40  ;;  %4179 = vmatprep.subr.bf16.mxu1 %v4178_v51 }
 0x842   :  { %4181 = vmatpush3.bf16.msra.mxu1 %v4178_v51 }
 0x843   :  { %4183 = vmatprep.subr.bf16.mxu1 %v4182_v54 }
 0x846   :  { %4185 = vmatpush3.bf16.msra.mxu1 %v4182_v54 }
 0x8cd   :  { %v1014_v41 = vpop.xlane.xlu1 %1013 }
 0x8ce   :  { %v1016_v42 = vmul.f32 0.03125, %v1014_v41  ;;  %v1011_v43 = vpop.xlane.xlu0 %1010 }
 0x8cf   :  { %v1015_v44 = vmul.f32 0.03125, %v1011_v43 }
 0x8d0   :  { %v1018_v45 = vsub.f32 %v1008_v37, %v1016_v42 }
 0x8d1   :  { %v1017_v46 = vsub.f32 %v1007_v38, %v1015_v44 }
 0x8d2   :  { %v1020_v49 = vmul.f32 %v1018_v45, %v1018_v45 }
 0x8d3   :  { %v1019_v47 = vmul.f32 %v1017_v46, %v1017_v46 }
 0x8d4   :  { %v1024_v10 = vsel %vm67_vm0, %v1020_v49, 0.0 }
 0x8d5   :  { %v1021_v48 = vsel %vm67_vm0, %v1019_v47, 0.0 }
 0x8d6   :  { %1022 = vadd.xlane.f32.xlu0 %v1021_v48 }
 0x8da   :  { %1025 = vadd.xlane.f32.xlu0 %v1024_v10  ;;  %v3647_v10 = vld [vmem:[%s5100_s13] ss:$0 sm:$0xff] }
 0x963   :  { %v1023_v55 = vpop.xlane.xlu0 %1022 }
 0x964   :  { %v1027_v56 = vmul.f32 0.03125, %v1023_v55 }
 0x966   :  { %v1029_v58 = vadd.f32 1e-12, %v1027_v56 }
 0x967   :  { %v1026_v59 = vpop.xlane.xlu0 %1025 }
 0x968   :  { %4314 = vrsqrt.f32 %v1029_v58  ;;  %v1028_v60 = vmul.f32 0.03125, %v1026_v59 }
 0x96a   :  { %v1030_v62 = vadd.f32 1e-12, %v1028_v60 }
 0x96c   :  { %4316 = vrsqrt.f32 %v1030_v62 }
 0x972   :  { %v4315_v3 = vpop.eup %4314 }
 0x973   :  { %v1033_v4 = vmul.f32 %v4315_v3, %v1017_v46 }
 0x975   :  { %v1039_v6 = vmul.f32 %v1038_v2, %v1033_v4 }
 0x976   :  { %v4317_v8 = vpop.eup %4316 }
 0x977   :  { %v1034_v9 = vmul.f32 %v4317_v8, %v1018_v45  ;;  %v4648_v12 = vadd.f32 %v1044_v5, %v1039_v6  ;;  %v3651_v6 = vld [vmem:[%s5092_s5 + $0x28] sm:$0xff] }
 0x979   :  { %v1040_v13 = vmul.f32 %v1038_v2, %v1034_v9  ;;  %3956 = vmatprep.mubr.msk.f32.mxu1 %vm67_vm0, %v4648_v12  ;;  %v3652_v9 = vld [vmem:[%s5092_s5 + $0x30] sm:$0xff] }
 0x97b   :  { %v1046_v14 = vadd.f32 %v1044_v5, %v1040_v13  ;;  %v3650_v5 = vld [vmem:[%s5092_s5 + $0x20] sm:$0xff] }
 0x97c   :  { %v4202_v8 = vpack.c.bf16 %v3651_v6, %v3650_v5 }
 0x97d   :  { %3957 = vmatmul.mubr.msk.f32.vlgmr.msra.gmra.mrb[12].mxu1 %vm67_vm0, %v1046_v14 }
 0x97e   :  { %4203 = vmatprep.subr.bf16.mxu1 %v4202_v8 }
 0x97f   :  { %4205 = vmatpush3.bf16.msra.mxu1 %v4202_v8 }
 0xa50   :  { %v3958_v28 = vpop.f32.mrb[12].mxu1 }
 0xa51   :  { %v1136_v29 = vadd.f32 %v3958_v28, %v3644_v27  ;;  %v1130_v30 = vpop.f32.mrb[13].mxu1 }
 0xa52   :  { %v1131_v31 = vadd.f32 %v3644_v27, %v1130_v30 }
 0xa53   :  { %v1142_v32 = vmul.f32 0.044715, %v1136_v29  ;;  %v1140_v47 = vmul.f32 0.5, %v1136_v29 }
 0xa54   :  { %v1141_v33 = vmul.f32 0.044715, %v1131_v31  ;;  %v1139_v45 = vmul.f32 0.5, %v1131_v31 }
 0xa55   :  { %v1144_v34 = vmul.f32 %v1142_v32, %v1136_v29 }
 0xa56   :  { %v1143_v35 = vmul.f32 %v1141_v33, %v1131_v31 }
 0xa57   :  { %v1146_v36 = vmul.f32 %v1144_v34, %v1136_v29 }
 0xa58   :  { %v1145_v37 = vmul.f32 %v1143_v35, %v1131_v31 }
 0xa59   :  { %v1148_v38 = vadd.f32 %v1146_v36, %v1136_v29 }
 0xa5a   :  { %v1147_v39 = vadd.f32 %v1145_v37, %v1131_v31  ;;  %v3655_v31 = vld [vmem:[%s5093_s6 + $0x1] ss:$0 sm:$0xff] }
 0xa5b   :  { %v1150_v40 = vmul.f32 0.7978846, %v1148_v38 }
 0xa5c   :  { %v1149_v41 = vmul.f32 0.7978846, %v1147_v39 }
 0xa5d   :  { %4318 = vtanh.f32 %v1150_v40 }
 0xa5e   :  { %4320 = vtanh.f32 %v1149_v41 }
 0xa67   :  { %v4319_v42 = vpop.eup %4318 }
 0xa68   :  { %v4321_v43 = vpop.eup %4320  ;;  %v1154_v44 = vadd.f32 1.0, %v4319_v42 }
 0xa69   :  { %v1153_v46 = vadd.f32 1.0, %v4321_v43 }
 0xa6a   :  { %v1156_v49 = vmul.f32 %v1154_v44, %v1140_v47 }
 0xa6b   :  { %v1155_v48 = vmul.f32 %v1153_v46, %v1139_v45 }
 0xa6d   :  { %3975 = vmatprep.mubr.msk.f32.mxu0 %vm1172_vm5, %v1155_v48 }
 0xa6e   :  { %3976 = vmatmul.mubr.msk.f32.vlgmr.msra.gmra.mrb[8].mxu0 %vm1172_vm5, %v1156_v49 }
 0xa6f   :  { %4001 = vmatprep.mubr.msk.f32.mxu0 %vm4383_vm1, %v4382_v11 }
 0xb41   :  { %v3977_v7 = vpop.f32.mrb[8].mxu0 }
 0xb42   :  { %v1251_v50 = vadd.f32 %v3977_v7, %v3647_v10  ;;  %v1245_v51 = vpop.f32.mrb[9].mxu0 }
 0xb43   :  { %v1246_v52 = vadd.f32 %v3647_v10, %v1245_v51 }
 0xb44   :  { %v1256_v53 = vadd.f32 %v1251_v50, %v1046_v14 }
 0xb45   :  { %v1255_v54 = vadd.f32 %v1246_v52, %v4648_v12  ;;  %v3653_v12 = vld [vmem:[%s5092_s5 + $0x38] sm:$0xff] }
 0xb46   :  { %v1260_v55 = vsel %vm67_vm0, %v1256_v53, 0.0  ;;  %v4206_v13 = vpack.c.bf16 %v3653_v12, %v3652_v9 }
 0xb47   :  { %1261 = vadd.xlane.f32.xlu1 %v1260_v55  ;;  %v1257_v56 = vsel %vm67_vm0, %v1255_v54, 0.0 }
 0xb48   :  { %1258 = vadd.xlane.f32.xlu0 %v1257_v56  ;;  %4207 = vmatprep.subr.bf16.mxu1 %v4206_v13 }
 0xb49   :  { %4209 = vmatpush3.bf16.msra.mxu1 %v4206_v13 }
 0xb4a   :  { %3989 = vmatprep.subr.mxu1 %v4382_v11 }
 0xbd4   :  { %v1262_v57 = vpop.xlane.xlu1 %1261 }
 0xbd5   :  { %v1264_v58 = vmul.f32 0.03125, %v1262_v57  ;;  %v1259_v59 = vpop.xlane.xlu0 %1258 }
 0xbd6   :  { %v1263_v60 = vmul.f32 0.03125, %v1259_v59 }
 0xbd7   :  { %v1266_v61 = vsub.f32 %v1256_v53, %v1264_v58 }
 0xbd8   :  { %v1265_v62 = vsub.f32 %v1255_v54, %v1263_v60 }
 0xbd9   :  { %v1268_v0 = vmul.f32 %v1266_v61, %v1266_v61 }
 0xbda   :  { %v1267_v2 = vmul.f32 %v1265_v62, %v1265_v62 }
 0xbdb   :  { %v1272_v3 = vsel %vm67_vm0, %v1268_v0, 0.0 }
 0xbdc   :  { %1273 = vadd.xlane.f32.xlu1 %v1272_v3  ;;  %v1269_v4 = vsel %vm67_vm0, %v1267_v2, 0.0 }
 0xbdd   :  { %1270 = vadd.xlane.f32.xlu0 %v1269_v4 }
 0xc69   :  { %v1274_v14 = vpop.xlane.xlu1 %1273 }
 0xc6a   :  { %v1276_v15 = vmul.f32 0.03125, %v1274_v14  ;;  %v1271_v16 = vpop.xlane.xlu0 %1270 }
 0xc6b   :  { %v1275_v17 = vmul.f32 0.03125, %v1271_v16 }
 0xc6c   :  { %v1278_v18 = vadd.f32 1e-12, %v1276_v15 }
 0xc6d   :  { %v1277_v19 = vadd.f32 1e-12, %v1275_v17 }
 0xc6e   :  { %4322 = vrsqrt.f32 %v1278_v18 }
 0xc6f   :  { %4324 = vrsqrt.f32 %v1277_v19 }
 0xc78   :  { %v4323_v22 = vpop.eup %4322 }
 0xc79   :  { %v4325_v23 = vpop.eup %4324  ;;  %v1282_v24 = vmul.f32 %v4323_v22, %v1266_v61 }
 0xc7a   :  { %v1281_v26 = vmul.f32 %v4325_v23, %v1265_v62 }
 0xc7b   :  { %v1288_v27 = vmul.f32 %v1286_v21, %v1282_v24 }
 0xc7c   :  { %v1287_v28 = vmul.f32 %v1286_v21, %v1281_v26 }
 0xc7d   :  { %v4711_v29 = vadd.f32 %v1292_v25, %v1288_v27 }
 0xc7e   :  { %v4713_v30 = vadd.f32 %v1292_v25, %v1287_v28 }
 0xc7f   :  { %1296 = vst.msk [vmem:[%s5102_s15 + $0x8] sm:$0xff] %vm67_vm0, %v4711_v29 }
 0xc80   :  { %1295 = vst.msk [vmem:[%s5102_s15] sm:$0xff] %vm67_vm0, %v4713_v30  ;;  %3986 = vmatprep.mubr.msk.f32.mxu1 %vm67_vm0, %v4713_v30 }
 0xc81   :  { %3987 = vmatmul.mubr.msk.f32.vlgmr.msra.gmra.mrb[14].mxu1 %vm67_vm0, %v4711_v29 }
 0xc82   :  { %3991 = vmatprep.mubr.msk.f32.mxu1 %vm4383_vm1, %v4382_v11 }
 0xd54   :  { %v3988_v32 = vpop.f32.mrb[14].mxu1 }
 0xd55   :  { %v1382_v33 = vpop.f32.mrb[15].mxu1  ;;  %v4740_v35 = vadd.f32 %v3988_v32, %v3655_v31 }
 0xd56   :  { %v4734_v34 = vadd.f32 %v3655_v31, %v1382_v33 }
 0xd58   :  { %1559 = vrot.lane.b32.xlu1 %v4734_v34, %s4384_s26  ;;  %1392 = vrot.lane.b32.xlu0 %v4734_v34, %s4385_s27 }
 0xd5c   :  { %1557 = vrot.lane.b32.xlu1 %v4734_v34, %s4386_s0  ;;  %1896 = vrot.lane.b32.xlu0 %v4740_v35, %s4384_s26 }
 0xd60   :  { %1729 = vrot.lane.b32.xlu1 %v4740_v35, %s4385_s27 }
 0xd64   :  { %1894 = vrot.lane.b32.xlu1 %v4740_v35, %s4386_s0 }
 0xdca   :  { %v1560_v36 = vpop.permute.xlu1 %1559  ;;  %v1393_v37 = vpop.permute.xlu0 %1392 }
 0xdcb   :  { %3990 = vmatpush3.xpose.msk.msra.mxu1 %vm238_vm2, %v1393_v37  ;;  %4000 = vmatpush3.xpose.msk.msra.mxu0 %vm238_vm2, %v1560_v36 }
 0xdcc   :  { %4009 = vmatprep.subr.mxu0 %v4382_v11  ;;  %3994 = vmatprep.subr.mxu1 %v4382_v11 }
 0xdce   :  { %v1558_v38 = vpop.permute.xlu1 %1557  ;;  %3992 = vmatmul.mubr.msk.f32.vlgmr.msra.gmra.mrb[16].mxu1 %vm238_vm2, %v4734_v34  ;;  %v1897_v40 = vpop.permute.xlu0 %1896 }
 0xdcf   :  { %4002 = vmatmul.mubr.msk.f32.vlgmr.msra.gmra.mrb[10].mxu0 %vm238_vm2, %v1558_v38  ;;  %3996 = vmatprep.mubr.msk.f32.mxu1 %vm4383_vm1, %v4382_v11 }
 0xdd0   :  { %4011 = vmatprep.mubr.msk.f32.mxu0 %vm4383_vm1, %v4382_v11 }
 0xdd2   :  { %v1730_v39 = vpop.permute.xlu1 %1729 }
 0xdd3   :  { %4010 = vmatpush3.xpose.msk.msra.mxu0 %vm238_vm2, %v1730_v39 }
 0xdd4   :  { %4019 = vmatprep.subr.mxu0 %v4382_v11 }
 0xdd6   :  { %4012 = vmatmul.mubr.msk.f32.vlgmr.msra.gmra.mrb[12].mxu0 %vm238_vm2, %v4740_v35  ;;  %v1895_v41 = vpop.permute.xlu1 %1894 }
 0xdd7   :  { %4020 = vmatpush3.xpose.msk.msra.mxu0 %vm238_vm2, %v1897_v40  ;;  %4021 = vmatprep.mubr.msk.f32.mxu0 %vm4383_vm1, %v4382_v11 }
 0xdda   :  { %4022 = vmatmul.mubr.msk.f32.vlgmr.msra.gmra.mrb[14].mxu0 %vm238_vm2, %v1895_v41  ;;  %v3670_v41 = vld [vmem:[%s5094_s7 + $0x20] sm:$0xff] }
 0xea1   :  { %v1464_v42 = vpop.f32.mrb[16].mxu1 }
 0xea2   :  { %v1468_v43 = vmul.f32 0.25, %v1464_v42  ;;  %v3993_v44 = vpop.f32.mrb[17].mxu1  ;;  %v1631_v45 = vpop.f32.mrb[10].mxu0  ;;  %v3671_v42 = vld [vmem:[%s5094_s7 + $0x28] sm:$0xff] }
 0xea3   :  { %v1635_v46 = vmul.f32 0.25, %v1631_v45  ;;  %v4003_v47 = vpop.f32.mrb[11].mxu0  ;;  %v3672_v44 = vld [vmem:[%s5094_s7 + $0x30] sm:$0xff]  ;;  %v3673_v45 = vld [vmem:[%s5094_s7 + $0x38] sm:$0xff] }
 0xea4   :  { %v1469_v48 = vsel %vm314_vm3, %v1468_v43, -inf }
 0xea5   :  { %1470 = vmax.xlane.f32.xlu0 %v1469_v48  ;;  %v1636_v49 = vsel %vm314_vm3, %v1635_v46, -inf }
 0xea6   :  { %1637 = vmax.xlane.f32.xlu1 %v1636_v49 }
 0xea9   :  { %v1801_v10 = vpop.f32.mrb[12].mxu0 }
 0xeaa   :  { %v1805_v7 = vmul.f32 0.25, %v1801_v10  ;;  %v4013_v50 = vpop.f32.mrb[13].mxu0 }
 0xeac   :  { %v1806_v51 = vsel %vm314_vm3, %v1805_v7, -inf }
 0xead   :  { %1807 = vmax.xlane.f32.xlu0 %v1806_v51  ;;  %v1968_v52 = vpop.f32.mrb[14].mxu0  ;;  %v3675_v51 = vld [vmem:[%s5095_s8 + $0x1] ss:$0 sm:$0xff] }
 0xeae   :  { %v1972_v53 = vmul.f32 0.25, %v1968_v52  ;;  %v4023_v54 = vpop.f32.mrb[15].mxu0 }
 0xeb0   :  { %v1973_v55 = vsel %vm314_vm3, %v1972_v53, -inf }
 0xeb1   :  { %1974 = vmax.xlane.f32.xlu0 %v1973_v55 }
 0xf32   :  { %v1471_v56 = vpop.xlane.xlu0 %1470 }
 0xf33   :  { %v1472_v57 = vsub.f32 %v1468_v43, %v1471_v56  ;;  %v1638_v58 = vpop.xlane.xlu1 %1637  ;;  %v4210_v43 = vpack.c.bf16 %v3671_v42, %v3670_v41  ;;  %v3692_v41 = vld [vmem:[%s5098_s12 + $0x68] sm:$0xff] }
 0xf34   :  { %v1639_v59 = vsub.f32 %v1635_v46, %v1638_v58  ;;  %v4214_v46 = vpack.c.bf16 %v3673_v45, %v3672_v44  ;;  %v3694_v44 = vld [vmem:[%s5098_s12 + $0x78] sm:$0xff] }
 0xf35   :  { %v1473_v60 = vmul.f32 1.442695, %v1472_v57  ;;  %4211 = vmatprep.subr.bf16.mxu0 %v4210_v43 }
 0xf36   :  { %v1640_v61 = vmul.f32 1.442695, %v1639_v59  ;;  %4213 = vmatpush3.bf16.msra.mxu0 %v4210_v43  ;;  %v3693_v43 = vld [vmem:[%s5098_s12 + $0x70] sm:$0xff] }
 0xf37   :  { %4326 = vpow2.f32 %v1473_v60  ;;  %4215 = vmatprep.subr.bf16.mxu0 %v4214_v46  ;;  %v4238_v45 = vpack.c.bf16 %v3694_v44, %v3693_v43 }
 0xf38   :  { %4328 = vpow2.f32 %v1640_v61 }
 0xf3a   :  { %v1808_v62 = vpop.xlane.xlu0 %1807  ;;  %4217 = vmatpush3.bf16.msra.mxu0 %v4214_v46  ;;  %v3684_v46 = vld [vmem:[%s5099_s11 + $0x1] ss:$0 sm:$0xff] }
 0xf3b   :  { %v1809_v0 = vsub.f32 %v1805_v7, %v1808_v62 }
 0xf3d   :  { %v1810_v2 = vmul.f32 1.442695, %v1809_v0 }
 0xf3e   :  { %v1975_v12 = vpop.xlane.xlu0 %1974 }
 0xf3f   :  { %4330 = vpow2.f32 %v1810_v2  ;;  %v1976_v13 = vsub.f32 %v1972_v53, %v1975_v12  ;;  %v3681_v12 = vld [vmem:[%s5096_s10 + $0x30] sm:$0xff] }
 0xf41   :  { %v4327_v3 = vpop.eup %4326  ;;  %v1977_v14 = vmul.f32 1.442695, %v1976_v13  ;;  %v3682_v13 = vld [vmem:[%s5096_s10 + $0x38] sm:$0xff] }
 0xf42   :  { %v4329_v4 = vpop.eup %4328  ;;  %v1475_v5 = vsel %vm314_vm3, %v4327_v3, 0.0 }
 0xf43   :  { %1476 = vadd.xlane.f32.xlu0 %v1475_v5  ;;  %v1642_v6 = vsel %vm314_vm3, %v4329_v4, 0.0  ;;  %4332 = vpow2.f32 %v1977_v14  ;;  %v4222_v14 = vpack.c.bf16 %v3682_v13, %v3681_v12 }
 0xf44   :  { %1643 = vadd.xlane.f32.xlu1 %v1642_v6 }
 0xf49   :  { %v4331_v8 = vpop.eup %4330 }
 0xf4a   :  { %v1812_v9 = vsel %vm314_vm3, %v4331_v8, 0.0 }
 0xf4b   :  { %1813 = vadd.xlane.f32.xlu0 %v1812_v9 }
 0xf4d   :  { %v4333_v15 = vpop.eup %4332 }
 0xf4e   :  { %v1979_v16 = vsel %vm314_vm3, %v4333_v15, 0.0 }
 0xf55   :  { %1647 = vrot.lane.b32.xlu1 %v4734_v34, %s4387_s2 }
 0xf59   :  { %1817 = vrot.lane.b32.xlu1 %v4740_v35, %s4388_s3 }
 0xf61   :  { %1480 = vrot.lane.b32.xlu0 %v4734_v34, %s4388_s3 }
 0xf7d   :  { %1980 = vadd.xlane.f32.xlu1 %v1979_v16 }
 0xf8e   :  { %1984 = vrot.lane.b32.xlu1 %v4740_v35, %s4387_s2 }
 0xfd0   :  { %v1477_v17 = vpop.xlane.xlu0 %1476 }
 0xfd1   :  { %4334 = vrcp.f32 %v1477_v17  ;;  %v1644_v18 = vpop.xlane.xlu1 %1643 }
 0xfd2   :  { %4336 = vrcp.f32 %v1644_v18 }
 0xfd5   :  { %v1648_v22 = vpop.permute.xlu1 %1647 }
 0xfd8   :  { %v1814_v19 = vpop.xlane.xlu0 %1813 }
 0xfd9   :  { %4338 = vrcp.f32 %v1814_v19  ;;  %v1818_v26 = vpop.permute.xlu1 %1817 }
 0xfdb   :  { %v4335_v20 = vpop.eup %4334 }
 0xfdc   :  { %v1479_v21 = vmul.f32 %v4335_v20, %v4327_v3  ;;  %v1481_v23 = vpop.permute.xlu0 %1480  ;;  %v4337_v24 = vpop.eup %4336 }
 0xfdd   :  { %3995 = vmatpush3.msra.mxu1 %v1481_v23  ;;  %v1646_v25 = vmul.f32 %v4337_v24, %v4329_v4 }
 0xfde   :  { %3997 = vmatmul.mubr.msk.f32.vlgmr.msra.gmra.mrb[18].mxu1 %vm314_vm3, %v1479_v21  ;;  %4004 = vmatprep.subr.mxu1 %v4382_v11  ;;  %v3678_v21 = vld [vmem:[%s5097_s9 + $0x2] sm:$0x3] }
 0xfdf   :  { %4005 = vmatpush3.msra.mxu1 %v1648_v22  ;;  %4006 = vmatprep.mubr.msk.f32.mxu1 %vm4383_vm1, %v4382_v11  ;;  %v2194_v22 = vrot.slane %v3678_v21, %v4639_v63 }
 0xfe0   :  { %4014 = vmatprep.subr.mxu1 %v4382_v11 }
 0xfe2   :  { %4007 = vmatmul.mubr.msk.f32.vlgmr.msra.gmra.mrb[20].mxu1 %vm314_vm3, %v1646_v25  ;;  %v2200_v25 = vrot.slane %v3678_v21, %v4644_v1 }
 0xfe3   :  { %v4339_v27 = vpop.eup %4338  ;;  %4015 = vmatpush3.msra.mxu1 %v1818_v26  ;;  %4016 = vmatprep.mubr.msk.f32.mxu1 %vm4383_vm1, %v4382_v11 }
 0xfe4   :  { %v1816_v28 = vmul.f32 %v4339_v27, %v4331_v8  ;;  %4024 = vmatprep.subr.mxu1 %v4382_v11  ;;  %v3680_v8 = vld [vmem:[%s5096_s10 + $0x28] sm:$0xff] }
 0xfe6   :  { %4017 = vmatmul.mubr.msk.f32.vlgmr.msra.gmra.mrb[22].mxu1 %vm314_vm3, %v1816_v28 }
 0xfe7   :  { %4026 = vmatprep.mubr.msk.f32.mxu1 %vm4383_vm1, %v4382_v11 }
0x100a   :  { %v1981_v31 = vpop.xlane.xlu1 %1980 }
0x100b   :  { %4340 = vrcp.f32 %v1981_v31 }
0x100e   :  { %v1985_v32 = vpop.permute.xlu1 %1984 }
0x100f   :  { %4025 = vmatpush3.msra.mxu1 %v1985_v32 }
0x1015   :  { %v4341_v33 = vpop.eup %4340 }
0x1016   :  { %v1983_v34 = vmul.f32 %v4341_v33, %v4333_v15 }
0x1018   :  { %4027 = vmatmul.mubr.msk.f32.vlgmr.msra.gmra.mrb[24].mxu1 %vm314_vm3, %v1983_v34  ;;  %v3687_v34 = vld [vmem:[%s5098_s12 + $0x40] sm:$0xff] }
0x10b1   :  { %v1552_v35 = vpop.f32.mrb[18].mxu1 }
0x10b2   :  { %1556 = vst.msk [vmem:[#allocation2] sm:$0xff] %vm238_vm2, %v1552_v35  ;;  %v3998_v36 = vpop.f32.mrb[19].mxu1  ;;  %v3688_v35 = vld [vmem:[%s5098_s12 + $0x48] sm:$0xff] }
0x10b3   :  { %v4226_v36 = vpack.c.bf16 %v3688_v35, %v3687_v34 }
0x10b5   :  { %v1719_v37 = vpop.f32.mrb[20].mxu1  ;;  %4227 = vmatprep.subr.bf16.mxu0 %v4226_v36 }
0x10b6   :  { %1724 = vrot.lane.b32.xlu0 %v1719_v37, %s4389_s28  ;;  %v4008_v38 = vpop.f32.mrb[21].mxu1  ;;  %v3689_v37 = vld [vmem:[%s5098_s12 + $0x50] sm:$0xff] }
0x10b7   :  { %v3690_v38 = vld [vmem:[%s5098_s12 + $0x58] sm:$0xff] }
0x10b9   :  { %v1889_v39 = vpop.f32.mrb[22].mxu1 }
0x10ba   :  { %1893 = vst.msk [vmem:[#allocation2 + $0x8] sm:$0xff] %vm238_vm2, %v1889_v39  ;;  %v4018_v40 = vpop.f32.mrb[23].mxu1  ;;  %v4230_v39 = vpack.c.bf16 %v3690_v38, %v3689_v37 }
0x10bb   :  { %v3691_v40 = vld [vmem:[%s5098_s12 + $0x60] sm:$0xff] }
0x10bc   :  { %v4234_v42 = vpack.c.bf16 %v3692_v41, %v3691_v40 }
0x10eb   :  { %v2056_v47 = vpop.f32.mrb[24].mxu1 }
0x10ec   :  { %2061 = vrot.lane.b32.xlu1 %v2056_v47, %s4389_s28  ;;  %v4028_v48 = vpop.f32.mrb[25].mxu1 }
0x1128   :  { %v1725_v49 = vpop.permute.xlu0 %1724 }
0x1129   :  { %1727 = vst.msk [vmem:[#allocation2] sm:$0xff] %vm573_vm4, %v1725_v49 }
0x1130   :  { %v2065_v10 = vld [vmem:[#allocation2] sm:$0xff] }
0x1131   :  { %4037 = vmatprep.mubr.msk.f32.mxu0 %vm67_vm0, %v2065_v10 }
0x115e   :  { %v2062_v7 = vpop.permute.xlu1 %2061 }
0x115f   :  { %2064 = vst.msk [vmem:[#allocation2 + $0x8] sm:$0xff] %vm573_vm4, %v2062_v7 }
0x1166   :  { %v2066_v50 = vld [vmem:[#allocation2 + $0x8] sm:$0xff] }
0x1167   :  { %4038 = vmatmul.mubr.msk.f32.vlgmr.msra.gmra.mrb[16].mxu0 %vm67_vm0, %v2066_v50 }
0x1168   :  { %4229 = vmatpush3.bf16.msra.mxu0 %v4226_v36 }
0x1169   :  { %4231 = vmatprep.subr.bf16.mxu0 %v4230_v39 }
0x116c   :  { %4233 = vmatpush3.bf16.msra.mxu0 %v4230_v39  ;;  %v3699_v39 = vld [vmem:[%s5101_s14 + $0x2] sm:$0x3] }
0x116d   :  { %4235 = vmatprep.subr.bf16.mxu0 %v4234_v42  ;;  %v2446_v40 = vrot.slane %v3699_v39, %v4639_v63  ;;  %v2452_v44 = vrot.slane %v3699_v39, %v4644_v1 }
0x1170   :  { %4237 = vmatpush3.bf16.msra.mxu0 %v4234_v42 }
0x1171   :  { %4239 = vmatprep.subr.bf16.mxu0 %v4238_v45 }
0x1174   :  { %4241 = vmatpush3.bf16.msra.mxu0 %v4238_v45 }
0x1175   :  { %4091 = vmatprep.subr.mxu0 %v4382_v11 }
0x123a   :  { %v4039_v52 = vpop.f32.mrb[16].mxu0 }
0x123b   :  { %v2158_v53 = vadd.f32 %v4039_v52, %v3675_v51  ;;  %v2152_v54 = vpop.f32.mrb[17].mxu0 }
0x123c   :  { %v2153_v55 = vadd.f32 %v3675_v51, %v2152_v54 }
0x123d   :  { %v2164_v56 = vadd.f32 %v2158_v53, %v4711_v29 }
0x123e   :  { %v2163_v57 = vadd.f32 %v2153_v55, %v4713_v30  ;;  %v3679_v30 = vld [vmem:[%s5096_s10 + $0x20] sm:$0xff] }
0x123f   :  { %v2168_v58 = vsel %vm67_vm0, %v2164_v56, 0.0  ;;  %v4218_v9 = vpack.c.bf16 %v3680_v8, %v3679_v30 }
0x1240   :  { %2169 = vadd.xlane.f32.xlu1 %v2168_v58  ;;  %v2165_v59 = vsel %vm67_vm0, %v2163_v57, 0.0 }
0x1241   :  { %2166 = vadd.xlane.f32.xlu0 %v2165_v59  ;;  %4219 = vmatprep.subr.bf16.mxu1 %v4218_v9 }
0x1242   :  { %4221 = vmatpush3.bf16.msra.mxu1 %v4218_v9 }
0x1243   :  { %4223 = vmatprep.subr.bf16.mxu1 %v4222_v14 }
0x1246   :  { %4225 = vmatpush3.bf16.msra.mxu1 %v4222_v14 }
0x12cd   :  { %v2170_v60 = vpop.xlane.xlu1 %2169 }
0x12ce   :  { %v2172_v61 = vmul.f32 0.03125, %v2170_v60  ;;  %v2167_v62 = vpop.xlane.xlu0 %2166 }
0x12cf   :  { %v2171_v0 = vmul.f32 0.03125, %v2167_v62 }
0x12d0   :  { %v2174_v2 = vsub.f32 %v2164_v56, %v2172_v61 }
0x12d1   :  { %v2173_v3 = vsub.f32 %v2163_v57, %v2171_v0 }
0x12d2   :  { %v2176_v6 = vmul.f32 %v2174_v2, %v2174_v2 }
0x12d3   :  { %v2175_v4 = vmul.f32 %v2173_v3, %v2173_v3 }
0x12d4   :  { %v2180_v29 = vsel %vm67_vm0, %v2176_v6, 0.0 }
0x12d5   :  { %v2177_v5 = vsel %vm67_vm0, %v2175_v4, 0.0 }
0x12d6   :  { %2178 = vadd.xlane.f32.xlu0 %v2177_v5  ;;  %v3696_v5 = vld [vmem:[%s5100_s13 + $0x1] ss:$0 sm:$0xff] }
0x12da   :  { %2181 = vadd.xlane.f32.xlu0 %v2180_v29 }
0x1363   :  { %v2179_v15 = vpop.xlane.xlu0 %2178 }
0x1364   :  { %v2183_v16 = vmul.f32 0.03125, %v2179_v15 }
0x1366   :  { %v2185_v17 = vadd.f32 1e-12, %v2183_v16 }
0x1367   :  { %v2182_v18 = vpop.xlane.xlu0 %2181 }
0x1368   :  { %4342 = vrsqrt.f32 %v2185_v17  ;;  %v2184_v19 = vmul.f32 0.03125, %v2182_v18 }
0x136a   :  { %v2186_v20 = vadd.f32 1e-12, %v2184_v19 }
0x136c   :  { %4344 = vrsqrt.f32 %v2186_v20 }
0x1372   :  { %v4343_v23 = vpop.eup %4342 }
0x1373   :  { %v2189_v24 = vmul.f32 %v4343_v23, %v2173_v3 }
0x1375   :  { %v2195_v26 = vmul.f32 %v2194_v22, %v2189_v24 }
0x1376   :  { %v4345_v27 = vpop.eup %4344 }
0x1377   :  { %v2190_v28 = vmul.f32 %v4345_v27, %v2174_v2  ;;  %v2201_v31 = vadd.f32 %v2200_v25, %v2195_v26  ;;  %v3703_v26 = vld [vmem:[%s5092_s5 + $0x48] sm:$0xff] }
0x1379   :  { %v2196_v32 = vmul.f32 %v2194_v22, %v2190_v28  ;;  %4048 = vmatprep.mubr.msk.f32.mxu1 %vm67_vm0, %v2201_v31  ;;  %v3704_v28 = vld [vmem:[%s5092_s5 + $0x50] sm:$0xff] }
0x137b   :  { %v2202_v33 = vadd.f32 %v2200_v25, %v2196_v32  ;;  %v3702_v25 = vld [vmem:[%s5092_s5 + $0x40] sm:$0xff] }
0x137c   :  { %v4242_v27 = vpack.c.bf16 %v3703_v26, %v3702_v25 }
0x137d   :  { %4049 = vmatmul.mubr.msk.f32.vlgmr.msra.gmra.mrb[26].mxu1 %vm67_vm0, %v2202_v33 }
0x137e   :  { %4243 = vmatprep.subr.bf16.mxu1 %v4242_v27 }
0x137f   :  { %4245 = vmatpush3.bf16.msra.mxu1 %v4242_v27 }
0x1450   :  { %v4050_v47 = vpop.f32.mrb[26].mxu1 }
0x1451   :  { %v2294_v48 = vadd.f32 %v4050_v47, %v3684_v46  ;;  %v2288_v49 = vpop.f32.mrb[27].mxu1 }
0x1452   :  { %v2289_v10 = vadd.f32 %v3684_v46, %v2288_v49 }
0x1453   :  { %v2300_v7 = vmul.f32 0.044715, %v2294_v48  ;;  %v2298_v2 = vmul.f32 0.5, %v2294_v48 }
0x1454   :  { %v2299_v50 = vmul.f32 0.044715, %v2289_v10  ;;  %v2297_v62 = vmul.f32 0.5, %v2289_v10 }
0x1455   :  { %v2302_v51 = vmul.f32 %v2300_v7, %v2294_v48 }
0x1456   :  { %v2301_v52 = vmul.f32 %v2299_v50, %v2289_v10 }
0x1457   :  { %v2304_v53 = vmul.f32 %v2302_v51, %v2294_v48 }
0x1458   :  { %v2303_v54 = vmul.f32 %v2301_v52, %v2289_v10 }
0x1459   :  { %v2306_v55 = vadd.f32 %v2304_v53, %v2294_v48 }
0x145a   :  { %v2305_v56 = vadd.f32 %v2303_v54, %v2289_v10  ;;  %v3707_v10 = vld [vmem:[%s5093_s6 + $0x2] ss:$0 sm:$0xff] }
0x145b   :  { %v2308_v57 = vmul.f32 0.7978846, %v2306_v55 }
0x145c   :  { %v2307_v58 = vmul.f32 0.7978846, %v2305_v56 }
0x145d   :  { %4346 = vtanh.f32 %v2308_v57 }
0x145e   :  { %4348 = vtanh.f32 %v2307_v58 }
0x1467   :  { %v4347_v59 = vpop.eup %4346 }
0x1468   :  { %v4349_v60 = vpop.eup %4348  ;;  %v2312_v61 = vadd.f32 1.0, %v4347_v59 }
0x1469   :  { %v2311_v0 = vadd.f32 1.0, %v4349_v60 }
0x146a   :  { %v2314_v4 = vmul.f32 %v2312_v61, %v2298_v2 }
0x146b   :  { %v2313_v3 = vmul.f32 %v2311_v0, %v2297_v62 }
0x146d   :  { %4067 = vmatprep.mubr.msk.f32.mxu0 %vm1172_vm5, %v2313_v3 }
0x146e   :  { %4068 = vmatmul.mubr.msk.f32.vlgmr.msra.gmra.mrb[18].mxu0 %vm1172_vm5, %v2314_v4 }
0x146f   :  { %4093 = vmatprep.mubr.msk.f32.mxu0 %vm4383_vm1, %v4382_v11 }
0x1541   :  { %v4069_v6 = vpop.f32.mrb[18].mxu0 }
0x1542   :  { %v2410_v29 = vadd.f32 %v4069_v6, %v3696_v5  ;;  %v2404_v30 = vpop.f32.mrb[19].mxu0 }
0x1543   :  { %v2405_v8 = vadd.f32 %v3696_v5, %v2404_v30 }
0x1544   :  { %v2416_v9 = vadd.f32 %v2410_v29, %v2202_v33 }
0x1545   :  { %v2415_v12 = vadd.f32 %v2405_v8, %v2201_v31  ;;  %v3705_v31 = vld [vmem:[%s5092_s5 + $0x58] sm:$0xff] }
0x1546   :  { %v2420_v13 = vsel %vm67_vm0, %v2416_v9, 0.0  ;;  %v4246_v32 = vpack.c.bf16 %v3705_v31, %v3704_v28 }
0x1547   :  { %2421 = vadd.xlane.f32.xlu1 %v2420_v13  ;;  %v2417_v14 = vsel %vm67_vm0, %v2415_v12, 0.0 }
0x1548   :  { %2418 = vadd.xlane.f32.xlu0 %v2417_v14  ;;  %4247 = vmatprep.subr.bf16.mxu1 %v4246_v32 }
0x1549   :  { %4249 = vmatpush3.bf16.msra.mxu1 %v4246_v32 }
0x154a   :  { %4081 = vmatprep.subr.mxu1 %v4382_v11 }
0x15d4   :  { %v2422_v15 = vpop.xlane.xlu1 %2421 }
0x15d5   :  { %v2424_v16 = vmul.f32 0.03125, %v2422_v15  ;;  %v2419_v17 = vpop.xlane.xlu0 %2418 }
0x15d6   :  { %v2423_v18 = vmul.f32 0.03125, %v2419_v17 }
0x15d7   :  { %v2426_v19 = vsub.f32 %v2416_v9, %v2424_v16 }
0x15d8   :  { %v2425_v20 = vsub.f32 %v2415_v12, %v2423_v18 }
0x15d9   :  { %v2428_v21 = vmul.f32 %v2426_v19, %v2426_v19 }
0x15da   :  { %v2427_v22 = vmul.f32 %v2425_v20, %v2425_v20 }
0x15db   :  { %v2432_v23 = vsel %vm67_vm0, %v2428_v21, 0.0 }
0x15dc   :  { %2433 = vadd.xlane.f32.xlu1 %v2432_v23  ;;  %v2429_v24 = vsel %vm67_vm0, %v2427_v22, 0.0 }
0x15dd   :  { %2430 = vadd.xlane.f32.xlu0 %v2429_v24 }
0x1669   :  { %v2434_v33 = vpop.xlane.xlu1 %2433 }
0x166a   :  { %v2436_v34 = vmul.f32 0.03125, %v2434_v33  ;;  %v2431_v35 = vpop.xlane.xlu0 %2430 }
0x166b   :  { %v2435_v36 = vmul.f32 0.03125, %v2431_v35 }
0x166c   :  { %v2438_v37 = vadd.f32 1e-12, %v2436_v34 }
0x166d   :  { %v2437_v38 = vadd.f32 1e-12, %v2435_v36 }
0x166e   :  { %4350 = vrsqrt.f32 %v2438_v37 }
0x166f   :  { %4352 = vrsqrt.f32 %v2437_v38 }
0x1678   :  { %v4351_v41 = vpop.eup %4350 }
0x1679   :  { %v4353_v42 = vpop.eup %4352  ;;  %v2442_v43 = vmul.f32 %v4351_v41, %v2426_v19 }
0x167a   :  { %v2441_v45 = vmul.f32 %v4353_v42, %v2425_v20 }
0x167b   :  { %v2448_v46 = vmul.f32 %v2446_v40, %v2442_v43 }
0x167c   :  { %v2447_v47 = vmul.f32 %v2446_v40, %v2441_v45 }
0x167d   :  { %v4903_v48 = vadd.f32 %v2452_v44, %v2448_v46 }
0x167e   :  { %v4905_v49 = vadd.f32 %v2452_v44, %v2447_v47 }
0x167f   :  { %3701 = vst.msk [vmem:[%s5102_s15 + $0x18] sm:$0xff] %vm67_vm0, %v4903_v48 }
0x1680   :  { %3700 = vst.msk [vmem:[%s5102_s15 + $0x10] sm:$0xff] %vm67_vm0, %v4905_v49  ;;  %4078 = vmatprep.mubr.msk.f32.mxu1 %vm67_vm0, %v4905_v49 }
0x1681   :  { %4079 = vmatmul.mubr.msk.f32.vlgmr.msra.gmra.mrb[28].mxu1 %vm67_vm0, %v4903_v48 }
0x1682   :  { %4083 = vmatprep.mubr.msk.f32.mxu1 %vm4383_vm1, %v4382_v11 }
0x1754   :  { %v4080_v7 = vpop.f32.mrb[28].mxu1 }
0x1755   :  { %v2543_v50 = vpop.f32.mrb[29].mxu1  ;;  %v4932_v52 = vadd.f32 %v4080_v7, %v3707_v10 }
0x1756   :  { %v4926_v51 = vadd.f32 %v3707_v10, %v2543_v50 }
0x1758   :  { %2720 = vrot.lane.b32.xlu1 %v4926_v51, %s4384_s26  ;;  %2553 = vrot.lane.b32.xlu0 %v4926_v51, %s4385_s27 }
0x175c   :  { %2718 = vrot.lane.b32.xlu1 %v4926_v51, %s4386_s0  ;;  %3057 = vrot.lane.b32.xlu0 %v4932_v52, %s4384_s26 }
0x1760   :  { %2890 = vrot.lane.b32.xlu1 %v4932_v52, %s4385_s27 }
0x1764   :  { %3055 = vrot.lane.b32.xlu1 %v4932_v52, %s4386_s0 }
0x17ca   :  { %v2721_v53 = vpop.permute.xlu1 %2720  ;;  %v2554_v54 = vpop.permute.xlu0 %2553 }
0x17cb   :  { %4082 = vmatpush3.xpose.msk.msra.mxu1 %vm238_vm2, %v2554_v54  ;;  %4092 = vmatpush3.xpose.msk.msra.mxu0 %vm238_vm2, %v2721_v53 }
0x17cc   :  { %4101 = vmatprep.subr.mxu0 %v4382_v11  ;;  %4086 = vmatprep.subr.mxu1 %v4382_v11 }
0x17ce   :  { %v2719_v55 = vpop.permute.xlu1 %2718  ;;  %4084 = vmatmul.mubr.msk.f32.vlgmr.msra.gmra.mrb[30].mxu1 %vm238_vm2, %v4926_v51  ;;  %v3058_v57 = vpop.permute.xlu0 %3057 }
0x17cf   :  { %4094 = vmatmul.mubr.msk.f32.vlgmr.msra.gmra.mrb[20].mxu0 %vm238_vm2, %v2719_v55  ;;  %4088 = vmatprep.mubr.msk.f32.mxu1 %vm4383_vm1, %v4382_v11 }
0x17d0   :  { %4103 = vmatprep.mubr.msk.f32.mxu0 %vm4383_vm1, %v4382_v11 }
0x17d2   :  { %v2891_v56 = vpop.permute.xlu1 %2890 }
0x17d3   :  { %4102 = vmatpush3.xpose.msk.msra.mxu0 %vm238_vm2, %v2891_v56 }
0x17d4   :  { %4111 = vmatprep.subr.mxu0 %v4382_v11 }
0x17d6   :  { %4104 = vmatmul.mubr.msk.f32.vlgmr.msra.gmra.mrb[22].mxu0 %vm238_vm2, %v4932_v52  ;;  %v3056_v58 = vpop.permute.xlu1 %3055 }
0x17d7   :  { %4112 = vmatpush3.xpose.msk.msra.mxu0 %vm238_vm2, %v3058_v57  ;;  %4113 = vmatprep.mubr.msk.f32.mxu0 %vm4383_vm1, %v4382_v11  ;;  %v3722_v57 = vld [vmem:[%s5094_s7 + $0x40] sm:$0xff] }
0x17da   :  { %4114 = vmatmul.mubr.msk.f32.vlgmr.msra.gmra.mrb[24].mxu0 %vm238_vm2, %v3056_v58  ;;  %v3723_v58 = vld [vmem:[%s5094_s7 + $0x48] sm:$0xff] }
0x18a1   :  { %v2625_v59 = vpop.f32.mrb[30].mxu1 }
0x18a2   :  { %v2629_v60 = vmul.f32 0.25, %v2625_v59  ;;  %v4085_v61 = vpop.f32.mrb[31].mxu1  ;;  %v2792_v62 = vpop.f32.mrb[20].mxu0  ;;  %v4250_v59 = vpack.c.bf16 %v3723_v58, %v3722_v57  ;;  %v3745_v58 = vld [vmem:[%s5098_s12 + $0xb0] sm:$0xff] }
0x18a3   :  { %v2796_v0 = vmul.f32 0.25, %v2792_v62  ;;  %v4095_v2 = vpop.f32.mrb[21].mxu0  ;;  %v3725_v61 = vld [vmem:[%s5094_s7 + $0x58] sm:$0xff] }
0x18a4   :  { %v2630_v3 = vsel %vm314_vm3, %v2629_v60, -inf  ;;  %4251 = vmatprep.subr.bf16.mxu0 %v4250_v59 }
0x18a5   :  { %2631 = vmax.xlane.f32.xlu0 %v2630_v3  ;;  %v2797_v4 = vsel %vm314_vm3, %v2796_v0, -inf  ;;  %4253 = vmatpush3.bf16.msra.mxu0 %v4250_v59  ;;  %v3746_v59 = vld [vmem:[%s5098_s12 + $0xb8] sm:$0xff] }
0x18a6   :  { %2798 = vmax.xlane.f32.xlu1 %v2797_v4 }
0x18a9   :  { %v2962_v5 = vpop.f32.mrb[22].mxu0 }
0x18aa   :  { %v2966_v6 = vmul.f32 0.25, %v2962_v5  ;;  %v4105_v29 = vpop.f32.mrb[23].mxu0 }
0x18ab   :  { %v3727_v29 = vld [vmem:[%s5095_s8 + $0x2] ss:$0 sm:$0xff] }
0x18ac   :  { %v2967_v30 = vsel %vm314_vm3, %v2966_v6, -inf }
0x18ad   :  { %2968 = vmax.xlane.f32.xlu0 %v2967_v30  ;;  %v3129_v8 = vpop.f32.mrb[24].mxu0 }
0x18ae   :  { %v3133_v9 = vmul.f32 0.25, %v3129_v8  ;;  %v4115_v12 = vpop.f32.mrb[25].mxu0 }
0x18b0   :  { %v3134_v13 = vsel %vm314_vm3, %v3133_v9, -inf }
0x18b1   :  { %3135 = vmax.xlane.f32.xlu0 %v3134_v13 }
0x1932   :  { %v2632_v14 = vpop.xlane.xlu0 %2631 }
0x1933   :  { %v2633_v15 = vsub.f32 %v2629_v60, %v2632_v14  ;;  %v2799_v16 = vpop.xlane.xlu1 %2798  ;;  %v3724_v60 = vld [vmem:[%s5094_s7 + $0x50] sm:$0xff] }
0x1934   :  { %v2800_v17 = vsub.f32 %v2796_v0, %v2799_v16  ;;  %v4254_v62 = vpack.c.bf16 %v3725_v61, %v3724_v60  ;;  %v4278_v60 = vpack.c.bf16 %v3746_v59, %v3745_v58  ;;  %v3736_v61 = vld [vmem:[%s5099_s11 + $0x2] ss:$0 sm:$0xff] }
0x1935   :  { %v2634_v18 = vmul.f32 1.442695, %v2633_v15 }
0x1936   :  { %v2801_v19 = vmul.f32 1.442695, %v2800_v17  ;;  %4255 = vmatprep.subr.bf16.mxu0 %v4254_v62 }
0x1937   :  { %4354 = vpow2.f32 %v2634_v18  ;;  %4257 = vmatpush3.bf16.msra.mxu0 %v4254_v62 }
0x1938   :  { %4356 = vpow2.f32 %v2801_v19 }
0x193a   :  { %v2969_v20 = vpop.xlane.xlu0 %2968 }
0x193b   :  { %v2970_v21 = vsub.f32 %v2966_v6, %v2969_v20 }
0x193d   :  { %v2971_v22 = vmul.f32 1.442695, %v2970_v21 }
0x193e   :  { %v3136_v31 = vpop.xlane.xlu0 %3135 }
0x193f   :  { %4358 = vpow2.f32 %v2971_v22  ;;  %v3137_v32 = vsub.f32 %v3133_v9, %v3136_v31  ;;  %v3734_v31 = vld [vmem:[%s5096_s10 + $0x58] sm:$0xff] }
0x1941   :  { %v4355_v23 = vpop.eup %4354  ;;  %v3138_v33 = vmul.f32 1.442695, %v3137_v32 }
0x1942   :  { %v4357_v24 = vpop.eup %4356  ;;  %v2636_v25 = vsel %vm314_vm3, %v4355_v23, 0.0 }
0x1943   :  { %2637 = vadd.xlane.f32.xlu0 %v2636_v25  ;;  %v2803_v26 = vsel %vm314_vm3, %v4357_v24, 0.0  ;;  %4360 = vpow2.f32 %v3138_v33 }
0x1944   :  { %2804 = vadd.xlane.f32.xlu1 %v2803_v26  ;;  %v3732_v26 = vld [vmem:[%s5096_s10 + $0x48] sm:$0xff] }
0x1949   :  { %v4359_v27 = vpop.eup %4358 }
0x194a   :  { %v2973_v28 = vsel %vm314_vm3, %v4359_v27, 0.0 }
0x194b   :  { %2974 = vadd.xlane.f32.xlu0 %v2973_v28  ;;  %v3733_v28 = vld [vmem:[%s5096_s10 + $0x50] sm:$0xff] }
0x194c   :  { %v4262_v32 = vpack.c.bf16 %v3734_v31, %v3733_v28 }
0x194d   :  { %v4361_v34 = vpop.eup %4360 }
0x194e   :  { %v3140_v35 = vsel %vm314_vm3, %v4361_v34, 0.0 }
0x1955   :  { %2808 = vrot.lane.b32.xlu1 %v4926_v51, %s4387_s2 }
0x1959   :  { %2978 = vrot.lane.b32.xlu1 %v4932_v52, %s4388_s3 }
0x1961   :  { %2641 = vrot.lane.b32.xlu0 %v4926_v51, %s4388_s3 }
0x197d   :  { %3141 = vadd.xlane.f32.xlu1 %v3140_v35 }
0x198e   :  { %3145 = vrot.lane.b32.xlu1 %v4932_v52, %s4387_s2 }
0x19d0   :  { %v2638_v36 = vpop.xlane.xlu0 %2637 }
0x19d1   :  { %4362 = vrcp.f32 %v2638_v36  ;;  %v2805_v37 = vpop.xlane.xlu1 %2804 }
0x19d2   :  { %4364 = vrcp.f32 %v2805_v37 }
0x19d5   :  { %v2809_v41 = vpop.permute.xlu1 %2808 }
0x19d8   :  { %v2975_v38 = vpop.xlane.xlu0 %2974 }
0x19d9   :  { %4366 = vrcp.f32 %v2975_v38  ;;  %v2979_v45 = vpop.permute.xlu1 %2978 }
0x19db   :  { %v4363_v39 = vpop.eup %4362 }
0x19dc   :  { %v2640_v40 = vmul.f32 %v4363_v39, %v4355_v23  ;;  %v2642_v42 = vpop.permute.xlu0 %2641  ;;  %v4365_v43 = vpop.eup %4364  ;;  %v3730_v39 = vld [vmem:[%s5097_s9 + $0x4] sm:$0x3] }
0x19dd   :  { %4087 = vmatpush3.msra.mxu1 %v2642_v42  ;;  %v2807_v44 = vmul.f32 %v4365_v43, %v4357_v24  ;;  %v3361_v43 = vrot.slane %v3730_v39, %v4644_v1 }
0x19de   :  { %4089 = vmatmul.mubr.msk.f32.vlgmr.msra.gmra.mrb[32].mxu1 %vm314_vm3, %v2640_v40  ;;  %4096 = vmatprep.subr.mxu1 %v4382_v11  ;;  %v3355_v40 = vrot.slane %v3730_v39, %v4639_v63 }
0x19df   :  { %4097 = vmatpush3.msra.mxu1 %v2809_v41  ;;  %4098 = vmatprep.mubr.msk.f32.mxu1 %vm4383_vm1, %v4382_v11 }
0x19e0   :  { %4106 = vmatprep.subr.mxu1 %v4382_v11 }
0x19e2   :  { %4099 = vmatmul.mubr.msk.f32.vlgmr.msra.gmra.mrb[34].mxu1 %vm314_vm3, %v2807_v44 }
0x19e3   :  { %v4367_v46 = vpop.eup %4366  ;;  %4107 = vmatpush3.msra.mxu1 %v2979_v45  ;;  %4108 = vmatprep.mubr.msk.f32.mxu1 %vm4383_vm1, %v4382_v11 }
0x19e4   :  { %v2977_v47 = vmul.f32 %v4367_v46, %v4359_v27  ;;  %4116 = vmatprep.subr.mxu1 %v4382_v11 }
0x19e6   :  { %4109 = vmatmul.mubr.msk.f32.vlgmr.msra.gmra.mrb[36].mxu1 %vm314_vm3, %v2977_v47 }
0x19e7   :  { %4118 = vmatprep.mubr.msk.f32.mxu1 %vm4383_vm1, %v4382_v11 }
0x1a0a   :  { %v3142_v10 = vpop.xlane.xlu1 %3141 }
0x1a0b   :  { %4368 = vrcp.f32 %v3142_v10 }
0x1a0e   :  { %v3146_v7 = vpop.permute.xlu1 %3145 }
0x1a0f   :  { %4117 = vmatpush3.msra.mxu1 %v3146_v7 }
0x1a15   :  { %v4369_v50 = vpop.eup %4368 }
0x1a16   :  { %v3144_v51 = vmul.f32 %v4369_v50, %v4361_v34  ;;  %v3739_v50 = vld [vmem:[%s5098_s12 + $0x80] sm:$0xff] }
0x1a18   :  { %4119 = vmatmul.mubr.msk.f32.vlgmr.msra.gmra.mrb[38].mxu1 %vm314_vm3, %v3144_v51  ;;  %v3740_v51 = vld [vmem:[%s5098_s12 + $0x88] sm:$0xff] }
0x1ab1   :  { %v2713_v52 = vpop.f32.mrb[32].mxu1 }
0x1ab2   :  { %2717 = vst.msk [vmem:[#allocation2] sm:$0xff] %vm238_vm2, %v2713_v52  ;;  %v4090_v53 = vpop.f32.mrb[33].mxu1  ;;  %v4266_v52 = vpack.c.bf16 %v3740_v51, %v3739_v50 }
0x1ab3   :  { %v3741_v53 = vld [vmem:[%s5098_s12 + $0x90] sm:$0xff] }
0x1ab4   :  { %4267 = vmatprep.subr.bf16.mxu0 %v4266_v52 }
0x1ab5   :  { %v2880_v54 = vpop.f32.mrb[34].mxu1 }
0x1ab6   :  { %2885 = vrot.lane.b32.xlu0 %v2880_v54, %s4389_s28  ;;  %v4100_v55 = vpop.f32.mrb[35].mxu1  ;;  %v3742_v54 = vld [vmem:[%s5098_s12 + $0x98] sm:$0xff] }
0x1ab7   :  { %v4270_v55 = vpack.c.bf16 %v3742_v54, %v3741_v53 }
0x1ab9   :  { %v3050_v56 = vpop.f32.mrb[36].mxu1 }
0x1aba   :  { %3054 = vst.msk [vmem:[#allocation2 + $0x8] sm:$0xff] %vm238_vm2, %v3050_v56  ;;  %v4110_v11 = vpop.f32.mrb[37].mxu1  ;;  %v3743_v56 = vld [vmem:[%s5098_s12 + $0xa0] sm:$0xff] }
0x1abb   :  { %v3744_v11 = vld [vmem:[%s5098_s12 + $0xa8] sm:$0xff] }
0x1abc   :  { %v4274_v57 = vpack.c.bf16 %v3744_v11, %v3743_v56 }
0x1aeb   :  { %v3217_v0 = vpop.f32.mrb[38].mxu1 }
0x1aec   :  { %3222 = vrot.lane.b32.xlu1 %v3217_v0, %s4389_s28  ;;  %v4120_v2 = vpop.f32.mrb[39].mxu1 }
0x1b28   :  { %v2886_v3 = vpop.permute.xlu0 %2885 }
0x1b29   :  { %2888 = vst.msk [vmem:[#allocation2] sm:$0xff] %vm573_vm4, %v2886_v3 }
0x1b30   :  { %v3226_v4 = vld [vmem:[#allocation2] sm:$0xff] }
0x1b31   :  { %4129 = vmatprep.mubr.msk.f32.mxu0 %vm67_vm0, %v3226_v4 }
0x1b5e   :  { %v3223_v5 = vpop.permute.xlu1 %3222 }
0x1b5f   :  { %3225 = vst.msk [vmem:[#allocation2 + $0x8] sm:$0xff] %vm573_vm4, %v3223_v5 }
0x1b66   :  { %v3227_v6 = vld [vmem:[#allocation2 + $0x8] sm:$0xff] }
0x1b67   :  { %4130 = vmatmul.mubr.msk.f32.vlgmr.msra.gmra.mrb[26].mxu0 %vm67_vm0, %v3227_v6 }
0x1b68   :  { %4269 = vmatpush3.bf16.msra.mxu0 %v4266_v52 }
0x1b69   :  { %4271 = vmatprep.subr.bf16.mxu0 %v4270_v55 }
0x1b6c   :  { %4273 = vmatpush3.bf16.msra.mxu0 %v4270_v55 }
0x1b6d   :  { %4275 = vmatprep.subr.bf16.mxu0 %v4274_v57 }
0x1b70   :  { %4277 = vmatpush3.bf16.msra.mxu0 %v4274_v57 }
0x1b71   :  { %4279 = vmatprep.subr.bf16.mxu0 %v4278_v60 }
0x1b74   :  { %4281 = vmatpush3.bf16.msra.mxu0 %v4278_v60 }
0x1c3a   :  { %v4131_v30 = vpop.f32.mrb[26].mxu0 }
0x1c3b   :  { %v3319_v8 = vadd.f32 %v4131_v30, %v3727_v29  ;;  %v3313_v9 = vpop.f32.mrb[27].mxu0 }
0x1c3c   :  { %v3314_v12 = vadd.f32 %v3727_v29, %v3313_v9 }
0x1c3d   :  { %v3325_v13 = vadd.f32 %v3319_v8, %v4903_v48 }
0x1c3e   :  { %v3324_v14 = vadd.f32 %v3314_v12, %v4905_v49  ;;  %v3731_v49 = vld [vmem:[%s5096_s10 + $0x40] sm:$0xff] }
0x1c3f   :  { %v3329_v15 = vsel %vm67_vm0, %v3325_v13, 0.0  ;;  %v4258_v27 = vpack.c.bf16 %v3732_v26, %v3731_v49 }
0x1c40   :  { %3330 = vadd.xlane.f32.xlu1 %v3329_v15  ;;  %v3326_v16 = vsel %vm67_vm0, %v3324_v14, 0.0 }
0x1c41   :  { %3327 = vadd.xlane.f32.xlu0 %v3326_v16  ;;  %4259 = vmatprep.subr.bf16.mxu1 %v4258_v27 }
0x1c42   :  { %4261 = vmatpush3.bf16.msra.mxu1 %v4258_v27 }
0x1c43   :  { %4263 = vmatprep.subr.bf16.mxu1 %v4262_v32 }
0x1c46   :  { %4265 = vmatpush3.bf16.msra.mxu1 %v4262_v32 }
0x1ccd   :  { %v3331_v17 = vpop.xlane.xlu1 %3330 }
0x1cce   :  { %v3333_v18 = vmul.f32 0.03125, %v3331_v17  ;;  %v3328_v19 = vpop.xlane.xlu0 %3327 }
0x1ccf   :  { %v3332_v20 = vmul.f32 0.03125, %v3328_v19 }
0x1cd0   :  { %v3335_v21 = vsub.f32 %v3325_v13, %v3333_v18 }
0x1cd1   :  { %v3334_v22 = vsub.f32 %v3324_v14, %v3332_v20 }
0x1cd2   :  { %v3337_v25 = vmul.f32 %v3335_v21, %v3335_v21 }
0x1cd3   :  { %v3336_v23 = vmul.f32 %v3334_v22, %v3334_v22 }
0x1cd4   :  { %v3341_v48 = vsel %vm67_vm0, %v3337_v25, 0.0 }
0x1cd5   :  { %v3338_v24 = vsel %vm67_vm0, %v3336_v23, 0.0  ;;  %v3748_v23 = vld [vmem:[%s5100_s13 + $0x2] ss:$0 sm:$0xff] }
0x1cd6   :  { %3339 = vadd.xlane.f32.xlu0 %v3338_v24 }
0x1cda   :  { %3342 = vadd.xlane.f32.xlu0 %v3341_v48 }
0x1d63   :  { %v3340_v33 = vpop.xlane.xlu0 %3339 }
0x1d64   :  { %v3344_v34 = vmul.f32 0.03125, %v3340_v33 }
0x1d66   :  { %v3346_v35 = vadd.f32 1e-12, %v3344_v34 }
0x1d67   :  { %v3343_v36 = vpop.xlane.xlu0 %3342 }
0x1d68   :  { %4370 = vrsqrt.f32 %v3346_v35  ;;  %v3345_v37 = vmul.f32 0.03125, %v3343_v36 }
0x1d6a   :  { %v3347_v38 = vadd.f32 1e-12, %v3345_v37 }
0x1d6c   :  { %4372 = vrsqrt.f32 %v3347_v38 }
0x1d72   :  { %v4371_v41 = vpop.eup %4370 }
0x1d73   :  { %v3350_v42 = vmul.f32 %v4371_v41, %v3334_v22 }
0x1d75   :  { %v3356_v44 = vmul.f32 %v3355_v40, %v3350_v42 }
0x1d76   :  { %v4373_v45 = vpop.eup %4372 }
0x1d77   :  { %v3351_v46 = vmul.f32 %v4373_v45, %v3335_v21  ;;  %v3362_v47 = vadd.f32 %v3361_v43, %v3356_v44 }
0x1d79   :  { %v3357_v10 = vmul.f32 %v3355_v40, %v3351_v46  ;;  %4140 = vmatprep.mubr.msk.f32.mxu1 %vm67_vm0, %v3362_v47 }
0x1d7b   :  { %v3363_v7 = vadd.f32 %v3361_v43, %v3357_v10  ;;  %v3751_v10 = vld [vmem:[%s5101_s14 + $0x4] sm:$0x3] }
0x1d7c   :  { %v3613_v52 = vrot.slane %v3751_v10, %v4644_v1 }
0x1d7d   :  { %4141 = vmatmul.mubr.msk.f32.vlgmr.msra.gmra.mrb[40].mxu1 %vm67_vm0, %v3363_v7 }
0x1e50   :  { %v4142_v62 = vpop.f32.mrb[40].mxu1 }
0x1e51   :  { %v3455_v0 = vadd.f32 %v4142_v62, %v3736_v61  ;;  %v3449_v2 = vpop.f32.mrb[41].mxu1 }
0x1e52   :  { %v3450_v3 = vadd.f32 %v3736_v61, %v3449_v2 }
0x1e53   :  { %v3461_v4 = vmul.f32 0.044715, %v3455_v0  ;;  %v3459_v20 = vmul.f32 0.5, %v3455_v0 }
0x1e54   :  { %v3460_v5 = vmul.f32 0.044715, %v3450_v3  ;;  %v3458_v18 = vmul.f32 0.5, %v3450_v3 }
0x1e55   :  { %v3463_v6 = vmul.f32 %v3461_v4, %v3455_v0 }
0x1e56   :  { %v3462_v29 = vmul.f32 %v3460_v5, %v3450_v3 }
0x1e57   :  { %v3465_v30 = vmul.f32 %v3463_v6, %v3455_v0 }
0x1e58   :  { %v3464_v8 = vmul.f32 %v3462_v29, %v3450_v3 }
0x1e59   :  { %v3467_v9 = vadd.f32 %v3465_v30, %v3455_v0 }
0x1e5a   :  { %v3466_v12 = vadd.f32 %v3464_v8, %v3450_v3 }
0x1e5b   :  { %v3469_v13 = vmul.f32 0.7978846, %v3467_v9 }
0x1e5c   :  { %v3468_v14 = vmul.f32 0.7978846, %v3466_v12 }
0x1e5d   :  { %4374 = vtanh.f32 %v3469_v13 }
0x1e5e   :  { %4376 = vtanh.f32 %v3468_v14 }
0x1e67   :  { %v4375_v15 = vpop.eup %4374 }
0x1e68   :  { %v4377_v16 = vpop.eup %4376  ;;  %v3473_v17 = vadd.f32 1.0, %v4375_v15 }
0x1e69   :  { %v3472_v19 = vadd.f32 1.0, %v4377_v16 }
0x1e6a   :  { %v3475_v22 = vmul.f32 %v3473_v17, %v3459_v20 }
0x1e6b   :  { %v3474_v21 = vmul.f32 %v3472_v19, %v3458_v18 }
0x1e6d   :  { %4159 = vmatprep.mubr.msk.f32.mxu0 %vm1172_vm5, %v3474_v21 }
0x1e6e   :  { %4160 = vmatmul.mubr.msk.f32.vlgmr.msra.gmra.mrb[28].mxu0 %vm1172_vm5, %v3475_v22 }
0x1f41   :  { %v4161_v24 = vpop.f32.mrb[28].mxu0 }
0x1f42   :  { %v3571_v25 = vadd.f32 %v4161_v24, %v3748_v23  ;;  %v3565_v48 = vpop.f32.mrb[29].mxu0 }
0x1f43   :  { %v3566_v49 = vadd.f32 %v3748_v23, %v3565_v48 }
0x1f44   :  { %v3577_v26 = vadd.f32 %v3571_v25, %v3363_v7  ;;  %v3607_v7 = vrot.slane %v3751_v10, %v4639_v63 }
0x1f45   :  { %v3576_v27 = vadd.f32 %v3566_v49, %v3362_v47 }
0x1f46   :  { %v3581_v28 = vsel %vm67_vm0, %v3577_v26, 0.0 }
0x1f47   :  { %3582 = vadd.xlane.f32.xlu1 %v3581_v28  ;;  %v3578_v31 = vsel %vm67_vm0, %v3576_v27, 0.0 }
0x1f48   :  { %3579 = vadd.xlane.f32.xlu0 %v3578_v31 }
0x1fd4   :  { %v3583_v32 = vpop.xlane.xlu1 %3582 }
0x1fd5   :  { %v3585_v33 = vmul.f32 0.03125, %v3583_v32  ;;  %v3580_v34 = vpop.xlane.xlu0 %3579 }
0x1fd6   :  { %v3584_v35 = vmul.f32 0.03125, %v3580_v34 }
0x1fd7   :  { %v3587_v36 = vsub.f32 %v3577_v26, %v3585_v33 }
0x1fd8   :  { %v3586_v37 = vsub.f32 %v3576_v27, %v3584_v35 }
0x1fd9   :  { %v3589_v38 = vmul.f32 %v3587_v36, %v3587_v36 }
0x1fda   :  { %v3588_v39 = vmul.f32 %v3586_v37, %v3586_v37 }
0x1fdb   :  { %v3593_v40 = vsel %vm67_vm0, %v3589_v38, 0.0 }
0x1fdc   :  { %3594 = vadd.xlane.f32.xlu1 %v3593_v40  ;;  %v3590_v41 = vsel %vm67_vm0, %v3588_v39, 0.0 }
0x1fdd   :  { %3591 = vadd.xlane.f32.xlu0 %v3590_v41 }
0x2069   :  { %v3595_v42 = vpop.xlane.xlu1 %3594 }
0x206a   :  { %v3597_v43 = vmul.f32 0.03125, %v3595_v42  ;;  %v3592_v44 = vpop.xlane.xlu0 %3591 }
0x206b   :  { %v3596_v45 = vmul.f32 0.03125, %v3592_v44 }
0x206c   :  { %v3599_v46 = vadd.f32 1e-12, %v3597_v43 }
0x206d   :  { %v3598_v47 = vadd.f32 1e-12, %v3596_v45 }
0x206e   :  { %4378 = vrsqrt.f32 %v3599_v46 }
0x206f   :  { %4380 = vrsqrt.f32 %v3598_v47 }
0x2078   :  { %v4379_v50 = vpop.eup %4378 }
0x2079   :  { %v4381_v51 = vpop.eup %4380  ;;  %v3603_v53 = vmul.f32 %v4379_v50, %v3587_v36 }
0x207a   :  { %v3602_v54 = vmul.f32 %v4381_v51, %v3586_v37 }
0x207b   :  { %v3609_v55 = vmul.f32 %v3607_v7, %v3603_v53 }
0x207c   :  { %v3608_v56 = vmul.f32 %v3607_v7, %v3602_v54 }
0x207d   :  { %v3615_v11 = vadd.f32 %v3613_v52, %v3609_v55 }
0x207e   :  { %v3614_v57 = vadd.f32 %v3613_v52, %v3608_v56 }
0x207f   :  { %3753 = vst.msk [vmem:[%s5102_s15 + $0x28] sm:$0xff] %vm67_vm0, %v3615_v11 }
0x2080   :  { %3752 = vst.msk [vmem:[%s5102_s15 + $0x20] sm:$0xff] %vm67_vm0, %v3614_v57 }

</bundles_post_ra>
